<compile_context>
chip_gen: v7x
topology: tpu7x:2x2x1
jax: 0.10.0
libtpu: 0.0.40
codegen_flags: <defaults>
</compile_context>

<pallas_src>
import jax
import jax.numpy as jnp
from jax.experimental import pallas as pl
from jax.experimental.pallas import tpu as pltpu


def _make_kernel(H, W, PAD, negative_slope):
    HW = H * W

    def act(v):
        if negative_slope == 0.0:
            return jnp.maximum(v, 0.0)
        return jnp.maximum(v, 0.0) + negative_slope * jnp.minimum(v, 0.0)

    def kernel(x_ref, w1_ref, b1_ref, w2_ref, b2_ref, ws_ref, bs_ref,
               pool_ref, out_ref, buf_ref):
        f32 = jnp.float32
        x = x_ref[0].astype(f32)                               # (HW, Cin)

        # column index of each flattened pixel; masks kill row-wrap for dx = +-1
        xcol = jax.lax.broadcasted_iota(jnp.int32, (HW, 1), 0) % W
        ok_left = xcol >= 1                                     # dx == -1 valid
        ok_right = xcol <= (W - 2)                              # dx == +1 valid

        # zero-padded scratch: rows [0, PAD) and [PAD+HW, end) stay zero and
        # provide the vertical (dy) zero padding for the 3x3 convs.
        buf_ref[...] = jnp.zeros_like(buf_ref)

        def conv3x3(h_in, w_ref_, b_ref_):
            cout = w_ref_.shape[2]
            buf_ref[pl.ds(PAD, HW), :] = h_in                   # aligned interior store
            acc = jnp.zeros((HW, cout), f32)
            for ky in range(3):
                for kx in range(3):
                    dy, dx = ky - 1, kx - 1
                    tap = buf_ref[pl.ds(PAD + dy * W + dx, HW), :]   # shifted window
                    if dx == -1:
                        tap = jnp.where(ok_left, tap, 0.0)
                    elif dx == 1:
                        tap = jnp.where(ok_right, tap, 0.0)
                    acc = acc + jnp.dot(tap, w_ref_[ky * 3 + kx].astype(f32),
                                        preferred_element_type=f32)
            return acc + b_ref_[...].astype(f32)

        # ---- conv path: act -> conv3x3 -> act -> conv3x3 -> avgpool2x2 ----
        h = act(x)
        h = conv3x3(h, w1_ref, b1_ref)                          # (HW, Cin)
        h = act(h)
        h = conv3x3(h, w2_ref, b2_ref)                          # (HW, Cout)

        pool = pool_ref[...]                                    # (HW/4, HW), 0.25 weights
        conv_out = jnp.dot(pool, h, preferred_element_type=f32)         # (HW/4, Cout)

        # ---- shortcut: avgpool2x2 -> conv1x1 ----
        x_pool = jnp.dot(pool, x, preferred_element_type=f32)           # (HW/4, Cin)
        short = jnp.dot(x_pool, ws_ref[...].astype(f32),
                        preferred_element_type=f32) + bs_ref[...].astype(f32)

        out_ref[0] = (conv_out + short).astype(out_ref.dtype)

    return kernel


def basic_block_forward(x, conv1_w, conv1_b, conv2_w, conv2_b,
                        shortcut_w, shortcut_b, negative_slope=0.0):
    """x: (N, Cin, H, W) NCHW; conv weights in PyTorch OIHW layout.
    Returns (N, Cout, H/2, W/2)."""
    N, Cin, H, W = x.shape
    Cout = conv2_w.shape[0]
    assert H % 2 == 0 and W % 2 == 0
    HW = H * W
    HW4 = (H // 2) * (W // 2)
    PAD = ((W + 1 + 7) // 8) * 8          # sublane-aligned vertical zero padding

    # ---- layout plumbing (wrapper-side, native dtype preserved) ----
    x_flat = jnp.transpose(x, (0, 2, 3, 1)).reshape(N, HW, Cin)       # (N, HW, Cin)
    w1 = jnp.transpose(conv1_w, (2, 3, 1, 0)).reshape(9, Cin, Cin)    # (tap, Cin, Cin)
    w2 = jnp.transpose(conv2_w, (2, 3, 1, 0)).reshape(9, Cin, Cout)   # (tap, Cin, Cout)
    ws = jnp.transpose(shortcut_w[:, :, 0, 0], (1, 0))                # (Cin, Cout)
    b1 = conv1_b.reshape(1, Cin)
    b2 = conv2_b.reshape(1, Cout)
    bs = shortcut_b.reshape(1, Cout)

    # constant 2x2 average-pool matrix: pool[q, p] = 0.25 iff pixel p lies in cell q
    p = jnp.arange(HW, dtype=jnp.int32)
    q = jnp.arange(HW4, dtype=jnp.int32)
    py, px = p // W, p % W
    qy, qx = q // (W // 2), q % (W // 2)
    pool = (((py[None, :] // 2) == qy[:, None]) &
            ((px[None, :] // 2) == qx[:, None])).astype(jnp.float32) * 0.25

    kernel = _make_kernel(H, W, PAD, negative_slope)

    out_flat = pl.pallas_call(
        kernel,
        out_shape=jax.ShapeDtypeStruct((N, HW4, Cout), x.dtype),
        grid=(N,),
        in_specs=[
            pl.BlockSpec((1, HW, Cin), lambda n: (n, 0, 0)),
            pl.BlockSpec((9, Cin, Cin), lambda n: (0, 0, 0)),
            pl.BlockSpec((1, Cin), lambda n: (0, 0)),
            pl.BlockSpec((9, Cin, Cout), lambda n: (0, 0, 0)),
            pl.BlockSpec((1, Cout), lambda n: (0, 0)),
            pl.BlockSpec((Cin, Cout), lambda n: (0, 0)),
            pl.BlockSpec((1, Cout), lambda n: (0, 0)),
            pl.BlockSpec((HW4, HW), lambda n: (0, 0)),
        ],
        out_specs=pl.BlockSpec((1, HW4, Cout), lambda n: (n, 0, 0)),
        scratch_shapes=[pltpu.VMEM((HW + 2 * PAD, Cin), jnp.float32)],
        compiler_params=pltpu.CompilerParams(
            dimension_semantics=("parallel",)),
    )(x_flat, w1, b1, w2, b2, ws, bs, pool)

    return jnp.transpose(out_flat.reshape(N, H // 2, W // 2, Cout), (0, 3, 1, 2))


def _reference(x, conv1_w, conv1_b, conv2_w, conv2_b, shortcut_w, shortcut_b,
               negative_slope=0.0):
    # Pure-JAX reference mirroring the PyTorch forward exactly.
    def act(v):
        return jnp.where(v >= 0, v, negative_slope * v)

    def conv(v, w, b, pad):
        out = jax.lax.conv_general_dilated(
            v, w, window_strides=(1, 1), padding=pad,
            dimension_numbers=("NCHW", "OIHW", "NCHW"))
        return out + b[None, :, None, None]

    def avgpool2(v):
        n, c, h, w = v.shape
        return v.reshape(n, c, h // 2, 2, w // 2, 2).mean(axis=(3, 5))

    h = act(x)
    h = conv(h, conv1_w, conv1_b, [(1, 1), (1, 1)])
    h = act(h)
    h = conv(h, conv2_w, conv2_b, [(1, 1), (1, 1)])
    h = avgpool2(h)
    s = avgpool2(x)
    s = conv(s, shortcut_w, shortcut_b, [(0, 0), (0, 0)])
    return h + s


if __name__ == "__main__":
    key = jax.random.PRNGKey(0)
    ks = jax.random.split(key, 7)

    N, Cin, Cout, H, W = 2, 8, 16, 16, 16   # small demo shapes
    x = jax.random.normal(ks[0], (N, Cin, H, W), dtype=jnp.float32)
    conv1_w = 0.1 * jax.random.normal(ks[1], (Cin, Cin, 3, 3), dtype=jnp.float32)
    conv1_b = 0.1 * jax.random.normal(ks[2], (Cin,), dtype=jnp.float32)
    conv2_w = 0.1 * jax.random.normal(ks[3], (Cout, Cin, 3, 3), dtype=jnp.float32)
    conv2_b = 0.1 * jax.random.normal(ks[4], (Cout,), dtype=jnp.float32)
    shortcut_w = 0.1 * jax.random.normal(ks[5], (Cout, Cin, 1, 1), dtype=jnp.float32)
    shortcut_b = 0.1 * jax.random.normal(ks[6], (Cout,), dtype=jnp.float32)

    out = basic_block_forward(x, conv1_w, conv1_b, conv2_w, conv2_b,
                              shortcut_w, shortcut_b)
    out = jax.block_until_ready(out)

    ref = _reference(x, conv1_w, conv1_b, conv2_w, conv2_b,
                     shortcut_w, shortcut_b)
    assert out.shape == (N, Cout, H // 2, W // 2), out.shape
    max_err = float(jnp.max(jnp.abs(out - ref)))
    assert jnp.allclose(out, ref, rtol=1e-3, atol=1e-3), max_err
    print("KERNEL_OK")
</pallas_src>

<mosaic_0001>
module attributes {stable_mosaic.version = 11 : i64} {
  func.func @kernel(%arg0: i32, %arg1: memref<1x256x8xf32, #tpu.memory_space<vmem>>, %arg2: memref<9x8x8xf32, #tpu.memory_space<vmem>>, %arg3: memref<1x8xf32, #tpu.memory_space<vmem>>, %arg4: memref<9x8x16xf32, #tpu.memory_space<vmem>>, %arg5: memref<1x16xf32, #tpu.memory_space<vmem>>, %arg6: memref<8x16xf32, #tpu.memory_space<vmem>>, %arg7: memref<1x16xf32, #tpu.memory_space<vmem>>, %arg8: memref<64x256xf32, #tpu.memory_space<vmem>>, %arg9: memref<1x64x16xf32, #tpu.memory_space<vmem>>, %arg10: memref<304x8xf32, #tpu.memory_space<vmem>>) attributes {dimension_semantics = [#tpu.dimension_semantics<parallel>], iteration_bounds = array<i64: 2>, scalar_prefetch = 0 : i64, scratch_operands = 1 : i64, tpu.core_type = #tpu.core_type<tc>, window_params = [{transform_indices = @transform_0, window_bounds = array<i64: 1, 256, 8>}, {pipeline_mode = #tpu.pipeline_mode<synchronous>, transform_indices = @transform_1, window_bounds = array<i64: 9, 8, 8>}, {pipeline_mode = #tpu.pipeline_mode<synchronous>, transform_indices = @transform_2, window_bounds = array<i64: 1, 8>}, {pipeline_mode = #tpu.pipeline_mode<synchronous>, transform_indices = @transform_3, window_bounds = array<i64: 9, 8, 16>}, {pipeline_mode = #tpu.pipeline_mode<synchronous>, transform_indices = @transform_4, window_bounds = array<i64: 1, 16>}, {pipeline_mode = #tpu.pipeline_mode<synchronous>, transform_indices = @transform_5, window_bounds = array<i64: 8, 16>}, {pipeline_mode = #tpu.pipeline_mode<synchronous>, transform_indices = @transform_6, window_bounds = array<i64: 1, 16>}, {pipeline_mode = #tpu.pipeline_mode<synchronous>, transform_indices = @transform_7, window_bounds = array<i64: 64, 256>}, {transform_indices = @transform_8, window_bounds = array<i64: 1, 64, 16>}]} {
    %c0 = arith.constant 0 : index
    %c0_0 = arith.constant 0 : index
    %c0_1 = arith.constant 0 : index
    %0 = vector.load %arg1[%c0, %c0_0, %c0_1] : memref<1x256x8xf32, #tpu.memory_space<vmem>>, vector<1x256x8xf32>
    %1 = vector.shape_cast %0 : vector<1x256x8xf32> to vector<256x8xf32>
    %2 = tpu.iota {dimensions = array<i32: 0>} : vector<256x1xi32>
    %c16_i32 = arith.constant 16 : i32
    %c0_i32 = arith.constant 0 : i32
    %3 = arith.cmpi eq, %c16_i32, %c0_i32 : i32
    %c1_i32 = arith.constant 1 : i32
    %4 = arith.select %3, %c1_i32, %c16_i32 : i32
    %5 = vector.broadcast %4 : i32 to vector<256x1xi32>
    %6 = arith.remsi %2, %5 : vector<256x1xi32>
    %c0_i32_2 = arith.constant 0 : i32
    %7 = vector.broadcast %c0_i32_2 : i32 to vector<256x1xi32>
    %8 = arith.cmpi ne, %6, %7 : vector<256x1xi32>
    %c0_i32_3 = arith.constant 0 : i32
    %9 = vector.broadcast %c0_i32_3 : i32 to vector<256x1xi32>
    %10 = arith.cmpi slt, %6, %9 : vector<256x1xi32>
    %c0_i32_4 = arith.constant 0 : i32
    %11 = arith.cmpi slt, %4, %c0_i32_4 : i32
    %12 = vector.broadcast %11 : i1 to vector<256x1xi1>
    %13 = vector.broadcast %12 : vector<256x1xi1> to vector<256x1xi1>
    %14 = arith.xori %10, %13 : vector<256x1xi1>
    %15 = arith.andi %14, %8 : vector<256x1xi1>
    %16 = vector.broadcast %4 : i32 to vector<256x1xi32>
    %17 = arith.addi %6, %16 : vector<256x1xi32>
    %18 = arith.select %15, %17, %6 : vector<256x1xi1>, vector<256x1xi32>
    %c1_i32_5 = arith.constant 1 : i32
    %19 = vector.broadcast %c1_i32_5 : i32 to vector<256x1xi32>
    %20 = arith.cmpi sge, %18, %19 : vector<256x1xi32>
    %c14_i32 = arith.constant 14 : i32
    %21 = vector.broadcast %c14_i32 : i32 to vector<256x1xi32>
    %22 = arith.cmpi sle, %18, %21 : vector<256x1xi32>
    %cst = arith.constant 0.000000e+00 : f32
    %23 = vector.broadcast %cst : f32 to vector<304x8xf32>
    %c0_6 = arith.constant 0 : index
    %c0_7 = arith.constant 0 : index
    %24 = vector.load %arg10[%c0_6, %c0_7] : memref<304x8xf32, #tpu.memory_space<vmem>>, vector<304x8xf32>
    tpu.vector_store %arg10[%c0_6, %c0_7], %23 {strides = array<i32>} : memref<304x8xf32, #tpu.memory_space<vmem>>, vector<304x8xf32>,
    %cst_8 = arith.constant 0.000000e+00 : f32
    %25 = vector.broadcast %cst_8 : f32 to vector<256x8xf32>
    %26 = arith.maximumf %1, %25 : vector<256x8xf32>
    %c24 = arith.constant 24 : index
    %c0_9 = arith.constant 0 : index
    %27 = vector.load %arg10[%c24, %c0_9] : memref<304x8xf32, #tpu.memory_space<vmem>>, vector<256x8xf32>
    tpu.vector_store %arg10[%c24, %c0_9], %26 {strides = array<i32>} : memref<304x8xf32, #tpu.memory_space<vmem>>, vector<256x8xf32>,
    %cst_10 = arith.constant 0.000000e+00 : f32
    %28 = vector.broadcast %cst_10 : f32 to vector<256x8xf32>
    %c7 = arith.constant 7 : index
    %c0_11 = arith.constant 0 : index
    %29 = vector.load %arg10[%c7, %c0_11] : memref<304x8xf32, #tpu.memory_space<vmem>>, vector<256x8xf32>
    %cst_12 = arith.constant 0.000000e+00 : f32
    %30 = vector.shape_cast %20 : vector<256x1xi1> to vector<256x1xi1>
    %31 = vector.broadcast %30 : vector<256x1xi1> to vector<256x8xi1>
    %32 = vector.broadcast %cst_12 : f32 to vector<256x8xf32>
    %33 = arith.select %31, %29, %32 : vector<256x8xi1>, vector<256x8xf32>
    %c0_13 = arith.constant 0 : index
    %c0_14 = arith.constant 0 : index
    %c0_15 = arith.constant 0 : index
    %34 = vector.load %arg2[%c0_13, %c0_14, %c0_15] : memref<9x8x8xf32, #tpu.memory_space<vmem>>, vector<1x8x8xf32>
    %35 = vector.shape_cast %34 : vector<1x8x8xf32> to vector<8x8xf32>
    %cst_16 = arith.constant dense<0.000000e+00> : vector<256x8xf32>
    %36 = tpu.matmul %33, %35, %cst_16 {dimension_numbers = #tpu.dot_dimension_numbers<[1], [0], [0], [1], [0, 0, 1, 1], [], []>} : vector<256x8xf32>, vector<8x8xf32>, vector<256x8xf32> -> vector<256x8xf32>
    %37 = arith.addf %28, %36 : vector<256x8xf32>
    %c8 = arith.constant 8 : index
    %c0_17 = arith.constant 0 : index
    %38 = vector.load %arg10[%c8, %c0_17] : memref<304x8xf32, #tpu.memory_space<vmem>>, vector<256x8xf32>
    %c1 = arith.constant 1 : index
    %c0_18 = arith.constant 0 : index
    %c0_19 = arith.constant 0 : index
    %39 = vector.load %arg2[%c1, %c0_18, %c0_19] : memref<9x8x8xf32, #tpu.memory_space<vmem>>, vector<1x8x8xf32>
    %40 = vector.shape_cast %39 : vector<1x8x8xf32> to vector<8x8xf32>
    %cst_20 = arith.constant dense<0.000000e+00> : vector<256x8xf32>
    %41 = tpu.matmul %38, %40, %cst_20 {dimension_numbers = #tpu.dot_dimension_numbers<[1], [0], [0], [1], [0, 0, 1, 1], [], []>} : vector<256x8xf32>, vector<8x8xf32>, vector<256x8xf32> -> vector<256x8xf32>
    %42 = arith.addf %37, %41 : vector<256x8xf32>
    %c9 = arith.constant 9 : index
    %c0_21 = arith.constant 0 : index
    %43 = vector.load %arg10[%c9, %c0_21] : memref<304x8xf32, #tpu.memory_space<vmem>>, vector<256x8xf32>
    %cst_22 = arith.constant 0.000000e+00 : f32
    %44 = vector.shape_cast %22 : vector<256x1xi1> to vector<256x1xi1>
    %45 = vector.broadcast %44 : vector<256x1xi1> to vector<256x8xi1>
    %46 = vector.broadcast %cst_22 : f32 to vector<256x8xf32>
    %47 = arith.select %45, %43, %46 : vector<256x8xi1>, vector<256x8xf32>
    %c2 = arith.constant 2 : index
    %c0_23 = arith.constant 0 : index
    %c0_24 = arith.constant 0 : index
    %48 = vector.load %arg2[%c2, %c0_23, %c0_24] : memref<9x8x8xf32, #tpu.memory_space<vmem>>, vector<1x8x8xf32>
    %49 = vector.shape_cast %48 : vector<1x8x8xf32> to vector<8x8xf32>
    %cst_25 = arith.constant dense<0.000000e+00> : vector<256x8xf32>
    %50 = tpu.matmul %47, %49, %cst_25 {dimension_numbers = #tpu.dot_dimension_numbers<[1], [0], [0], [1], [0, 0, 1, 1], [], []>} : vector<256x8xf32>, vector<8x8xf32>, vector<256x8xf32> -> vector<256x8xf32>
    %51 = arith.addf %42, %50 : vector<256x8xf32>
    %c23 = arith.constant 23 : index
    %c0_26 = arith.constant 0 : index
    %52 = vector.load %arg10[%c23, %c0_26] : memref<304x8xf32, #tpu.memory_space<vmem>>, vector<256x8xf32>
    %cst_27 = arith.constant 0.000000e+00 : f32
    %53 = vector.shape_cast %20 : vector<256x1xi1> to vector<256x1xi1>
    %54 = vector.broadcast %53 : vector<256x1xi1> to vector<256x8xi1>
    %55 = vector.broadcast %cst_27 : f32 to vector<256x8xf32>
    %56 = arith.select %54, %52, %55 : vector<256x8xi1>, vector<256x8xf32>
    %c3 = arith.constant 3 : index
    %c0_28 = arith.constant 0 : index
    %c0_29 = arith.constant 0 : index
    %57 = vector.load %arg2[%c3, %c0_28, %c0_29] : memref<9x8x8xf32, #tpu.memory_space<vmem>>, vector<1x8x8xf32>
    %58 = vector.shape_cast %57 : vector<1x8x8xf32> to vector<8x8xf32>
    %cst_30 = arith.constant dense<0.000000e+00> : vector<256x8xf32>
    %59 = tpu.matmul %56, %58, %cst_30 {dimension_numbers = #tpu.dot_dimension_numbers<[1], [0], [0], [1], [0, 0, 1, 1], [], []>} : vector<256x8xf32>, vector<8x8xf32>, vector<256x8xf32> -> vector<256x8xf32>
    %60 = arith.addf %51, %59 : vector<256x8xf32>
    %c24_31 = arith.constant 24 : index
    %c0_32 = arith.constant 0 : index
    %61 = vector.load %arg10[%c24_31, %c0_32] : memref<304x8xf32, #tpu.memory_space<vmem>>, vector<256x8xf32>
    %c4 = arith.constant 4 : index
    %c0_33 = arith.constant 0 : index
    %c0_34 = arith.constant 0 : index
    %62 = vector.load %arg2[%c4, %c0_33, %c0_34] : memref<9x8x8xf32, #tpu.memory_space<vmem>>, vector<1x8x8xf32>
    %63 = vector.shape_cast %62 : vector<1x8x8xf32> to vector<8x8xf32>
    %cst_35 = arith.constant dense<0.000000e+00> : vector<256x8xf32>
    %64 = tpu.matmul %61, %63, %cst_35 {dimension_numbers = #tpu.dot_dimension_numbers<[1], [0], [0], [1], [0, 0, 1, 1], [], []>} : vector<256x8xf32>, vector<8x8xf32>, vector<256x8xf32> -> vector<256x8xf32>
    %65 = arith.addf %60, %64 : vector<256x8xf32>
    %c25 = arith.constant 25 : index
    %c0_36 = arith.constant 0 : index
    %66 = vector.load %arg10[%c25, %c0_36] : memref<304x8xf32, #tpu.memory_space<vmem>>, vector<256x8xf32>
    %cst_37 = arith.constant 0.000000e+00 : f32
    %67 = vector.shape_cast %22 : vector<256x1xi1> to vector<256x1xi1>
    %68 = vector.broadcast %67 : vector<256x1xi1> to vector<256x8xi1>
    %69 = vector.broadcast %cst_37 : f32 to vector<256x8xf32>
    %70 = arith.select %68, %66, %69 : vector<256x8xi1>, vector<256x8xf32>
    %c5 = arith.constant 5 : index
    %c0_38 = arith.constant 0 : index
    %c0_39 = arith.constant 0 : index
    %71 = vector.load %arg2[%c5, %c0_38, %c0_39] : memref<9x8x8xf32, #tpu.memory_space<vmem>>, vector<1x8x8xf32>
    %72 = vector.shape_cast %71 : vector<1x8x8xf32> to vector<8x8xf32>
    %cst_40 = arith.constant dense<0.000000e+00> : vector<256x8xf32>
    %73 = tpu.matmul %70, %72, %cst_40 {dimension_numbers = #tpu.dot_dimension_numbers<[1], [0], [0], [1], [0, 0, 1, 1], [], []>} : vector<256x8xf32>, vector<8x8xf32>, vector<256x8xf32> -> vector<256x8xf32>
    %74 = arith.addf %65, %73 : vector<256x8xf32>
    %c39 = arith.constant 39 : index
    %c0_41 = arith.constant 0 : index
    %75 = vector.load %arg10[%c39, %c0_41] : memref<304x8xf32, #tpu.memory_space<vmem>>, vector<256x8xf32>
    %cst_42 = arith.constant 0.000000e+00 : f32
    %76 = vector.shape_cast %20 : vector<256x1xi1> to vector<256x1xi1>
    %77 = vector.broadcast %76 : vector<256x1xi1> to vector<256x8xi1>
    %78 = vector.broadcast %cst_42 : f32 to vector<256x8xf32>
    %79 = arith.select %77, %75, %78 : vector<256x8xi1>, vector<256x8xf32>
    %c6 = arith.constant 6 : index
    %c0_43 = arith.constant 0 : index
    %c0_44 = arith.constant 0 : index
    %80 = vector.load %arg2[%c6, %c0_43, %c0_44] : memref<9x8x8xf32, #tpu.memory_space<vmem>>, vector<1x8x8xf32>
    %81 = vector.shape_cast %80 : vector<1x8x8xf32> to vector<8x8xf32>
    %cst_45 = arith.constant dense<0.000000e+00> : vector<256x8xf32>
    %82 = tpu.matmul %79, %81, %cst_45 {dimension_numbers = #tpu.dot_dimension_numbers<[1], [0], [0], [1], [0, 0, 1, 1], [], []>} : vector<256x8xf32>, vector<8x8xf32>, vector<256x8xf32> -> vector<256x8xf32>
    %83 = arith.addf %74, %82 : vector<256x8xf32>
    %c40 = arith.constant 40 : index
    %c0_46 = arith.constant 0 : index
    %84 = vector.load %arg10[%c40, %c0_46] : memref<304x8xf32, #tpu.memory_space<vmem>>, vector<256x8xf32>
    %c7_47 = arith.constant 7 : index
    %c0_48 = arith.constant 0 : index
    %c0_49 = arith.constant 0 : index
    %85 = vector.load %arg2[%c7_47, %c0_48, %c0_49] : memref<9x8x8xf32, #tpu.memory_space<vmem>>, vector<1x8x8xf32>
    %86 = vector.shape_cast %85 : vector<1x8x8xf32> to vector<8x8xf32>
    %cst_50 = arith.constant dense<0.000000e+00> : vector<256x8xf32>
    %87 = tpu.matmul %84, %86, %cst_50 {dimension_numbers = #tpu.dot_dimension_numbers<[1], [0], [0], [1], [0, 0, 1, 1], [], []>} : vector<256x8xf32>, vector<8x8xf32>, vector<256x8xf32> -> vector<256x8xf32>
    %88 = arith.addf %83, %87 : vector<256x8xf32>
    %c41 = arith.constant 41 : index
    %c0_51 = arith.constant 0 : index
    %89 = vector.load %arg10[%c41, %c0_51] : memref<304x8xf32, #tpu.memory_space<vmem>>, vector<256x8xf32>
    %cst_52 = arith.constant 0.000000e+00 : f32
    %90 = vector.shape_cast %22 : vector<256x1xi1> to vector<256x1xi1>
    %91 = vector.broadcast %90 : vector<256x1xi1> to vector<256x8xi1>
    %92 = vector.broadcast %cst_52 : f32 to vector<256x8xf32>
    %93 = arith.select %91, %89, %92 : vector<256x8xi1>, vector<256x8xf32>
    %c8_53 = arith.constant 8 : index
    %c0_54 = arith.constant 0 : index
    %c0_55 = arith.constant 0 : index
    %94 = vector.load %arg2[%c8_53, %c0_54, %c0_55] : memref<9x8x8xf32, #tpu.memory_space<vmem>>, vector<1x8x8xf32>
    %95 = vector.shape_cast %94 : vector<1x8x8xf32> to vector<8x8xf32>
    %cst_56 = arith.constant dense<0.000000e+00> : vector<256x8xf32>
    %96 = tpu.matmul %93, %95, %cst_56 {dimension_numbers = #tpu.dot_dimension_numbers<[1], [0], [0], [1], [0, 0, 1, 1], [], []>} : vector<256x8xf32>, vector<8x8xf32>, vector<256x8xf32> -> vector<256x8xf32>
    %97 = arith.addf %88, %96 : vector<256x8xf32>
    %c0_57 = arith.constant 0 : index
    %c0_58 = arith.constant 0 : index
    %98 = vector.load %arg3[%c0_57, %c0_58] : memref<1x8xf32, #tpu.memory_space<vmem>>, vector<1x8xf32>
    %99 = vector.broadcast %98 : vector<1x8xf32> to vector<256x8xf32>
    %100 = arith.addf %97, %99 : vector<256x8xf32>
    %cst_59 = arith.constant 0.000000e+00 : f32
    %101 = vector.broadcast %cst_59 : f32 to vector<256x8xf32>
    %102 = arith.maximumf %100, %101 : vector<256x8xf32>
    %c24_60 = arith.constant 24 : index
    %c0_61 = arith.constant 0 : index
    %103 = vector.load %arg10[%c24_60, %c0_61] : memref<304x8xf32, #tpu.memory_space<vmem>>, vector<256x8xf32>
    tpu.vector_store %arg10[%c24_60, %c0_61], %102 {strides = array<i32>} : memref<304x8xf32, #tpu.memory_space<vmem>>, vector<256x8xf32>,
    %cst_62 = arith.constant 0.000000e+00 : f32
    %104 = vector.broadcast %cst_62 : f32 to vector<256x16xf32>
    %c7_63 = arith.constant 7 : index
    %c0_64 = arith.constant 0 : index
    %105 = vector.load %arg10[%c7_63, %c0_64] : memref<304x8xf32, #tpu.memory_space<vmem>>, vector<256x8xf32>
    %cst_65 = arith.constant 0.000000e+00 : f32
    %106 = vector.shape_cast %20 : vector<256x1xi1> to vector<256x1xi1>
    %107 = vector.broadcast %106 : vector<256x1xi1> to vector<256x8xi1>
    %108 = vector.broadcast %cst_65 : f32 to vector<256x8xf32>
    %109 = arith.select %107, %105, %108 : vector<256x8xi1>, vector<256x8xf32>
    %c0_66 = arith.constant 0 : index
    %c0_67 = arith.constant 0 : index
    %c0_68 = arith.constant 0 : index
    %110 = vector.load %arg4[%c0_66, %c0_67, %c0_68] : memref<9x8x16xf32, #tpu.memory_space<vmem>>, vector<1x8x16xf32>
    %111 = vector.shape_cast %110 : vector<1x8x16xf32> to vector<8x16xf32>
    %cst_69 = arith.constant dense<0.000000e+00> : vector<256x16xf32>
    %112 = tpu.matmul %109, %111, %cst_69 {dimension_numbers = #tpu.dot_dimension_numbers<[1], [0], [0], [1], [0, 0, 1, 1], [], []>} : vector<256x8xf32>, vector<8x16xf32>, vector<256x16xf32> -> vector<256x16xf32>
    %113 = arith.addf %104, %112 : vector<256x16xf32>
    %c8_70 = arith.constant 8 : index
    %c0_71 = arith.constant 0 : index
    %114 = vector.load %arg10[%c8_70, %c0_71] : memref<304x8xf32, #tpu.memory_space<vmem>>, vector<256x8xf32>
    %c1_72 = arith.constant 1 : index
    %c0_73 = arith.constant 0 : index
    %c0_74 = arith.constant 0 : index
    %115 = vector.load %arg4[%c1_72, %c0_73, %c0_74] : memref<9x8x16xf32, #tpu.memory_space<vmem>>, vector<1x8x16xf32>
    %116 = vector.shape_cast %115 : vector<1x8x16xf32> to vector<8x16xf32>
    %cst_75 = arith.constant dense<0.000000e+00> : vector<256x16xf32>
    %117 = tpu.matmul %114, %116, %cst_75 {dimension_numbers = #tpu.dot_dimension_numbers<[1], [0], [0], [1], [0, 0, 1, 1], [], []>} : vector<256x8xf32>, vector<8x16xf32>, vector<256x16xf32> -> vector<256x16xf32>
    %118 = arith.addf %113, %117 : vector<256x16xf32>
    %c9_76 = arith.constant 9 : index
    %c0_77 = arith.constant 0 : index
    %119 = vector.load %arg10[%c9_76, %c0_77] : memref<304x8xf32, #tpu.memory_space<vmem>>, vector<256x8xf32>
    %cst_78 = arith.constant 0.000000e+00 : f32
    %120 = vector.shape_cast %22 : vector<256x1xi1> to vector<256x1xi1>
    %121 = vector.broadcast %120 : vector<256x1xi1> to vector<256x8xi1>
    %122 = vector.broadcast %cst_78 : f32 to vector<256x8xf32>
    %123 = arith.select %121, %119, %122 : vector<256x8xi1>, vector<256x8xf32>
    %c2_79 = arith.constant 2 : index
    %c0_80 = arith.constant 0 : index
    %c0_81 = arith.constant 0 : index
    %124 = vector.load %arg4[%c2_79, %c0_80, %c0_81] : memref<9x8x16xf32, #tpu.memory_space<vmem>>, vector<1x8x16xf32>
    %125 = vector.shape_cast %124 : vector<1x8x16xf32> to vector<8x16xf32>
    %cst_82 = arith.constant dense<0.000000e+00> : vector<256x16xf32>
    %126 = tpu.matmul %123, %125, %cst_82 {dimension_numbers = #tpu.dot_dimension_numbers<[1], [0], [0], [1], [0, 0, 1, 1], [], []>} : vector<256x8xf32>, vector<8x16xf32>, vector<256x16xf32> -> vector<256x16xf32>
    %127 = arith.addf %118, %126 : vector<256x16xf32>
    %c23_83 = arith.constant 23 : index
    %c0_84 = arith.constant 0 : index
    %128 = vector.load %arg10[%c23_83, %c0_84] : memref<304x8xf32, #tpu.memory_space<vmem>>, vector<256x8xf32>
    %cst_85 = arith.constant 0.000000e+00 : f32
    %129 = vector.shape_cast %20 : vector<256x1xi1> to vector<256x1xi1>
    %130 = vector.broadcast %129 : vector<256x1xi1> to vector<256x8xi1>
    %131 = vector.broadcast %cst_85 : f32 to vector<256x8xf32>
    %132 = arith.select %130, %128, %131 : vector<256x8xi1>, vector<256x8xf32>
    %c3_86 = arith.constant 3 : index
    %c0_87 = arith.constant 0 : index
    %c0_88 = arith.constant 0 : index
    %133 = vector.load %arg4[%c3_86, %c0_87, %c0_88] : memref<9x8x16xf32, #tpu.memory_space<vmem>>, vector<1x8x16xf32>
    %134 = vector.shape_cast %133 : vector<1x8x16xf32> to vector<8x16xf32>
    %cst_89 = arith.constant dense<0.000000e+00> : vector<256x16xf32>
    %135 = tpu.matmul %132, %134, %cst_89 {dimension_numbers = #tpu.dot_dimension_numbers<[1], [0], [0], [1], [0, 0, 1, 1], [], []>} : vector<256x8xf32>, vector<8x16xf32>, vector<256x16xf32> -> vector<256x16xf32>
    %136 = arith.addf %127, %135 : vector<256x16xf32>
    %c24_90 = arith.constant 24 : index
    %c0_91 = arith.constant 0 : index
    %137 = vector.load %arg10[%c24_90, %c0_91] : memref<304x8xf32, #tpu.memory_space<vmem>>, vector<256x8xf32>
    %c4_92 = arith.constant 4 : index
    %c0_93 = arith.constant 0 : index
    %c0_94 = arith.constant 0 : index
    %138 = vector.load %arg4[%c4_92, %c0_93, %c0_94] : memref<9x8x16xf32, #tpu.memory_space<vmem>>, vector<1x8x16xf32>
    %139 = vector.shape_cast %138 : vector<1x8x16xf32> to vector<8x16xf32>
    %cst_95 = arith.constant dense<0.000000e+00> : vector<256x16xf32>
    %140 = tpu.matmul %137, %139, %cst_95 {dimension_numbers = #tpu.dot_dimension_numbers<[1], [0], [0], [1], [0, 0, 1, 1], [], []>} : vector<256x8xf32>, vector<8x16xf32>, vector<256x16xf32> -> vector<256x16xf32>
    %141 = arith.addf %136, %140 : vector<256x16xf32>
    %c25_96 = arith.constant 25 : index
    %c0_97 = arith.constant 0 : index
    %142 = vector.load %arg10[%c25_96, %c0_97] : memref<304x8xf32, #tpu.memory_space<vmem>>, vector<256x8xf32>
    %cst_98 = arith.constant 0.000000e+00 : f32
    %143 = vector.shape_cast %22 : vector<256x1xi1> to vector<256x1xi1>
    %144 = vector.broadcast %143 : vector<256x1xi1> to vector<256x8xi1>
    %145 = vector.broadcast %cst_98 : f32 to vector<256x8xf32>
    %146 = arith.select %144, %142, %145 : vector<256x8xi1>, vector<256x8xf32>
    %c5_99 = arith.constant 5 : index
    %c0_100 = arith.constant 0 : index
    %c0_101 = arith.constant 0 : index
    %147 = vector.load %arg4[%c5_99, %c0_100, %c0_101] : memref<9x8x16xf32, #tpu.memory_space<vmem>>, vector<1x8x16xf32>
    %148 = vector.shape_cast %147 : vector<1x8x16xf32> to vector<8x16xf32>
    %cst_102 = arith.constant dense<0.000000e+00> : vector<256x16xf32>
    %149 = tpu.matmul %146, %148, %cst_102 {dimension_numbers = #tpu.dot_dimension_numbers<[1], [0], [0], [1], [0, 0, 1, 1], [], []>} : vector<256x8xf32>, vector<8x16xf32>, vector<256x16xf32> -> vector<256x16xf32>
    %150 = arith.addf %141, %149 : vector<256x16xf32>
    %c39_103 = arith.constant 39 : index
    %c0_104 = arith.constant 0 : index
    %151 = vector.load %arg10[%c39_103, %c0_104] : memref<304x8xf32, #tpu.memory_space<vmem>>, vector<256x8xf32>
    %cst_105 = arith.constant 0.000000e+00 : f32
    %152 = vector.shape_cast %20 : vector<256x1xi1> to vector<256x1xi1>
    %153 = vector.broadcast %152 : vector<256x1xi1> to vector<256x8xi1>
    %154 = vector.broadcast %cst_105 : f32 to vector<256x8xf32>
    %155 = arith.select %153, %151, %154 : vector<256x8xi1>, vector<256x8xf32>
    %c6_106 = arith.constant 6 : index
    %c0_107 = arith.constant 0 : index
    %c0_108 = arith.constant 0 : index
    %156 = vector.load %arg4[%c6_106, %c0_107, %c0_108] : memref<9x8x16xf32, #tpu.memory_space<vmem>>, vector<1x8x16xf32>
    %157 = vector.shape_cast %156 : vector<1x8x16xf32> to vector<8x16xf32>
    %cst_109 = arith.constant dense<0.000000e+00> : vector<256x16xf32>
    %158 = tpu.matmul %155, %157, %cst_109 {dimension_numbers = #tpu.dot_dimension_numbers<[1], [0], [0], [1], [0, 0, 1, 1], [], []>} : vector<256x8xf32>, vector<8x16xf32>, vector<256x16xf32> -> vector<256x16xf32>
    %159 = arith.addf %150, %158 : vector<256x16xf32>
    %c40_110 = arith.constant 40 : index
    %c0_111 = arith.constant 0 : index
    %160 = vector.load %arg10[%c40_110, %c0_111] : memref<304x8xf32, #tpu.memory_space<vmem>>, vector<256x8xf32>
    %c7_112 = arith.constant 7 : index
    %c0_113 = arith.constant 0 : index
    %c0_114 = arith.constant 0 : index
    %161 = vector.load %arg4[%c7_112, %c0_113, %c0_114] : memref<9x8x16xf32, #tpu.memory_space<vmem>>, vector<1x8x16xf32>
    %162 = vector.shape_cast %161 : vector<1x8x16xf32> to vector<8x16xf32>
    %cst_115 = arith.constant dense<0.000000e+00> : vector<256x16xf32>
    %163 = tpu.matmul %160, %162, %cst_115 {dimension_numbers = #tpu.dot_dimension_numbers<[1], [0], [0], [1], [0, 0, 1, 1], [], []>} : vector<256x8xf32>, vector<8x16xf32>, vector<256x16xf32> -> vector<256x16xf32>
    %164 = arith.addf %159, %163 : vector<256x16xf32>
    %c41_116 = arith.constant 41 : index
    %c0_117 = arith.constant 0 : index
    %165 = vector.load %arg10[%c41_116, %c0_117] : memref<304x8xf32, #tpu.memory_space<vmem>>, vector<256x8xf32>
    %cst_118 = arith.constant 0.000000e+00 : f32
    %166 = vector.shape_cast %22 : vector<256x1xi1> to vector<256x1xi1>
    %167 = vector.broadcast %166 : vector<256x1xi1> to vector<256x8xi1>
    %168 = vector.broadcast %cst_118 : f32 to vector<256x8xf32>
    %169 = arith.select %167, %165, %168 : vector<256x8xi1>, vector<256x8xf32>
    %c8_119 = arith.constant 8 : index
    %c0_120 = arith.constant 0 : index
    %c0_121 = arith.constant 0 : index
    %170 = vector.load %arg4[%c8_119, %c0_120, %c0_121] : memref<9x8x16xf32, #tpu.memory_space<vmem>>, vector<1x8x16xf32>
    %171 = vector.shape_cast %170 : vector<1x8x16xf32> to vector<8x16xf32>
    %cst_122 = arith.constant dense<0.000000e+00> : vector<256x16xf32>
    %172 = tpu.matmul %169, %171, %cst_122 {dimension_numbers = #tpu.dot_dimension_numbers<[1], [0], [0], [1], [0, 0, 1, 1], [], []>} : vector<256x8xf32>, vector<8x16xf32>, vector<256x16xf32> -> vector<256x16xf32>
    %173 = arith.addf %164, %172 : vector<256x16xf32>
    %c0_123 = arith.constant 0 : index
    %c0_124 = arith.constant 0 : index
    %174 = vector.load %arg5[%c0_123, %c0_124] : memref<1x16xf32, #tpu.memory_space<vmem>>, vector<1x16xf32>
    %175 = vector.broadcast %174 : vector<1x16xf32> to vector<256x16xf32>
    %176 = arith.addf %173, %175 : vector<256x16xf32>
    %c0_125 = arith.constant 0 : index
    %c0_126 = arith.constant 0 : index
    %177 = vector.load %arg8[%c0_125, %c0_126] : memref<64x256xf32, #tpu.memory_space<vmem>>, vector<64x256xf32>
    %cst_127 = arith.constant dense<0.000000e+00> : vector<64x16xf32>
    %178 = tpu.matmul %177, %176, %cst_127 {dimension_numbers = #tpu.dot_dimension_numbers<[1], [0], [0], [1], [0, 0, 1, 1], [], []>} : vector<64x256xf32>, vector<256x16xf32>, vector<64x16xf32> -> vector<64x16xf32>
    %cst_128 = arith.constant dense<0.000000e+00> : vector<64x8xf32>
    %179 = tpu.matmul %177, %1, %cst_128 {dimension_numbers = #tpu.dot_dimension_numbers<[1], [0], [0], [1], [0, 0, 1, 1], [], []>} : vector<64x256xf32>, vector<256x8xf32>, vector<64x8xf32> -> vector<64x8xf32>
    %c0_129 = arith.constant 0 : index
    %c0_130 = arith.constant 0 : index
    %180 = vector.load %arg6[%c0_129, %c0_130] : memref<8x16xf32, #tpu.memory_space<vmem>>, vector<8x16xf32>
    %cst_131 = arith.constant dense<0.000000e+00> : vector<64x16xf32>
    %181 = tpu.matmul %179, %180, %cst_131 {dimension_numbers = #tpu.dot_dimension_numbers<[1], [0], [0], [1], [0, 0, 1, 1], [], []>} : vector<64x8xf32>, vector<8x16xf32>, vector<64x16xf32> -> vector<64x16xf32>
    %c0_132 = arith.constant 0 : index
    %c0_133 = arith.constant 0 : index
    %182 = vector.load %arg7[%c0_132, %c0_133] : memref<1x16xf32, #tpu.memory_space<vmem>>, vector<1x16xf32>
    %183 = vector.broadcast %182 : vector<1x16xf32> to vector<64x16xf32>
    %184 = arith.addf %181, %183 : vector<64x16xf32>
    %185 = arith.addf %178, %184 : vector<64x16xf32>
    %c0_134 = arith.constant 0 : index
    %c0_135 = arith.constant 0 : index
    %c0_136 = arith.constant 0 : index
    %186 = vector.load %arg9[%c0_134, %c0_135, %c0_136] : memref<1x64x16xf32, #tpu.memory_space<vmem>>, vector<1x64x16xf32>
    %187 = vector.shape_cast %186 : vector<1x64x16xf32> to vector<64x16xf32>
    %188 = vector.shape_cast %185 : vector<64x16xf32> to vector<1x64x16xf32>
    tpu.vector_store %arg9[%c0_134, %c0_135, %c0_136], %188 {strides = array<i32>} : memref<1x64x16xf32, #tpu.memory_space<vmem>>, vector<1x64x16xf32>,
    return
  }
  func.func @transform_0(%arg0: i32) -> (i32, i32, i32) {
    %c0_i32 = arith.constant 0 : i32
    %c0_i32_0 = arith.constant 0 : i32
    %c0_i32_1 = arith.constant 0 : i32
    return %arg0, %c0_i32, %c0_i32_0 : i32, i32, i32
  }
  func.func @transform_1(%arg0: i32) -> (i32, i32, i32) {
    %c0_i32 = arith.constant 0 : i32
    %c0_i32_0 = arith.constant 0 : i32
    %c0_i32_1 = arith.constant 0 : i32
    %c0_i32_2 = arith.constant 0 : i32
    return %c0_i32, %c0_i32_0, %c0_i32_1 : i32, i32, i32
  }
  func.func @transform_2(%arg0: i32) -> (i32, i32) {
    %c0_i32 = arith.constant 0 : i32
    %c0_i32_0 = arith.constant 0 : i32
    %c0_i32_1 = arith.constant 0 : i32
    return %c0_i32, %c0_i32_0 : i32, i32
  }
  func.func @transform_3(%arg0: i32) -> (i32, i32, i32) {
    %c0_i32 = arith.constant 0 : i32
    %c0_i32_0 = arith.constant 0 : i32
    %c0_i32_1 = arith.constant 0 : i32
    %c0_i32_2 = arith.constant 0 : i32
    return %c0_i32, %c0_i32_0, %c0_i32_1 : i32, i32, i32
  }
  func.func @transform_4(%arg0: i32) -> (i32, i32) {
    %c0_i32 = arith.constant 0 : i32
    %c0_i32_0 = arith.constant 0 : i32
    %c0_i32_1 = arith.constant 0 : i32
    return %c0_i32, %c0_i32_0 : i32, i32
  }
  func.func @transform_5(%arg0: i32) -> (i32, i32) {
    %c0_i32 = arith.constant 0 : i32
    %c0_i32_0 = arith.constant 0 : i32
    %c0_i32_1 = arith.constant 0 : i32
    return %c0_i32, %c0_i32_0 : i32, i32
  }
  func.func @transform_6(%arg0: i32) -> (i32, i32) {
    %c0_i32 = arith.constant 0 : i32
    %c0_i32_0 = arith.constant 0 : i32
    %c0_i32_1 = arith.constant 0 : i32
    return %c0_i32, %c0_i32_0 : i32, i32
  }
  func.func @transform_7(%arg0: i32) -> (i32, i32) {
    %c0_i32 = arith.constant 0 : i32
    %c0_i32_0 = arith.constant 0 : i32
    %c0_i32_1 = arith.constant 0 : i32
    return %c0_i32, %c0_i32_0 : i32, i32
  }
  func.func @transform_8(%arg0: i32) -> (i32, i32, i32) {
    %c0_i32 = arith.constant 0 : i32
    %c0_i32_0 = arith.constant 0 : i32
    %c0_i32_1 = arith.constant 0 : i32
    return %arg0, %c0_i32, %c0_i32_0 : i32, i32, i32
  }
}

</mosaic_0001>

<bundles_post_ra>
// kernel: tpu_custom_call.1
= control target key start
LH: loop header
LB: loop body
LE: loop exit
PB: predicated region body
PF: predicated region fallthrough
CT: control target
= control target key end

     0   :  { %s11757_s27 = smov 0   ;;  %s14302_s0 = inlined_call_operand.vmem [shape: f32[2,256,8], index: 0, kind: input, shape index: {}]   ;;  %s14303_s1 = inlined_call_operand.vmem [shape: f32[9,8,8], index: 1, kind: input, shape index: {}]   ;;  %s14304_s2 = inlined_call_operand.vmem [shape: f32[1,8], index: 2, kind: input, shape index: {}]   ;;  %s14305_s3 = inlined_call_operand.vmem [shape: f32[9,8,16], index: 3, kind: input, shape index: {}]   ;;  %s14306_s4 = inlined_call_operand.vmem [shape: f32[1,16], index: 4, kind: input, shape index: {}]   ;;  %s14307_s5 = inlined_call_operand.vmem [shape: f32[8,16], index: 5, kind: input, shape index: {}]   ;;  %s14308_s6 = inlined_call_operand.vmem [shape: f32[1,16], index: 6, kind: input, shape index: {}]   ;;  %s14309_s7 = inlined_call_operand.vmem [shape: f32[64,256], index: 7, kind: input, shape index: {}]   ;;  %s14310_s8 = inlined_call_operand.vmem [shape: f32[2,64,16], index: 8, kind: output, shape index: {}]  }
   0x1 LB: > { %s8839_s28 = sadd.s32 4294967295, %s11709_s27   ;;  %p8843_p0 = scmp.ge.s32.totalorder %s11709_s27, 1  ;;  %s11709_s27 = sphi %s11757_s27, %s18_s27  }
   0x2   : > { %p262_p1 = scmp.lt.s32.totalorder %s11709_s27, 3 }
   0x4   : > { %p263_p2 = pnand %p8843_p0, %p262_p1 }
   0x6   : > { %266 = sbr.rel (%p263_p2) target bundleno = 1789 (0x6fd), region = 52 }
   0xd   : > { %v8848_v0 = vld [vmem:[%s14303_s1 + $0x8] sm:$0xff]  ;;  %vm819_vm0 = vcmask 64512   ;;  %v11771_v1 = vld [vmem:[%s14303_s1] sm:$0xff]  ;;  %p11775_p3 = scmp.lt.s32.totalorder %s8839_s28, 1  ;;  %v11711_v2 = vmov 0.0   ;;  %v11839_v12 = vld [vmem:[%s14303_s1 + $0x10] sm:$0xff] }
   0xe   : > { %10170 = vmatprep.subr.mxu0 %v8848_v0  ;;  %821 = vst.msk [vmem:[#allocation2 + $0x8] sm:$0xff] %vm819_vm0, %v11711_v2  ;;  %820 = vst.msk [vmem:[#allocation2] sm:$0xff] %vm819_vm0, %v11711_v2  ;;  %11148 = vmatprep.subr.mxu1 %v8848_v0 }
   0xf   : > { %822 = vst.msk [vmem:[#allocation2 + $0x10] sm:$0xff] %vm819_vm0, %v11711_v2  ;;  %823 = vst.msk [vmem:[#allocation2 + $0x18] sm:$0xff] %vm819_vm0, %v11711_v2  ;;  %10171 = vmatpush3.msra.mxu0 %v8848_v0  ;;  %s15072_s28 = smov (!%p11775_p3, %s8839_s28), 1  ;;  %11149 = vmatpush3.msra.mxu1 %v8848_v0 }
  0x10   : > { %824 = vst.msk [vmem:[#allocation2 + $0x20] sm:$0xff] %vm819_vm0, %v11711_v2  ;;  %825 = vst.msk [vmem:[#allocation2 + $0x28] sm:$0xff] %vm819_vm0, %v11711_v2  ;;  %10220 = vmatprep.subr.mxu0 %v11771_v1  ;;  %s9453_s12 = sshll.u32 %s15072_s28, 8  ;;  %s9454_s9 = sshll.u32 %s15072_s28, 6 }
  0x11   : > { %826 = vst.msk [vmem:[#allocation2 + $0x30] sm:$0xff] %vm819_vm0, %v11711_v2  ;;  %827 = vst.msk [vmem:[#allocation2 + $0x38] sm:$0xff] %vm819_vm0, %v11711_v2  ;;  %s11828_s15 = scalar_lea.vmem %s14302_s0, %s9453_s12  ;;  %s14281_s12 = scalar_lea.vmem %s14310_s8, %s9454_s9 }
  0x12   : > { %828 = vst.msk [vmem:[#allocation2 + $0x40] sm:$0xff] %vm819_vm0, %v11711_v2  ;;  %829 = vst.msk [vmem:[#allocation2 + $0x48] sm:$0xff] %vm819_vm0, %v11711_v2  ;;  %v306_v3 = vld [vmem:[%s11828_s15] sm:$0xff]  ;;  %v307_v4 = vld [vmem:[%s11828_s15 + $0x8] sm:$0xff] }
  0x13   : > { %830 = vst.msk [vmem:[#allocation2 + $0x50] sm:$0xff] %vm819_vm0, %v11711_v2  ;;  %831 = vst.msk [vmem:[#allocation2 + $0x58] sm:$0xff] %vm819_vm0, %v11711_v2  ;;  %v308_v5 = vld [vmem:[%s11828_s15 + $0x10] sm:$0xff]  ;;  %v858_v6 = vmax.f32 %v306_v3, 0.0  ;;  %v859_v7 = vmax.f32 %v307_v4, 0.0  ;;  %v309_v9 = vld [vmem:[%s11828_s15 + $0x18] sm:$0xff] }
  0x14   : > { %832 = vst.msk [vmem:[#allocation2 + $0x60] sm:$0xff] %vm819_vm0, %v11711_v2  ;;  %833 = vst.msk [vmem:[#allocation2 + $0x68] sm:$0xff] %vm819_vm0, %v11711_v2  ;;  %v860_v8 = vmax.f32 %v308_v5, 0.0  ;;  %v310_v10 = vld [vmem:[%s11828_s15 + $0x20] sm:$0xff]  ;;  %v311_v11 = vld [vmem:[%s11828_s15 + $0x28] sm:$0xff]  ;;  %v861_v15 = vmax.f32 %v309_v9, 0.0 }
  0x15   : > { %834 = vst.msk [vmem:[#allocation2 + $0x70] sm:$0xff] %vm819_vm0, %v11711_v2  ;;  %835 = vst.msk [vmem:[#allocation2 + $0x78] sm:$0xff] %vm819_vm0, %v11711_v2  ;;  %v1051_v13 = vld [vmem:[#allocation2 + $0x8] sm:$0xff]  ;;  %v862_v16 = vmax.f32 %v310_v10, 0.0  ;;  %v863_v17 = vmax.f32 %v311_v11, 0.0  ;;  %v312_v18 = vld [vmem:[%s11828_s15 + $0x30] sm:$0xff] }
  0x16   : > { %836 = vst.msk [vmem:[#allocation2 + $0x80] sm:$0xff] %vm819_vm0, %v11711_v2  ;;  %837 = vst.msk [vmem:[#allocation2 + $0x88] sm:$0xff] %vm819_vm0, %v11711_v2  ;;  %v1052_v14 = vld [vmem:[#allocation2 + $0x10] sm:$0xff]  ;;  %10172 = vmatprep.mubr.msk.f32.mxu0 %vm819_vm0, %v1051_v13  ;;  %v864_v19 = vmax.f32 %v312_v18, 0.0  ;;  %v313_v20 = vld [vmem:[%s11828_s15 + $0x38] sm:$0xff] }
  0x17   : > { %838 = vst.msk [vmem:[#allocation2 + $0x90] sm:$0xff] %vm819_vm0, %v11711_v2  ;;  %839 = vst.msk [vmem:[#allocation2 + $0x98] sm:$0xff] %vm819_vm0, %v11711_v2  ;;  %v314_v21 = vld [vmem:[%s11828_s15 + $0x40] sm:$0xff]  ;;  %v315_v22 = vld [vmem:[%s11828_s15 + $0x48] sm:$0xff]  ;;  %10173 = vmatmul.mubr.msk.f32.vlgmr.msra.gmra.mrb[0].mxu0 %vm819_vm0, %v1052_v14  ;;  %v865_v23 = vmax.f32 %v313_v20, 0.0  ;;  %v338_v14 = vlaneseq }
  0x18   : > { %840 = vst.msk [vmem:[#allocation2 + $0xa0] sm:$0xff] %vm819_vm0, %v11711_v2  ;;  %841 = vst.msk [vmem:[#allocation2 + $0xa8] sm:$0xff] %vm819_vm0, %v11711_v2  ;;  %v866_v24 = vmax.f32 %v314_v21, 0.0  ;;  %v867_v25 = vmax.f32 %v315_v22, 0.0  ;;  %v316_v26 = vld [vmem:[%s11828_s15 + $0x50] sm:$0xff]  ;;  %v317_v27 = vld [vmem:[%s11828_s15 + $0x58] sm:$0xff]  ;;  %10221 = vmatpush3.msra.mxu0 %v11771_v1 }
  0x19   : > { %842 = vst.msk [vmem:[#allocation2 + $0xb0] sm:$0xff] %vm819_vm0, %v11711_v2  ;;  %843 = vst.msk [vmem:[#allocation2 + $0xb8] sm:$0xff] %vm819_vm0, %v11711_v2  ;;  %v318_v28 = vld [vmem:[%s11828_s15 + $0x60] sm:$0xff]  ;;  %v868_v29 = vmax.f32 %v316_v26, 0.0  ;;  %v869_v30 = vmax.f32 %v317_v27, 0.0  ;;  %v319_v32 = vld [vmem:[%s11828_s15 + $0x68] sm:$0xff]  ;;  %10270 = vmatprep.subr.mxu0 %v11839_v12 }
  0x1a   : > { %844 = vst.msk [vmem:[#allocation2 + $0xc0] sm:$0xff] %vm819_vm0, %v11711_v2  ;;  %845 = vst.msk [vmem:[#allocation2 + $0xc8] sm:$0xff] %vm819_vm0, %v11711_v2  ;;  %v870_v31 = vmax.f32 %v318_v28, 0.0  ;;  %v320_v33 = vld [vmem:[%s11828_s15 + $0x70] sm:$0xff]  ;;  %v321_v34 = vld [vmem:[%s11828_s15 + $0x78] sm:$0xff]  ;;  %v871_v35 = vmax.f32 %v319_v32, 0.0 }
  0x1b   : > { %846 = vst.msk [vmem:[#allocation2 + $0xd0] sm:$0xff] %vm819_vm0, %v11711_v2  ;;  %847 = vst.msk [vmem:[#allocation2 + $0xd8] sm:$0xff] %vm819_vm0, %v11711_v2  ;;  %v872_v36 = vmax.f32 %v320_v33, 0.0  ;;  %v873_v37 = vmax.f32 %v321_v34, 0.0  ;;  %v322_v38 = vld [vmem:[%s11828_s15 + $0x80] sm:$0xff]  ;;  %v323_v39 = vld [vmem:[%s11828_s15 + $0x88] sm:$0xff] }
  0x1c   : > { %848 = vst.msk [vmem:[#allocation2 + $0xe0] sm:$0xff] %vm819_vm0, %v11711_v2  ;;  %849 = vst.msk [vmem:[#allocation2 + $0xe8] sm:$0xff] %vm819_vm0, %v11711_v2  ;;  %v874_v40 = vmax.f32 %v322_v38, 0.0  ;;  %v875_v41 = vmax.f32 %v323_v39, 0.0  ;;  %v324_v42 = vld [vmem:[%s11828_s15 + $0x90] sm:$0xff]  ;;  %v325_v43 = vld [vmem:[%s11828_s15 + $0x98] sm:$0xff] }
  0x1d   : > { %850 = vst.msk [vmem:[#allocation2 + $0xf0] sm:$0xff] %vm819_vm0, %v11711_v2  ;;  %851 = vst.msk [vmem:[#allocation2 + $0xf8] sm:$0xff] %vm819_vm0, %v11711_v2  ;;  %v326_v47 = vld [vmem:[%s11828_s15 + $0xa0] sm:$0xff]  ;;  %v876_v48 = vmax.f32 %v324_v42, 0.0  ;;  %v877_v49 = vmax.f32 %v325_v43, 0.0  ;;  %v327_v50 = vld [vmem:[%s11828_s15 + $0xa8] sm:$0xff] }
  0x1e   : > { %852 = vst.msk [vmem:[#allocation2 + $0x100] sm:$0xff] %vm819_vm0, %v11711_v2  ;;  %853 = vst.msk [vmem:[#allocation2 + $0x108] sm:$0xff] %vm819_vm0, %v11711_v2  ;;  %v328_v51 = vld [vmem:[%s11828_s15 + $0xb0] sm:$0xff]  ;;  %v878_v54 = vmax.f32 %v326_v47, 0.0  ;;  %v879_v55 = vmax.f32 %v327_v50, 0.0  ;;  %v329_v61 = vld [vmem:[%s11828_s15 + $0xb8] sm:$0xff] }
  0x1f   : > { %854 = vst.msk [vmem:[#allocation2 + $0x110] sm:$0xff] %vm819_vm0, %v11711_v2  ;;  %855 = vst.msk [vmem:[#allocation2 + $0x118] sm:$0xff] %vm819_vm0, %v11711_v2  ;;  %v880_v56 = vmax.f32 %v328_v51, 0.0  ;;  %v881_v62 = vmax.f32 %v329_v61, 0.0  ;;  %v330_v63 = vld [vmem:[%s11828_s15 + $0xc0] sm:$0xff]  ;;  %v331_v0 = vld [vmem:[%s11828_s15 + $0xc8] sm:$0xff] }
  0x20   : > { %856 = vst.msk [vmem:[#allocation2 + $0x120] sm:$0xff] %vm819_vm0, %v11711_v2  ;;  %857 = vst.msk [vmem:[#allocation2 + $0x128] sm:$0xff] %vm819_vm0, %v11711_v2  ;;  %v882_v2 = vmax.f32 %v330_v63, 0.0  ;;  %v883_v3 = vmax.f32 %v331_v0, 0.0  ;;  %v332_v4 = vld [vmem:[%s11828_s15 + $0xd0] sm:$0xff]  ;;  %v14598_v38 = vmov 0 }
  0x21   : > { %890 = vst.msk [vmem:[#allocation2 + $0x18] sm:$0xff] %vm819_vm0, %v858_v6  ;;  %891 = vst.msk [vmem:[#allocation2 + $0x20] sm:$0xff] %vm819_vm0, %v859_v7  ;;  %v884_v5 = vmax.f32 %v332_v4, 0.0  ;;  %v333_v6 = vld [vmem:[%s11828_s15 + $0xd8] sm:$0xff]  ;;  %v334_v7 = vld [vmem:[%s11828_s15 + $0xe0] sm:$0xff] }
  0x22   : > { %892 = vst.msk [vmem:[#allocation2 + $0x28] sm:$0xff] %vm819_vm0, %v860_v8  ;;  %893 = vst.msk [vmem:[#allocation2 + $0x30] sm:$0xff] %vm819_vm0, %v861_v15  ;;  %v335_v8 = vld [vmem:[%s11828_s15 + $0xe8] sm:$0xff]  ;;  %v885_v10 = vmax.f32 %v333_v6, 0.0  ;;  %v886_v11 = vmax.f32 %v334_v7, 0.0  ;;  %v12005_v42 = vld [vmem:[%s14303_s1 + $0x18] sm:$0xff] }
  0x23   : > { %894 = vst.msk [vmem:[#allocation2 + $0x38] sm:$0xff] %vm819_vm0, %v862_v16  ;;  %895 = vst.msk [vmem:[#allocation2 + $0x40] sm:$0xff] %vm819_vm0, %v863_v17  ;;  %v887_v13 = vmax.f32 %v335_v8, 0.0  ;;  %v11947_v17 = vshrl.u32 %v338_v14, 7  ;;  %v14606_v8 = vmov 0 }
  0x24   : > { %896 = vst.msk [vmem:[#allocation2 + $0x48] sm:$0xff] %vm819_vm0, %v864_v19  ;;  %897 = vst.msk [vmem:[#allocation2 + $0x50] sm:$0xff] %vm819_vm0, %v865_v23 }
  0x25   : > { %898 = vst.msk [vmem:[#allocation2 + $0x58] sm:$0xff] %vm819_vm0, %v866_v24  ;;  %899 = vst.msk [vmem:[#allocation2 + $0x60] sm:$0xff] %vm819_vm0, %v867_v25  ;;  %v375_v20 = vand.u32 15, %v11947_v17  ;;  %v341_v21 = vadd.s32 16, %v11947_v17  ;;  %v14592_v24 = vmov 0  ;;  %v922_v25 = vld [vmem:[#allocation2 + $0x7] sm:$0xff] }
  0x26   : > { %900 = vst.msk [vmem:[#allocation2 + $0x68] sm:$0xff] %vm819_vm0, %v868_v29  ;;  %901 = vst.msk [vmem:[#allocation2 + $0x70] sm:$0xff] %vm819_vm0, %v869_v30  ;;  %v343_v27 = vadd.s32 32, %v11947_v17  ;;  %v336_v29 = vld [vmem:[%s11828_s15 + $0xf0] sm:$0xff]  ;;  %v345_v34 = vadd.s32 48, %v11947_v17  ;;  %v349_v51 = vadd.s32 80, %v11947_v17 }
  0x27   : > { %902 = vst.msk [vmem:[#allocation2 + $0x78] sm:$0xff] %vm819_vm0, %v870_v31  ;;  %903 = vst.msk [vmem:[#allocation2 + $0x80] sm:$0xff] %vm819_vm0, %v871_v35  ;;  %vm11967_vm1 = vcmp.ge.s32.totalorder %v375_v20, 1  ;;  %v389_v26 = vand.u32 15, %v341_v21  ;;  %v888_v35 = vmax.f32 %v336_v29, 0.0  ;;  %v14608_v21 = vmov 0 }
  0x28   : > { %904 = vst.msk [vmem:[#allocation2 + $0x88] sm:$0xff] %vm819_vm0, %v872_v36  ;;  %905 = vst.msk [vmem:[#allocation2 + $0x90] sm:$0xff] %vm819_vm0, %v873_v37  ;;  %v11877_v44 = vld [vmem:[#allocation2 + $0x18] sm:$0xff]  ;;  %v11879_v45 = vld [vmem:[#allocation2 + $0x20] sm:$0xff]  ;;  %v14593_v24 = vsel %vm11967_vm1, 4294967295, %v14592_v24  ;;  %v1018_v30 = vsel %vm11967_vm1, %v922_v25, 0.0 }
  0x29   : > { %906 = vst.msk [vmem:[#allocation2 + $0x98] sm:$0xff] %vm819_vm0, %v874_v40  ;;  %907 = vst.msk [vmem:[#allocation2 + $0xa0] sm:$0xff] %vm819_vm0, %v875_v41  ;;  %v11881_v46 = vld [vmem:[#allocation2 + $0x28] sm:$0xff]  ;;  %10175 = vmatprep.mubr.msk.f32.mxu0 %vm819_vm0, %v11877_v44  ;;  %v11892_v52 = vld [vmem:[#allocation2 + $0x30] sm:$0xff]  ;;  %vm11981_vm2 = vcmp.ge.s32.totalorder %v389_v26, 1  ;;  %v403_v33 = vand.u32 15, %v343_v27 }
  0x2a   : > { %10176 = vmatmul.mubr.msk.f32.gmra.mrb[2].mxu0 %vm819_vm0, %v11879_v45  ;;  %v11894_v53 = vld [vmem:[#allocation2 + $0x38] sm:$0xff]  ;;  %908 = vst.msk [vmem:[#allocation2 + $0xa8] sm:$0xff] %vm819_vm0, %v876_v48  ;;  %909 = vst.msk [vmem:[#allocation2 + $0xb0] sm:$0xff] %vm819_vm0, %v877_v49  ;;  %v11903_v57 = vld [vmem:[#allocation2 + $0x40] sm:$0xff]  ;;  %v417_v40 = vand.u32 15, %v345_v34  ;;  %v347_v41 = vadd.s32 64, %v11947_v17 }
  0x2b   : > { %10178 = vmatprep.mubr.msk.f32.mxu0 %vm819_vm0, %v11881_v46  ;;  %14579 = vst [vmem:[#allocation3_spill] sm:$0xff] %v11894_v53  ;;  %910 = vst.msk [vmem:[#allocation2 + $0xb8] sm:$0xff] %vm819_vm0, %v878_v54  ;;  %v11907_v58 = vld [vmem:[#allocation2 + $0x48] sm:$0xff]  ;;  %v11913_v59 = vld [vmem:[#allocation2 + $0x50] sm:$0xff]  ;;  %vm11995_vm3 = vcmp.ge.s32.totalorder %v403_v33, 1  ;;  %v14600_v48 = vmov 0 }
  0x2c   : > { %14580 = vst [vmem:[#allocation4_spill] sm:$0xff] %v11903_v57  ;;  %911 = vst.msk [vmem:[#allocation2 + $0xc0] sm:$0xff] %vm819_vm0, %v879_v55  ;;  %v11915_v60 = vld [vmem:[#allocation2 + $0x58] sm:$0xff]  ;;  %v11922_v1 = vld [vmem:[#allocation2 + $0x60] sm:$0xff]  ;;  %v14599_v38 = vsel %vm11995_vm3, 4294967295, %v14598_v38  ;;  %vm12016_vm4 = vcmp.ge.s32.totalorder %v417_v40, 1 }
  0x2d   : > { %912 = vst.msk [vmem:[#allocation2 + $0xc8] sm:$0xff] %vm819_vm0, %v880_v56  ;;  %14581 = vst [vmem:[#allocation5_spill] sm:$0xff] %v11907_v58  ;;  %v11931_v9 = vld [vmem:[#allocation2 + $0x68] sm:$0xff]  ;;  %v11943_v15 = vld [vmem:[#allocation2 + $0x70] sm:$0xff]  ;;  %v14601_v48 = vsel %vm12016_vm4, 4294967295, %v14600_v48  ;;  %v431_v50 = vand.u32 15, %v347_v41 }
  0x2e   : > { %10179 = vmatmul.mubr.msk.f32.gmra.mrb[4].mxu0 %vm819_vm0, %v11892_v52  ;;  %14582 = vst [vmem:[#allocation6_spill] sm:$0xff] %v11913_v59  ;;  %14583 = vst [vmem:[#allocation7_spill] sm:$0xff] %v11915_v60  ;;  %v11945_v16 = vld [vmem:[#allocation2 + $0x78] sm:$0xff]  ;;  %v11953_v18 = vld [vmem:[#allocation2 + $0x80] sm:$0xff]  ;;  %v14602_v55 = vmov 0  ;;  %v445_v61 = vand.u32 15, %v349_v51 }
  0x2f   : > { %10181 = vmatprep.mubr.msk.f32.mxu0 %vm819_vm0, %v11894_v53  ;;  %14584 = vst [vmem:[#allocation8_spill] sm:$0xff] %v11922_v1  ;;  %913 = vst.msk [vmem:[#allocation2 + $0xd0] sm:$0xff] %vm819_vm0, %v881_v62  ;;  %v11955_v19 = vld [vmem:[#allocation2 + $0x88] sm:$0xff]  ;;  %v11963_v22 = vld [vmem:[#allocation2 + $0x90] sm:$0xff]  ;;  %vm12031_vm5 = vcmp.ge.s32.totalorder %v431_v50, 1  ;;  %v351_v62 = vadd.s32 96, %v11947_v17 }
  0x30   : > { %14585 = vst [vmem:[#allocation9_spill] sm:$0xff] %v11931_v9  ;;  %914 = vst.msk [vmem:[#allocation2 + $0xd8] sm:$0xff] %vm819_vm0, %v882_v2  ;;  %v11965_v23 = vld [vmem:[#allocation2 + $0x98] sm:$0xff]  ;;  %v11976_v28 = vld [vmem:[#allocation2 + $0xa0] sm:$0xff]  ;;  %v14603_v55 = vsel %vm12031_vm5, 4294967295, %v14602_v55  ;;  %vm12046_vm6 = vcmp.ge.s32.totalorder %v445_v61, 1 }
  0x31   : > { %915 = vst.msk [vmem:[#allocation2 + $0xe0] sm:$0xff] %vm819_vm0, %v883_v3  ;;  %916 = vst.msk [vmem:[#allocation2 + $0xe8] sm:$0xff] %vm819_vm0, %v884_v5  ;;  %v11985_v32 = vld [vmem:[#allocation2 + $0x17] sm:$0xff]  ;;  %v923_v36 = vld [vmem:[#allocation2 + $0xf] sm:$0xff]  ;;  %v14604_v2 = vmov 0  ;;  %v459_v4 = vand.u32 15, %v351_v62 }
  0x32   : > { %10182 = vmatmul.mubr.msk.f32.gmra.mrb[6].mxu0 %vm819_vm0, %v11903_v57  ;;  %917 = vst.msk [vmem:[#allocation2 + $0xf0] sm:$0xff] %vm819_vm0, %v885_v10  ;;  %918 = vst.msk [vmem:[#allocation2 + $0xf8] sm:$0xff] %vm819_vm0, %v886_v11  ;;  %v1020_v37 = vsel %vm11981_vm2, %v11985_v32, 0.0  ;;  %v11999_v39 = vld [vmem:[#allocation2 + $0x27] sm:$0xff]  ;;  %v12010_v43 = vld [vmem:[#allocation2 + $0x1f] sm:$0xff]  ;;  %v14605_v2 = vsel %vm12046_vm6, 4294967295, %v14604_v2 }
  0x33   : > { %10184 = vmatprep.mubr.msk.f32.mxu0 %vm819_vm0, %v11907_v58  ;;  %919 = vst.msk [vmem:[#allocation2 + $0x100] sm:$0xff] %vm819_vm0, %v887_v13  ;;  %14586 = vst [vmem:[#allocation10_spill] sm:$0xff] %v11943_v15  ;;  %v1022_v47 = vsel %vm11995_vm3, %v11999_v39, 0.0  ;;  %v12020_v49 = vld [vmem:[#allocation2 + $0x37] sm:$0xff]  ;;  %v12035_v56 = vld [vmem:[#allocation2 + $0x47] sm:$0xff]  ;;  %v353_v5 = vadd.s32 112, %v11947_v17 }
  0x34   : > { %14587 = vst [vmem:[#allocation11_spill] sm:$0xff] %v11945_v16  ;;  %14588 = vst [vmem:[#allocation12_spill] sm:$0xff] %v11953_v18  ;;  %v1024_v54 = vsel %vm12016_vm4, %v12020_v49, 0.0  ;;  %v12041_v63 = vld [vmem:[#allocation2 + $0x3f] sm:$0xff]  ;;  %v1026_v0 = vsel %vm12031_vm5, %v12035_v56, 0.0  ;;  %v12050_v3 = vld [vmem:[#allocation2 + $0x57] sm:$0xff] }
  0x35   : > { %14589 = vst [vmem:[#allocation13_spill] sm:$0xff] %v11955_v19  ;;  %14590 = vst [vmem:[#allocation14_spill] sm:$0xff] %v11963_v22  ;;  %v12056_v6 = vld [vmem:[#allocation2 + $0x4f] sm:$0xff]  ;;  %v1028_v7 = vsel %vm12046_vm6, %v12050_v3, 0.0  ;;  %vm12061_vm7 = vcmp.ge.s32.totalorder %v459_v4, 1  ;;  %v12065_v10 = vld [vmem:[#allocation2 + $0x67] sm:$0xff] }
  0x36   : > { %10185 = vmatmul.mubr.msk.f32.gmra.mrb[8].mxu0 %vm819_vm0, %v11913_v59  ;;  %14591 = vst [vmem:[#allocation15_spill] sm:$0xff] %v11965_v23  ;;  %14594 = vst [vmem:[#allocation16_spill] sm:$0xff] %v14593_v24  ;;  %v14607_v8 = vsel %vm12061_vm7, 4294967295, %v14606_v8  ;;  %v473_v11 = vand.u32 15, %v353_v5  ;;  %v355_v13 = vadd.s32 128, %v11947_v17  ;;  %v12071_v14 = vld [vmem:[#allocation2 + $0x5f] sm:$0xff] }
  0x37   : > { %10187 = vmatprep.mubr.msk.f32.mxu0 %vm819_vm0, %v11915_v60  ;;  %14595 = vst [vmem:[#allocation17_spill] sm:$0xff] %v11976_v28  ;;  %920 = vst.msk [vmem:[#allocation2 + $0x108] sm:$0xff] %vm819_vm0, %v888_v35  ;;  %v1030_v20 = vsel %vm12061_vm7, %v12065_v10, 0.0  ;;  %v12080_v25 = vld [vmem:[#allocation2 + $0x77] sm:$0xff]  ;;  %v357_v27 = vadd.s32 144, %v11947_v17  ;;  %v12086_v29 = vld [vmem:[#allocation2 + $0x6f] sm:$0xff] }
  0x38   : > { %vm12076_vm8 = vcmp.ge.s32.totalorder %v473_v11, 1  ;;  %v487_v26 = vand.u32 15, %v355_v13  ;;  %v14610_v33 = vmov 0  ;;  %v12095_v34 = vld [vmem:[#allocation2 + $0x87] sm:$0xff]  ;;  %v14612_v41 = vmov 0  ;;  %v3438_v24 = vld [vmem:[#allocation2 + $0x3f] sm:$0xff] }
  0x39   : > { %v14609_v21 = vsel %vm12076_vm8, 4294967295, %v14608_v21  ;;  %v501_v35 = vand.u32 15, %v357_v27  ;;  %v361_v51 = vadd.s32 176, %v11947_v17  ;;  %v14614_v62 = vmov 0  ;;  %v12240_v53 = vld [vmem:[%s14303_s1 + $0x20] sm:$0xff] }
  0x3a   : > { %10188 = vmatmul.mubr.msk.f32.gmra.mrb[10].mxu0 %vm819_vm0, %v11922_v1  ;;  %vm12091_vm9 = vcmp.ge.s32.totalorder %v487_v26, 1  ;;  %v363_v5 = vadd.s32 192, %v11947_v17  ;;  %v14616_v13 = vmov 0  ;;  %v365_v27 = vadd.s32 208, %v11947_v17  ;;  %v1727_v1 = vld [vmem:[#allocation2 + $0x9] sm:$0xff] }
  0x3b   : > { %10190 = vmatprep.mubr.msk.f32.mxu0 %vm819_vm0, %v11931_v9  ;;  %v14611_v33 = vsel %vm12091_vm9, 4294967295, %v14610_v33  ;;  %v1034_v40 = vsel %vm12091_vm9, %v12095_v34, 0.0  ;;  %vm12106_vm10 = vcmp.ge.s32.totalorder %v501_v35, 1  ;;  %v529_v4 = vand.u32 15, %v361_v51  ;;  %v12216_v9 = vld [vmem:[#allocation2 + $0xff] sm:$0xff] }
  0x3c   : > { %v14613_v41 = vsel %vm12106_vm10, 4294967295, %v14612_v41  ;;  %v543_v26 = vand.u32 15, %v363_v5  ;;  %v367_v51 = vadd.s32 224, %v11947_v17  ;;  %v14622_v5 = vmov 0 }
  0x3d   : > { %vm12136_vm12 = vcmp.ge.s32.totalorder %v529_v4, 1  ;;  %v344_v59 = vadd.s32 40, %v11947_v17  ;;  %v14635_v58 = vmov 0 }
  0x3e   : > { %10191 = vmatmul.mubr.msk.f32.gmra.mrb[12].mxu0 %vm819_vm0, %v11943_v15  ;;  %v14617_v13 = vsel %vm12136_vm12, 4294967295, %v14616_v13  ;;  %vm12151_vm13 = vcmp.ge.s32.totalorder %v543_v26, 1  ;;  %v571_v26 = vand.u32 15, %v367_v51 }
  0x3f   : > { %10193 = vmatprep.mubr.msk.f32.mxu0 %vm819_vm0, %v11945_v16  ;;  %14618 = vst [vmem:[#allocation18_spill] sm:$0xff] %v14617_v13  ;;  %v14628_v16 = vmov 0  ;;  %v410_v57 = vand.u32 15, %v344_v59  ;;  %v14640_v59 = vmov 0 }
  0x40   : > { %vm12181_vm15 = vcmp.ge.s32.totalorder %v571_v26, 1  ;;  %v340_v26 = vadd.s32 8, %v11947_v17 }
  0x42   : > { %10194 = vmatmul.mubr.msk.f32.gmra.mrb[14].mxu0 %vm819_vm0, %v11953_v18 }
  0x43   : > { %10196 = vmatprep.mubr.msk.f32.mxu0 %vm819_vm0, %v11955_v19 }
  0x46   : > { %10197 = vmatmul.mubr.msk.f32.gmra.mrb[16].mxu0 %vm819_vm0, %v11963_v22  ;;  %v12190_v22 = vld [vmem:[#allocation2 + $0xdf] sm:$0xff] }
  0x47   : > { %10199 = vmatprep.mubr.msk.f32.mxu0 %vm819_vm0, %v11965_v23  ;;  %v12185_v23 = vld [vmem:[#allocation2 + $0xe7] sm:$0xff] }
  0x48   : > { %v1046_v19 = vsel %vm12181_vm15, %v12185_v23, 0.0 }
  0x4a   : > { %10200 = vmatmul.mubr.msk.f32.gmra.mrb[18].mxu0 %vm819_vm0, %v11976_v28 }
  0x4b   : > { %10222 = vmatprep.mubr.msk.f32.mxu0 %vm819_vm0, %v1018_v30  ;;  %v1032_v30 = vsel %vm12076_vm8, %v12080_v25, 0.0 }
  0x4e   : > { %10223 = vmatmul.mubr.msk.f32.vlgmr.msra.gmra.mrb[0].mxu0 %vm819_vm0, %v923_v36  ;;  %v359_v36 = vadd.s32 160, %v11947_v17 }
  0x4f   : > { %10271 = vmatpush3.msra.mxu0 %v11839_v12  ;;  %10225 = vmatprep.mubr.msk.f32.mxu0 %vm819_vm0, %v1020_v37  ;;  %v12026_v12 = vld [vmem:[#allocation2 + $0x2f] sm:$0xff]  ;;  %v12101_v37 = vld [vmem:[#allocation2 + $0x7f] sm:$0xff] }
  0x50   : > { %10320 = vmatprep.subr.mxu0 %v12005_v42  ;;  %v515_v50 = vand.u32 15, %v359_v36  ;;  %v14619_v36 = vmov 0 }
  0x51   : > { %v14620_v36 = vsel %vm12151_vm13, 4294967295, %v14619_v36 }
  0x52   : > { %10226 = vmatmul.mubr.msk.f32.gmra.mrb[2].mxu0 %vm819_vm0, %v12010_v43  ;;  %vm12121_vm11 = vcmp.ge.s32.totalorder %v515_v50, 1  ;;  %14621 = vst [vmem:[#allocation19_spill] sm:$0xff] %v14620_v36  ;;  %v557_v50 = vand.u32 15, %v365_v27  ;;  %v369_v27 = vadd.s32 240, %v11947_v17 }
  0x53   : > { %10228 = vmatprep.mubr.msk.f32.mxu0 %vm819_vm0, %v1022_v47  ;;  %v12110_v47 = vld [vmem:[#allocation2 + $0x97] sm:$0xff]  ;;  %v14615_v62 = vsel %vm12121_vm11, 4294967295, %v14614_v62 }
  0x54   : > { %v1036_v61 = vsel %vm12106_vm10, %v12110_v47, 0.0  ;;  %vm12166_vm14 = vcmp.ge.s32.totalorder %v557_v50, 1  ;;  %v14625_v50 = vmov 0  ;;  %v585_v51 = vand.u32 15, %v369_v27  ;;  %v12201_v27 = vld [vmem:[#allocation2 + $0xf7] sm:$0xff] }
  0x55   : > { %v14623_v5 = vsel %vm12166_vm14, 4294967295, %v14622_v5  ;;  %v14626_v50 = vsel %vm12181_vm15, 4294967295, %v14625_v50 }
  0x56   : > { %10229 = vmatmul.mubr.msk.f32.gmra.mrb[4].mxu0 %vm819_vm0, %v12026_v12  ;;  %14624 = vst [vmem:[#allocation20_spill] sm:$0xff] %v14623_v5  ;;  %14627 = vst [vmem:[#allocation21_spill] sm:$0xff] %v14626_v50 }
  0x57   : > { %10231 = vmatprep.mubr.msk.f32.mxu0 %vm819_vm0, %v1024_v54  ;;  %v12116_v54 = vld [vmem:[#allocation2 + $0x8f] sm:$0xff] }
  0x5a   : > { %10232 = vmatmul.mubr.msk.f32.gmra.mrb[6].mxu0 %vm819_vm0, %v12041_v63 }
  0x5b   : > { %10234 = vmatprep.mubr.msk.f32.mxu0 %vm819_vm0, %v1026_v0  ;;  %v12125_v0 = vld [vmem:[#allocation2 + $0xa7] sm:$0xff] }
  0x5c   : > { %v1038_v11 = vsel %vm12121_vm11, %v12125_v0, 0.0 }
  0x5e   : > { %10235 = vmatmul.mubr.msk.f32.gmra.mrb[8].mxu0 %vm819_vm0, %v12056_v6 }
  0x5f   : > { %10237 = vmatprep.mubr.msk.f32.mxu0 %vm819_vm0, %v1028_v7  ;;  %v12131_v7 = vld [vmem:[#allocation2 + $0x9f] sm:$0xff] }
  0x62   : > { %10238 = vmatmul.mubr.msk.f32.gmra.mrb[10].mxu0 %vm819_vm0, %v12071_v14 }
  0x63   : > { %10240 = vmatprep.mubr.msk.f32.mxu0 %vm819_vm0, %v1030_v20  ;;  %v12140_v20 = vld [vmem:[#allocation2 + $0xb7] sm:$0xff] }
  0x64   : > { %v1040_v35 = vsel %vm12136_vm12, %v12140_v20, 0.0 }
  0x66   : > { %10241 = vmatmul.mubr.msk.f32.gmra.mrb[12].mxu0 %vm819_vm0, %v12086_v29 }
  0x67   : > { %10243 = vmatprep.mubr.msk.f32.mxu0 %vm819_vm0, %v1032_v30  ;;  %v12146_v30 = vld [vmem:[#allocation2 + $0xaf] sm:$0xff] }
  0x6a   : > { %10244 = vmatmul.mubr.msk.f32.gmra.mrb[14].mxu0 %vm819_vm0, %v12101_v37 }
  0x6b   : > { %10246 = vmatprep.mubr.msk.f32.mxu0 %vm819_vm0, %v1034_v40  ;;  %v12155_v40 = vld [vmem:[#allocation2 + $0xc7] sm:$0xff] }
  0x6c   : > { %v1042_v4 = vsel %vm12151_vm13, %v12155_v40, 0.0 }
  0x6e   : > { %10247 = vmatmul.mubr.msk.f32.gmra.mrb[16].mxu0 %vm819_vm0, %v12116_v54 }
  0x6f   : > { %10249 = vmatprep.mubr.msk.f32.mxu0 %vm819_vm0, %v1036_v61  ;;  %v12161_v61 = vld [vmem:[#allocation2 + $0xbf] sm:$0xff] }
  0x72   : > { %10250 = vmatmul.mubr.msk.f32.gmra.mrb[18].mxu0 %vm819_vm0, %v12131_v7 }
  0x73   : > { %10252 = vmatprep.mubr.msk.f32.mxu0 %vm819_vm0, %v1038_v11  ;;  %v12170_v11 = vld [vmem:[#allocation2 + $0xd7] sm:$0xff] }
  0x74   : > { %v1044_v28 = vsel %vm12166_vm14, %v12170_v11, 0.0  ;;  %vm12197_vm14 = vcmp.ge.s32.totalorder %v585_v51, 1  ;;  %v342_v51 = vadd.s32 24, %v11947_v17 }
  0x75   : > { %v14629_v16 = vsel %vm12197_vm14, 4294967295, %v14628_v16  ;;  %v1048_v15 = vsel %vm12197_vm14, %v12201_v27, 0.0 }
  0x76   : > { %10253 = vmatmul.mubr.msk.f32.gmra.mrb[20].mxu0 %vm819_vm0, %v12146_v30  ;;  %14630 = vst [vmem:[#allocation22_spill] sm:$0xff] %v14629_v16  ;;  %v396_v60 = vand.u32 15, %v342_v51  ;;  %v346_v51 = vadd.s32 56, %v11947_v17 }
  0x77   : > { %10255 = vmatprep.mubr.msk.f32.mxu0 %vm819_vm0, %v1040_v35  ;;  %v12176_v35 = vld [vmem:[#allocation2 + $0xcf] sm:$0xff] }
  0x78   : > { %vm12230_vm14 = vcmp.le.s32.totalorder %v396_v60, 14 }
  0x79   : > { %v14636_v58 = vsel %vm12230_vm14, 4294967295, %v14635_v58 }
  0x7a   : > { %10256 = vmatmul.mubr.msk.f32.gmra.mrb[22].mxu0 %vm819_vm0, %v12161_v61  ;;  %14637 = vst [vmem:[#allocation25_spill] sm:$0xff] %v14636_v58  ;;  %v14645_v58 = vmov 0 }
  0x7b   : > { %10258 = vmatprep.mubr.msk.f32.mxu0 %vm819_vm0, %v1042_v4  ;;  %v337_v4 = vld [vmem:[%s11828_s15 + $0xf8] sm:$0xff] }
  0x7c   : > { %v889_v18 = vmax.f32 %v337_v4, 0.0  ;;  %v382_v4 = vand.u32 15, %v340_v26 }
  0x7e   : > { %10259 = vmatmul.mubr.msk.f32.gmra.mrb[24].mxu0 %vm819_vm0, %v12176_v35  ;;  %921 = vst.msk [vmem:[#allocation2 + $0x110] sm:$0xff] %vm819_vm0, %v889_v18  ;;  %vm12218_vm15 = vcmp.le.s32.totalorder %v382_v4, 14  ;;  %v14631_v18 = vmov 0  ;;  %v12234_v4 = vld [vmem:[#allocation2 + $0x21] sm:$0xff] }
  0x7f   : > { %10261 = vmatprep.mubr.msk.f32.mxu0 %vm819_vm0, %v1044_v28  ;;  %v12207_v28 = vld [vmem:[#allocation2 + $0xef] sm:$0xff]  ;;  %v14632_v18 = vsel %vm12218_vm15, 4294967295, %v14631_v18  ;;  %14638 = vst [vmem:[#allocation26_spill] sm:$0xff] %v12234_v4  ;;  %v1826_v60 = vsel %vm12230_vm14, %v12234_v4, 0.0 }
  0x80   : > { %14633 = vst [vmem:[#allocation23_spill] sm:$0xff] %v14632_v18  ;;  %v424_v18 = vand.u32 15, %v346_v51  ;;  %v12271_v51 = vld [vmem:[#allocation2 + $0x41] sm:$0xff] }
  0x81   : > { %14648 = vst [vmem:[#allocation32_spill] sm:$0xff] %v12271_v51 }
  0x82   : > { %10262 = vmatmul.mubr.msk.f32.gmra.mrb[26].mxu0 %vm819_vm0, %v12190_v22  ;;  %vm12267_vm14 = vcmp.le.s32.totalorder %v424_v18, 14  ;;  %v14650_v18 = vmov 0 }
  0x83   : > { %10264 = vmatprep.mubr.msk.f32.mxu0 %vm819_vm0, %v1046_v19  ;;  %v1728_v19 = vld [vmem:[#allocation2 + $0x11] sm:$0xff]  ;;  %v14646_v58 = vsel %vm12267_vm14, 4294967295, %v14645_v58 }
  0x84   : > { %v1824_v26 = vsel %vm12218_vm15, %v1728_v19, 0.0  ;;  %vm12251_vm15 = vcmp.le.s32.totalorder %v410_v57, 14  ;;  %v12255_v19 = vld [vmem:[#allocation2 + $0x31] sm:$0xff]  ;;  %v12265_v57 = vld [vmem:[#allocation2 + $0x39] sm:$0xff]  ;;  %14647 = vst [vmem:[#allocation31_spill] sm:$0xff] %v14646_v58 }
  0x85   : > { %v14641_v59 = vsel %vm12251_vm15, 4294967295, %v14640_v59  ;;  %14643 = vst [vmem:[#allocation29_spill] sm:$0xff] %v12255_v19  ;;  %14644 = vst [vmem:[#allocation30_spill] sm:$0xff] %v12265_v57  ;;  %v12295_v58 = vld [vmem:[#allocation2 + $0x59] sm:$0xff] }
  0x86   : > { %10265 = vmatmul.mubr.msk.f32.gmra.mrb[28].mxu0 %vm819_vm0, %v12207_v28  ;;  %14642 = vst [vmem:[#allocation28_spill] sm:$0xff] %v14641_v59  ;;  %v12280_v59 = vld [vmem:[#allocation2 + $0x49] sm:$0xff]  ;;  %14654 = vst [vmem:[#allocation36_spill] sm:$0xff] %v12295_v58 }
  0x87   : > { %10267 = vmatprep.mubr.msk.f32.mxu0 %vm819_vm0, %v1048_v15  ;;  %v12228_v15 = vld [vmem:[#allocation2 + $0x19] sm:$0xff]  ;;  %14649 = vst [vmem:[#allocation33_spill] sm:$0xff] %v12280_v59 }
  0x88   : > { %14634 = vst [vmem:[#allocation24_spill] sm:$0xff] %v12228_v15 }
  0x8a   : > { %10268 = vmatmul.mubr.msk.f32.gmra.mrb[30].mxu0 %vm819_vm0, %v12216_v9 }
  0x8b   : > { %10272 = vmatprep.mubr.msk.f32.mxu0 %vm819_vm0, %v1727_v1  ;;  %v12249_v1 = vld [vmem:[#allocation2 + $0x29] sm:$0xff] }
  0x8c   : > { %14639 = vst [vmem:[#allocation27_spill] sm:$0xff] %v12249_v1 }
  0x8e   : > { %10273 = vmatmul.mubr.msk.f32.vlgmr.msra.gmra.mrb[0].mxu0 %vm819_vm0, %v1824_v26  ;;  %v348_v26 = vadd.s32 72, %v11947_v17 }
  0x8f   : > { %10321 = vmatpush3.msra.mxu0 %v12005_v42  ;;  %10275 = vmatprep.mubr.msk.f32.mxu0 %vm819_vm0, %v12228_v15  ;;  %v1828_v42 = vsel %vm12251_vm15, %v12255_v19, 0.0  ;;  %v350_v15 = vadd.s32 88, %v11947_v17  ;;  %v12286_v19 = vld [vmem:[#allocation2 + $0x51] sm:$0xff] }
  0x90   : > { %10370 = vmatprep.subr.mxu0 %v12240_v53  ;;  %v438_v4 = vand.u32 15, %v348_v26  ;;  %14653 = vst [vmem:[#allocation35_spill] sm:$0xff] %v12286_v19 }
  0x91   : > { %v452_v26 = vand.u32 15, %v350_v15 }
  0x92   : > { %10276 = vmatmul.mubr.msk.f32.gmra.mrb[2].mxu0 %vm819_vm0, %v1826_v60  ;;  %v1830_v60 = vsel %vm12267_vm14, %v12271_v51, 0.0  ;;  %vm12282_vm15 = vcmp.le.s32.totalorder %v438_v4, 14  ;;  %v14655_v4 = vmov 0  ;;  %v12301_v51 = vld [vmem:[#allocation2 + $0x61] sm:$0xff] }
  0x93   : > { %10278 = vmatprep.mubr.msk.f32.mxu0 %vm819_vm0, %v12249_v1  ;;  %v14651_v18 = vsel %vm12282_vm15, 4294967295, %v14650_v18  ;;  %v352_v1 = vadd.s32 104, %v11947_v17  ;;  %vm12297_vm14 = vcmp.le.s32.totalorder %v452_v26, 14  ;;  %14658 = vst [vmem:[#allocation38_spill] sm:$0xff] %v12301_v51  ;;  %v14660_v26 = vmov 0 }
  0x94   : > { %14652 = vst [vmem:[#allocation34_spill] sm:$0xff] %v14651_v18  ;;  %v14656_v4 = vsel %vm12297_vm14, 4294967295, %v14655_v4  ;;  %v12310_v18 = vld [vmem:[#allocation2 + $0x69] sm:$0xff] }
  0x95   : > { %14657 = vst [vmem:[#allocation37_spill] sm:$0xff] %v14656_v4  ;;  %v466_v15 = vand.u32 15, %v352_v1  ;;  %14659 = vst [vmem:[#allocation39_spill] sm:$0xff] %v12310_v18  ;;  %v12325_v4 = vld [vmem:[#allocation2 + $0x79] sm:$0xff] }
  0x96   : > { %10279 = vmatmul.mubr.msk.f32.gmra.mrb[4].mxu0 %vm819_vm0, %v1828_v42  ;;  %v1832_v42 = vsel %vm12282_vm15, %v12286_v19, 0.0  ;;  %v12316_v19 = vld [vmem:[#allocation2 + $0x71] sm:$0xff]  ;;  %14664 = vst [vmem:[#allocation42_spill] sm:$0xff] %v12325_v4 }
  0x97   : > { %10281 = vmatprep.mubr.msk.f32.mxu0 %vm819_vm0, %v12265_v57  ;;  %v354_v57 = vadd.s32 120, %v11947_v17  ;;  %vm12312_vm15 = vcmp.le.s32.totalorder %v466_v15, 14  ;;  %14663 = vst [vmem:[#allocation41_spill] sm:$0xff] %v12316_v19  ;;  %v14665_v15 = vmov 0 }
  0x98   : > { %v14661_v26 = vsel %vm12312_vm15, 4294967295, %v14660_v26 }
  0x99   : > { %14662 = vst [vmem:[#allocation40_spill] sm:$0xff] %v14661_v26  ;;  %v480_v1 = vand.u32 15, %v354_v57  ;;  %v12340_v26 = vld [vmem:[#allocation2 + $0x89] sm:$0xff] }
  0x9a   : > { %10282 = vmatmul.mubr.msk.f32.gmra.mrb[6].mxu0 %vm819_vm0, %v1830_v60  ;;  %v1834_v60 = vsel %vm12297_vm14, %v12301_v51, 0.0  ;;  %v12331_v51 = vld [vmem:[#allocation2 + $0x81] sm:$0xff]  ;;  %14669 = vst [vmem:[#allocation45_spill] sm:$0xff] %v12340_v26 }
  0x9b   : > { %10284 = vmatprep.mubr.msk.f32.mxu0 %vm819_vm0, %v12280_v59  ;;  %v356_v59 = vadd.s32 136, %v11947_v17  ;;  %vm12327_vm14 = vcmp.le.s32.totalorder %v480_v1, 14  ;;  %14668 = vst [vmem:[#allocation44_spill] sm:$0xff] %v12331_v51  ;;  %v14670_v1 = vmov 0 }
  0x9c   : > { %v14666_v15 = vsel %vm12327_vm14, 4294967295, %v14665_v15 }
  0x9d   : > { %14667 = vst [vmem:[#allocation43_spill] sm:$0xff] %v14666_v15  ;;  %v494_v57 = vand.u32 15, %v356_v59  ;;  %v12355_v15 = vld [vmem:[#allocation2 + $0x99] sm:$0xff] }
  0x9e   : > { %10285 = vmatmul.mubr.msk.f32.gmra.mrb[8].mxu0 %vm819_vm0, %v1832_v42  ;;  %v1836_v42 = vsel %vm12312_vm15, %v12316_v19, 0.0  ;;  %v12346_v19 = vld [vmem:[#allocation2 + $0x91] sm:$0xff]  ;;  %14674 = vst [vmem:[#allocation48_spill] sm:$0xff] %v12355_v15 }
  0x9f   : > { %10287 = vmatprep.mubr.msk.f32.mxu0 %vm819_vm0, %v12295_v58  ;;  %v358_v58 = vadd.s32 152, %v11947_v17  ;;  %vm12342_vm15 = vcmp.le.s32.totalorder %v494_v57, 14  ;;  %14673 = vst [vmem:[#allocation47_spill] sm:$0xff] %v12346_v19  ;;  %v14675_v57 = vmov 0 }
  0xa0   : > { %v14671_v1 = vsel %vm12342_vm15, 4294967295, %v14670_v1 }
  0xa1   : > { %14672 = vst [vmem:[#allocation46_spill] sm:$0xff] %v14671_v1  ;;  %v508_v59 = vand.u32 15, %v358_v58 }
  0xa2   : > { %10288 = vmatmul.mubr.msk.f32.gmra.mrb[10].mxu0 %vm819_vm0, %v1834_v60  ;;  %v1838_v60 = vsel %vm12327_vm14, %v12331_v51, 0.0  ;;  %v12361_v51 = vld [vmem:[#allocation2 + $0xa1] sm:$0xff] }
  0xa3   : > { %10290 = vmatprep.mubr.msk.f32.mxu0 %vm819_vm0, %v12310_v18  ;;  %v360_v18 = vadd.s32 168, %v11947_v17  ;;  %vm12357_vm14 = vcmp.le.s32.totalorder %v508_v59, 14  ;;  %14678 = vst [vmem:[#allocation50_spill] sm:$0xff] %v12361_v51  ;;  %v12372_v59 = vld [vmem:[#allocation2 + $0xb0] sm:$0xff] }
  0xa4   : > { %v14676_v57 = vsel %vm12357_vm14, 4294967295, %v14675_v57  ;;  %v1842_v1 = vsel %vm12357_vm14, %v12361_v51, 0.0  ;;  %14680 = vst [vmem:[#allocation52_spill] sm:$0xff] %v12372_v59  ;;  %v12395_v51 = vld [vmem:[#allocation2 + $0xc0] sm:$0xff] }
  0xa5   : > { %14677 = vst [vmem:[#allocation49_spill] sm:$0xff] %v14676_v57  ;;  %v522_v58 = vand.u32 15, %v360_v18  ;;  %v14682_v18 = vmov 0  ;;  %v12388_v57 = vld [vmem:[#allocation2 + $0xb8] sm:$0xff]  ;;  %14687 = vst [vmem:[#allocation57_spill] sm:$0xff] %v12395_v51 }
  0xa6   : > { %10291 = vmatmul.mubr.msk.f32.gmra.mrb[12].mxu0 %vm819_vm0, %v1836_v42  ;;  %v1840_v42 = vsel %vm12342_vm15, %v12346_v19, 0.0  ;;  %v12376_v19 = vld [vmem:[#allocation2 + $0xa9] sm:$0xff]  ;;  %14686 = vst [vmem:[#allocation56_spill] sm:$0xff] %v12388_v57 }
  0xa7   : > { %10293 = vmatprep.mubr.msk.f32.mxu0 %vm819_vm0, %v12325_v4  ;;  %v362_v4 = vadd.s32 184, %v11947_v17  ;;  %14681 = vst [vmem:[#allocation53_spill] sm:$0xff] %v12376_v19  ;;  %vm12378_vm15 = vcmp.le.s32.totalorder %v522_v58, 14 }
  0xa8   : > { %v14683_v18 = vsel %vm12378_vm15, 4294967295, %v14682_v18 }
  0xa9   : > { %14684 = vst [vmem:[#allocation54_spill] sm:$0xff] %v14683_v18  ;;  %v12411_v18 = vld [vmem:[#allocation2 + $0xc8] sm:$0xff] }
  0xaa   : > { %10294 = vmatmul.mubr.msk.f32.gmra.mrb[14].mxu0 %vm819_vm0, %v1838_v60  ;;  %v12365_v60 = vld [vmem:[#allocation2 + $0xa8] sm:$0xff]  ;;  %14693 = vst [vmem:[#allocation61_spill] sm:$0xff] %v12411_v18 }
  0xab   : > { %10296 = vmatprep.mubr.msk.f32.mxu0 %vm819_vm0, %v12340_v26  ;;  %14679 = vst [vmem:[#allocation51_spill] sm:$0xff] %v12365_v60  ;;  %10202 = vmatprep.mubr.msk.f32.mxu1 %vm819_vm0, %v12365_v60  ;;  %v536_v26 = vand.u32 15, %v362_v4  ;;  %v12399_v4 = vld [vmem:[#allocation2 + $0xb9] sm:$0xff] }
  0xac   : > { %10203 = vmatmul.mubr.msk.f32.vlgmr.msra.gmra.mrb[0].mxu1 %vm819_vm0, %v12372_v59  ;;  %14688 = vst [vmem:[#allocation58_spill] sm:$0xff] %v12399_v4  ;;  %v14689_v59 = vmov 0 }
  0xad   : > { %10205 = vmatprep.mubr.msk.f32.mxu1 %vm819_vm0, %v12388_v57  ;;  %vm12401_vm14 = vcmp.le.s32.totalorder %v536_v26, 14 }
  0xae   : > { %10297 = vmatmul.mubr.msk.f32.gmra.mrb[16].mxu0 %vm819_vm0, %v1840_v42  ;;  %v12382_v42 = vld [vmem:[#allocation2 + $0xb1] sm:$0xff]  ;;  %v14690_v59 = vsel %vm12401_vm14, 4294967295, %v14689_v59 }
  0xaf   : > { %10299 = vmatprep.mubr.msk.f32.mxu0 %vm819_vm0, %v12355_v15  ;;  %14685 = vst [vmem:[#allocation55_spill] sm:$0xff] %v12382_v42  ;;  %v364_v15 = vadd.s32 200, %v11947_v17  ;;  %v1844_v58 = vsel %vm12378_vm15, %v12382_v42, 0.0  ;;  %14691 = vst [vmem:[#allocation59_spill] sm:$0xff] %v14690_v59  ;;  %v12418_v42 = vld [vmem:[#allocation2 + $0xd0] sm:$0xff]  ;;  %v12434_v59 = vld [vmem:[#allocation2 + $0xd8] sm:$0xff] }
  0xb0   : > { %10206 = vmatmul.mubr.msk.f32.gmra.mrb[2].mxu1 %vm819_vm0, %v12395_v51  ;;  %14694 = vst [vmem:[#allocation62_spill] sm:$0xff] %v12418_v42  ;;  %v14696_v51 = vmov 0  ;;  %14700 = vst [vmem:[#allocation66_spill] sm:$0xff] %v12434_v59 }
  0xb1   : > { %v550_v60 = vand.u32 15, %v364_v15  ;;  %10208 = vmatprep.mubr.msk.f32.mxu1 %vm819_vm0, %v12411_v18  ;;  %v12422_v15 = vld [vmem:[#allocation2 + $0xc9] sm:$0xff] }
  0xb2   : > { %10300 = vmatmul.mubr.msk.f32.gmra.mrb[18].mxu0 %vm819_vm0, %v1842_v1  ;;  %v12405_v1 = vld [vmem:[#allocation2 + $0xc1] sm:$0xff]  ;;  %14695 = vst [vmem:[#allocation63_spill] sm:$0xff] %v12422_v15 }
  0xb3   : > { %10302 = vmatprep.mubr.msk.f32.mxu0 %vm819_vm0, %v12376_v19  ;;  %14692 = vst [vmem:[#allocation60_spill] sm:$0xff] %v12405_v1  ;;  %v366_v19 = vadd.s32 216, %v11947_v17  ;;  %v1846_v26 = vsel %vm12401_vm14, %v12405_v1, 0.0  ;;  %vm12424_vm15 = vcmp.le.s32.totalorder %v550_v60, 14  ;;  %v12441_v1 = vld [vmem:[#allocation2 + $0xe0] sm:$0xff] }
  0xb4   : > { %v14697_v51 = vsel %vm12424_vm15, 4294967295, %v14696_v51  ;;  %10209 = vmatmul.mubr.msk.f32.gmra.mrb[4].mxu1 %vm819_vm0, %v12418_v42  ;;  %14701 = vst [vmem:[#allocation67_spill] sm:$0xff] %v12441_v1  ;;  %v14703_v42 = vmov 0 }
  0xb5   : > { %14698 = vst [vmem:[#allocation64_spill] sm:$0xff] %v14697_v51  ;;  %v564_v57 = vand.u32 15, %v366_v19  ;;  %10211 = vmatprep.mubr.msk.f32.mxu1 %vm819_vm0, %v12434_v59  ;;  %v12445_v19 = vld [vmem:[#allocation2 + $0xd9] sm:$0xff]  ;;  %v12457_v51 = vld [vmem:[#allocation2 + $0xe8] sm:$0xff] }
  0xb6   : > { %10303 = vmatmul.mubr.msk.f32.gmra.mrb[20].mxu0 %vm819_vm0, %v1844_v58  ;;  %v12428_v58 = vld [vmem:[#allocation2 + $0xd1] sm:$0xff]  ;;  %14702 = vst [vmem:[#allocation68_spill] sm:$0xff] %v12445_v19  ;;  %14707 = vst [vmem:[#allocation71_spill] sm:$0xff] %v12457_v51 }
  0xb7   : > { %10305 = vmatprep.mubr.msk.f32.mxu0 %vm819_vm0, %v12399_v4  ;;  %14699 = vst [vmem:[#allocation65_spill] sm:$0xff] %v12428_v58  ;;  %v368_v4 = vadd.s32 232, %v11947_v17  ;;  %v1848_v60 = vsel %vm12424_vm15, %v12428_v58, 0.0  ;;  %vm12447_vm14 = vcmp.le.s32.totalorder %v564_v57, 14  ;;  %v12464_v58 = vld [vmem:[#allocation2 + $0xf0] sm:$0xff] }
  0xb8   : > { %v14704_v42 = vsel %vm12447_vm14, 4294967295, %v14703_v42  ;;  %10212 = vmatmul.mubr.msk.f32.gmra.mrb[6].mxu1 %vm819_vm0, %v12441_v1  ;;  %14708 = vst [vmem:[#allocation72_spill] sm:$0xff] %v12464_v58 }
  0xb9   : > { %14705 = vst [vmem:[#allocation69_spill] sm:$0xff] %v14704_v42  ;;  %v578_v18 = vand.u32 15, %v368_v4  ;;  %10214 = vmatprep.mubr.msk.f32.mxu1 %vm819_vm0, %v12457_v51  ;;  %v14709_v4 = vmov 0  ;;  %v12479_v42 = vld [vmem:[#allocation2 + $0xf8] sm:$0xff] }
  0xba   : > { %10306 = vmatmul.mubr.msk.f32.gmra.mrb[22].mxu0 %vm819_vm0, %v1846_v26  ;;  %v12451_v26 = vld [vmem:[#allocation2 + $0xe1] sm:$0xff]  ;;  %14713 = vst [vmem:[#allocation75_spill] sm:$0xff] %v12479_v42 }
  0xbb   : > { %10308 = vmatprep.mubr.msk.f32.mxu0 %vm819_vm0, %v12422_v15  ;;  %14706 = vst [vmem:[#allocation70_spill] sm:$0xff] %v12451_v26  ;;  %v370_v15 = vadd.s32 248, %v11947_v17  ;;  %v1850_v57 = vsel %vm12447_vm14, %v12451_v26, 0.0  ;;  %v12468_v17 = vld [vmem:[#allocation2 + $0xe9] sm:$0xff]  ;;  %vm12470_vm15 = vcmp.le.s32.totalorder %v578_v18, 14  ;;  %v12486_v26 = vld [vmem:[#allocation2 + $0x100] sm:$0xff] }
  0xbc   : > { %v14710_v4 = vsel %vm12470_vm15, 4294967295, %v14709_v4  ;;  %10215 = vmatmul.mubr.msk.f32.gmra.mrb[8].mxu1 %vm819_vm0, %v12464_v58  ;;  %14714 = vst [vmem:[#allocation76_spill] sm:$0xff] %v12486_v26 }
  0xbd   : > { %14711 = vst [vmem:[#allocation73_spill] sm:$0xff] %v14710_v4  ;;  %v592_v1 = vand.u32 15, %v370_v15  ;;  %10217 = vmatprep.mubr.msk.f32.mxu1 %vm819_vm0, %v12479_v42  ;;  %v12490_v15 = vld [vmem:[#allocation2 + $0xf9] sm:$0xff] }
  0xbe   : > { %10309 = vmatmul.mubr.msk.f32.gmra.mrb[24].mxu0 %vm819_vm0, %v1848_v60  ;;  %v12474_v60 = vld [vmem:[#allocation2 + $0xf1] sm:$0xff]  ;;  %14715 = vst [vmem:[#allocation77_spill] sm:$0xff] %v12490_v15 }
  0xbf   : > { %10311 = vmatprep.mubr.msk.f32.mxu0 %vm819_vm0, %v12445_v19  ;;  %14712 = vst [vmem:[#allocation74_spill] sm:$0xff] %v12474_v60  ;;  %v1852_v18 = vsel %vm12470_vm15, %v12474_v60, 0.0  ;;  %vm12492_vm14 = vcmp.le.s32.totalorder %v592_v1, 14  ;;  %v14716_v19 = vmov 0  ;;  %v2242_v1 = vsel %vm11967_vm1, %v11985_v32, 0.0 }
  0xc0   : > { %v14717_v19 = vsel %vm12492_vm14, 4294967295, %v14716_v19  ;;  %10218 = vmatmul.mubr.msk.f32.gmra.mrb[10].mxu1 %vm819_vm0, %v12486_v26  ;;  %v2244_v60 = vsel %vm11981_vm2, %v11999_v39, 0.0  ;;  %v2246_v32 = vsel %vm11995_vm3, %v12020_v49, 0.0  ;;  %v2248_v39 = vsel %vm12016_vm4, %v12035_v56, 0.0 }
  0xc1   : > { %14718 = vst [vmem:[#allocation78_spill] sm:$0xff] %v14717_v19  ;;  %v2254_v49 = vsel %vm12061_vm7, %v12080_v25, 0.0 }
  0xc2   : > { %10312 = vmatmul.mubr.msk.f32.gmra.mrb[26].mxu0 %vm819_vm0, %v1850_v57  ;;  %v12496_v57 = vld [vmem:[#allocation2 + $0x101] sm:$0xff] }
  0xc3   : > { %10314 = vmatprep.mubr.msk.f32.mxu0 %vm819_vm0, %v12468_v17  ;;  %14719 = vst [vmem:[#allocation79_spill] sm:$0xff] %v12496_v57  ;;  %v1854_v4 = vsel %vm12492_vm14, %v12496_v57, 0.0 }
  0xc6   : > { %10315 = vmatmul.mubr.msk.f32.gmra.mrb[28].mxu0 %vm819_vm0, %v1852_v18  ;;  %v9012_v18 = vld [vmem:[%s14303_s1 + $0x28] sm:$0xff] }
  0xc7   : > { %10317 = vmatprep.mubr.msk.f32.mxu0 %vm819_vm0, %v12490_v15 }
  0xca   : > { %10318 = vmatmul.mubr.msk.f32.gmra.mrb[30].mxu0 %vm819_vm0, %v1854_v4  ;;  %v2260_v4 = vsel %vm12106_vm10, %v12125_v0, 0.0 }
  0xcb   : > { %10322 = vmatprep.mubr.msk.f32.mxu0 %vm819_vm0, %v2242_v1  ;;  %v2264_v1 = vsel %vm12136_vm12, %v12155_v40, 0.0  ;;  %vm14721_vm12 = vnez %v14626_v50 }
  0xce   : > { %10323 = vmatmul.mubr.msk.f32.vlgmr.msra.gmra.mrb[0].mxu0 %vm819_vm0, %v12010_v43  ;;  %v2252_v43 = vsel %vm12046_vm6, %v12065_v10, 0.0 }
  0xcf   : > { %10371 = vmatpush3.msra.mxu0 %v12240_v53  ;;  %10325 = vmatprep.mubr.msk.f32.mxu0 %vm819_vm0, %v2244_v60  ;;  %v2250_v53 = vsel %vm12031_vm5, %v12050_v3, 0.0  ;;  %v2262_v60 = vsel %vm12121_vm11, %v12140_v20, 0.0  ;;  %vm14720_vm11 = vnez %v14623_v5 }
  0xd0   : > { %10420 = vmatprep.subr.mxu0 %v9012_v18 }
  0xd2   : > { %10326 = vmatmul.mubr.msk.f32.gmra.mrb[2].mxu0 %vm819_vm0, %v12026_v12  ;;  %v2256_v12 = vsel %vm12076_vm8, %v12095_v34, 0.0 }
  0xd3   : > { %10328 = vmatprep.mubr.msk.f32.mxu0 %vm819_vm0, %v2246_v32  ;;  %v2266_v32 = vsel %vm12151_vm13, %v12170_v11, 0.0  ;;  %vm14722_vm13 = vnez %v14629_v16 }
  0xd6   : > { %10329 = vmatmul.mubr.msk.f32.gmra.mrb[4].mxu0 %vm819_vm0, %v12041_v63  ;;  %v2258_v63 = vsel %vm12091_vm9, %v12110_v47, 0.0 }
  0xd7   : > { %10331 = vmatprep.mubr.msk.f32.mxu0 %vm819_vm0, %v2248_v39  ;;  %v2268_v39 = vsel %vm14720_vm11, %v12185_v23, 0.0 }
  0xda   : > { %10332 = vmatmul.mubr.msk.f32.gmra.mrb[6].mxu0 %vm819_vm0, %v12056_v6 }
  0xdb   : > { %10334 = vmatprep.mubr.msk.f32.mxu0 %vm819_vm0, %v2250_v53  ;;  %v2270_v53 = vsel %vm14721_vm12, %v12201_v27, 0.0 }
  0xde   : > { %10335 = vmatmul.mubr.msk.f32.gmra.mrb[8].mxu0 %vm819_vm0, %v12071_v14 }
  0xdf   : > { %10337 = vmatprep.mubr.msk.f32.mxu0 %vm819_vm0, %v2252_v43  ;;  %v12596_v43 = vld [vmem:[#allocation2 + $0x107] sm:$0xff] }
  0xe2   : > { %10338 = vmatmul.mubr.msk.f32.gmra.mrb[10].mxu0 %vm819_vm0, %v12086_v29 }
  0xe3   : > { %10340 = vmatprep.mubr.msk.f32.mxu0 %vm819_vm0, %v2254_v49  ;;  %v2272_v49 = vsel %vm14722_vm13, %v12596_v43, 0.0 }
  0xe6   : > { %10341 = vmatmul.mubr.msk.f32.gmra.mrb[12].mxu0 %vm819_vm0, %v12101_v37 }
  0xe7   : > { %10343 = vmatprep.mubr.msk.f32.mxu0 %vm819_vm0, %v2256_v12  ;;  %v12607_v12 = vld [vmem:[#allocation2 + $0x10f] sm:$0xff] }
  0xea   : > { %10344 = vmatmul.mubr.msk.f32.gmra.mrb[14].mxu0 %vm819_vm0, %v12116_v54 }
  0xeb   : > { %10346 = vmatprep.mubr.msk.f32.mxu0 %vm819_vm0, %v2258_v63  ;;  %v9045_v63 = vld [vmem:[%s14303_s1 + $0x30] sm:$0xff] }
  0xee   : > { %10347 = vmatmul.mubr.msk.f32.gmra.mrb[16].mxu0 %vm819_vm0, %v12131_v7 }
  0xef   : > { %10349 = vmatprep.mubr.msk.f32.mxu0 %vm819_vm0, %v2260_v4  ;;  %v14723_v4 = vld [vmem:[#allocation3_spill] sm:$0xff] }
  0xf2   : > { %10350 = vmatmul.mubr.msk.f32.gmra.mrb[18].mxu0 %vm819_vm0, %v12146_v30 }
  0xf3   : > { %10352 = vmatprep.mubr.msk.f32.mxu0 %vm819_vm0, %v2262_v60  ;;  %v14724_v60 = vld [vmem:[#allocation4_spill] sm:$0xff] }
  0xf6   : > { %10353 = vmatmul.mubr.msk.f32.gmra.mrb[20].mxu0 %vm819_vm0, %v12161_v61 }
  0xf7   : > { %10355 = vmatprep.mubr.msk.f32.mxu0 %vm819_vm0, %v2264_v1  ;;  %v14726_v1 = vld [vmem:[#allocation6_spill] sm:$0xff] }
  0xfa   : > { %10356 = vmatmul.mubr.msk.f32.gmra.mrb[22].mxu0 %vm819_vm0, %v12176_v35 }
  0xfb   : > { %10358 = vmatprep.mubr.msk.f32.mxu0 %vm819_vm0, %v2266_v32  ;;  %v14731_v32 = vld [vmem:[#allocation11_spill] sm:$0xff] }
  0xfe   : > { %10359 = vmatmul.mubr.msk.f32.gmra.mrb[24].mxu0 %vm819_vm0, %v12190_v22 }
  0xff   : > { %10361 = vmatprep.mubr.msk.f32.mxu0 %vm819_vm0, %v2268_v39  ;;  %v14732_v39 = vld [vmem:[#allocation12_spill] sm:$0xff] }
 0x102   : > { %10362 = vmatmul.mubr.msk.f32.gmra.mrb[26].mxu0 %vm819_vm0, %v12207_v28 }
 0x103   : > { %10364 = vmatprep.mubr.msk.f32.mxu0 %vm819_vm0, %v2270_v53  ;;  %v14733_v53 = vld [vmem:[#allocation13_spill] sm:$0xff] }
 0x106   : > { %10365 = vmatmul.mubr.msk.f32.gmra.mrb[28].mxu0 %vm819_vm0, %v12216_v9 }
 0x107   : > { %10367 = vmatprep.mubr.msk.f32.mxu0 %vm819_vm0, %v2272_v49  ;;  %v14734_v49 = vld [vmem:[#allocation14_spill] sm:$0xff] }
 0x10a   : > { %10368 = vmatmul.mubr.msk.f32.gmra.mrb[30].mxu0 %vm819_vm0, %v12607_v12 }
 0x10b   : > { %10372 = vmatprep.mubr.msk.f32.mxu0 %vm819_vm0, %v11877_v44  ;;  %v14725_v44 = vld [vmem:[#allocation5_spill] sm:$0xff] }
 0x10e   : > { %10373 = vmatmul.mubr.msk.f32.vlgmr.msra.gmra.mrb[0].mxu0 %vm819_vm0, %v11879_v45  ;;  %v14727_v45 = vld [vmem:[#allocation7_spill] sm:$0xff] }
 0x10f   : > { %10421 = vmatpush3.msra.mxu0 %v9012_v18  ;;  %10375 = vmatprep.mubr.msk.f32.mxu0 %vm819_vm0, %v11881_v46  ;;  %v14728_v46 = vld [vmem:[#allocation8_spill] sm:$0xff]  ;;  %v14729_v18 = vld [vmem:[#allocation9_spill] sm:$0xff] }
 0x110   : > { %10470 = vmatprep.subr.mxu0 %v9045_v63 }
 0x112   : > { %10376 = vmatmul.mubr.msk.f32.gmra.mrb[2].mxu0 %vm819_vm0, %v11892_v52  ;;  %v14730_v52 = vld [vmem:[#allocation10_spill] sm:$0xff] }
 0x113   : > { %10378 = vmatprep.mubr.msk.f32.mxu0 %vm819_vm0, %v14723_v4  ;;  %v14735_v4 = vld [vmem:[#allocation15_spill] sm:$0xff] }
 0x116   : > { %10379 = vmatmul.mubr.msk.f32.gmra.mrb[4].mxu0 %vm819_vm0, %v14724_v60  ;;  %v14736_v60 = vld [vmem:[#allocation17_spill] sm:$0xff] }
 0x117   : > { %10381 = vmatprep.mubr.msk.f32.mxu0 %vm819_vm0, %v14725_v44  ;;  %v14737_v44 = vld [vmem:[#allocation51_spill] sm:$0xff] }
 0x11a   : > { %10382 = vmatmul.mubr.msk.f32.gmra.mrb[6].mxu0 %vm819_vm0, %v14726_v1  ;;  %v14738_v1 = vld [vmem:[#allocation52_spill] sm:$0xff] }
 0x11b   : > { %10384 = vmatprep.mubr.msk.f32.mxu0 %vm819_vm0, %v14727_v45  ;;  %v14739_v45 = vld [vmem:[#allocation56_spill] sm:$0xff] }
 0x11e   : > { %10385 = vmatmul.mubr.msk.f32.gmra.mrb[8].mxu0 %vm819_vm0, %v14728_v46  ;;  %v14740_v46 = vld [vmem:[#allocation57_spill] sm:$0xff] }
 0x11f   : > { %10387 = vmatprep.mubr.msk.f32.mxu0 %vm819_vm0, %v14729_v18  ;;  %v14741_v18 = vld [vmem:[#allocation61_spill] sm:$0xff] }
 0x122   : > { %10388 = vmatmul.mubr.msk.f32.gmra.mrb[10].mxu0 %vm819_vm0, %v14730_v52  ;;  %v14742_v52 = vld [vmem:[#allocation62_spill] sm:$0xff] }
 0x123   : > { %10390 = vmatprep.mubr.msk.f32.mxu0 %vm819_vm0, %v14731_v32  ;;  %v14743_v32 = vld [vmem:[#allocation67_spill] sm:$0xff] }
 0x126   : > { %10391 = vmatmul.mubr.msk.f32.gmra.mrb[12].mxu0 %vm819_vm0, %v14732_v39  ;;  %v12672_v39 = vld [vmem:[#allocation2 + $0x108] sm:$0xff] }
 0x127   : > { %10393 = vmatprep.mubr.msk.f32.mxu0 %vm819_vm0, %v14733_v53  ;;  %14744 = vst [vmem:[#allocation3_spill] sm:$0xff] %v12672_v39  ;;  %v12678_v53 = vld [vmem:[#allocation2 + $0x110] sm:$0xff] }
 0x128   : > { %14745 = vst [vmem:[#allocation4_spill] sm:$0xff] %v12678_v53 }
 0x12a   : > { %10394 = vmatmul.mubr.msk.f32.gmra.mrb[14].mxu0 %vm819_vm0, %v14734_v49  ;;  %v14746_v49 = vld [vmem:[#allocation24_spill] sm:$0xff] }
 0x12b   : > { %10396 = vmatprep.mubr.msk.f32.mxu0 %vm819_vm0, %v14735_v4  ;;  %v14747_v4 = vld [vmem:[#allocation26_spill] sm:$0xff] }
 0x12e   : > { %10397 = vmatmul.mubr.msk.f32.gmra.mrb[16].mxu0 %vm819_vm0, %v14736_v60  ;;  %v14748_v60 = vld [vmem:[#allocation23_spill] sm:$0xff] }
 0x12f   : > { %10399 = vmatprep.mubr.msk.f32.mxu0 %vm819_vm0, %v14737_v44  ;;  %vm14749_vm13 = vnez %v14748_v60  ;;  %v14756_v60 = vld [vmem:[#allocation28_spill] sm:$0xff] }
 0x132   : > { %10400 = vmatmul.mubr.msk.f32.gmra.mrb[18].mxu0 %vm819_vm0, %v14738_v1 }
 0x133   : > { %10402 = vmatprep.mubr.msk.f32.mxu0 %vm819_vm0, %v14739_v45 }
 0x136   : > { %10403 = vmatmul.mubr.msk.f32.gmra.mrb[20].mxu0 %vm819_vm0, %v14740_v46 }
 0x137   : > { %10405 = vmatprep.mubr.msk.f32.mxu0 %vm819_vm0, %v14741_v18 }
 0x13a   : > { %10406 = vmatmul.mubr.msk.f32.gmra.mrb[22].mxu0 %vm819_vm0, %v14742_v52 }
 0x13b   : > { %10408 = vmatprep.mubr.msk.f32.mxu0 %vm819_vm0, %v12434_v59 }
 0x13e   : > { %10409 = vmatmul.mubr.msk.f32.gmra.mrb[24].mxu0 %vm819_vm0, %v14743_v32 }
 0x13f   : > { %10411 = vmatprep.mubr.msk.f32.mxu0 %vm819_vm0, %v12457_v51  ;;  %v14752_v51 = vld [vmem:[#allocation25_spill] sm:$0xff] }
 0x140   : > { %vm14753_vm12 = vnez %v14752_v51 }
 0x142   : > { %10412 = vmatmul.mubr.msk.f32.gmra.mrb[26].mxu0 %vm819_vm0, %v12464_v58  ;;  %v9078_v58 = vld [vmem:[%s14303_s1 + $0x38] sm:$0xff] }
 0x143   : > { %10414 = vmatprep.mubr.msk.f32.mxu0 %vm819_vm0, %v12479_v42  ;;  %v3049_v42 = vsel %vm14749_vm13, %v14747_v4, 0.0  ;;  %v14755_v4 = vld [vmem:[#allocation32_spill] sm:$0xff]  ;;  %vm14757_vm13 = vnez %v14756_v60  ;;  %v14766_v60 = vld [vmem:[#allocation39_spill] sm:$0xff] }
 0x144   : > { %v3053_v32 = vsel %vm14757_vm13, %v14755_v4, 0.0 }
 0x146   : > { %10415 = vmatmul.mubr.msk.f32.gmra.mrb[28].mxu0 %vm819_vm0, %v12486_v26  ;;  %v14751_v26 = vld [vmem:[#allocation29_spill] sm:$0xff] }
 0x147   : > { %10417 = vmatprep.mubr.msk.f32.mxu0 %vm819_vm0, %v12672_v39  ;;  %v14750_v39 = vld [vmem:[#allocation27_spill] sm:$0xff] }
 0x14a   : > { %10418 = vmatmul.mubr.msk.f32.gmra.mrb[30].mxu0 %vm819_vm0, %v12678_v53  ;;  %v3051_v53 = vsel %vm14753_vm12, %v14751_v26, 0.0  ;;  %v14762_v26 = vld [vmem:[#allocation36_spill] sm:$0xff] }
 0x14b   : > { %10422 = vmatprep.mubr.msk.f32.mxu0 %vm819_vm0, %v14746_v49  ;;  %v14754_v49 = vld [vmem:[#allocation30_spill] sm:$0xff] }
 0x14e   : > { %10423 = vmatmul.mubr.msk.f32.vlgmr.msra.gmra.mrb[0].mxu0 %vm819_vm0, %v3049_v42  ;;  %v14758_v42 = vld [vmem:[#allocation33_spill] sm:$0xff] }
 0x14f   : > { %10471 = vmatpush3.msra.mxu0 %v9045_v63  ;;  %10425 = vmatprep.mubr.msk.f32.mxu0 %vm819_vm0, %v14750_v39  ;;  %v14759_v63 = vld [vmem:[#allocation35_spill] sm:$0xff] }
 0x150   : > { %10520 = vmatprep.subr.mxu0 %v9078_v58  ;;  %v14760_v39 = vld [vmem:[#allocation31_spill] sm:$0xff] }
 0x151   : > { %vm14761_vm11 = vnez %v14760_v39  ;;  %v14770_v39 = vld [vmem:[#allocation42_spill] sm:$0xff] }
 0x152   : > { %10426 = vmatmul.mubr.msk.f32.gmra.mrb[2].mxu0 %vm819_vm0, %v3051_v53  ;;  %v3055_v51 = vsel %vm14761_vm11, %v14759_v63, 0.0  ;;  %v14763_v53 = vld [vmem:[#allocation38_spill] sm:$0xff] }
 0x153   : > { %10428 = vmatprep.mubr.msk.f32.mxu0 %vm819_vm0, %v14754_v49  ;;  %v14764_v49 = vld [vmem:[#allocation34_spill] sm:$0xff] }
 0x154   : > { %vm14765_vm12 = vnez %v14764_v49  ;;  %v14774_v49 = vld [vmem:[#allocation45_spill] sm:$0xff] }
 0x155   : > { %v3057_v59 = vsel %vm14765_vm12, %v14763_v53, 0.0 }
 0x156   : > { %10429 = vmatmul.mubr.msk.f32.gmra.mrb[4].mxu0 %vm819_vm0, %v3053_v32  ;;  %v14767_v32 = vld [vmem:[#allocation41_spill] sm:$0xff] }
 0x157   : > { %10431 = vmatprep.mubr.msk.f32.mxu0 %vm819_vm0, %v14758_v42  ;;  %v14768_v42 = vld [vmem:[#allocation37_spill] sm:$0xff] }
 0x158   : > { %vm14769_vm13 = vnez %v14768_v42  ;;  %v14778_v42 = vld [vmem:[#allocation48_spill] sm:$0xff] }
 0x159   : > { %v3059_v4 = vsel %vm14769_vm13, %v14767_v32, 0.0 }
 0x15a   : > { %10432 = vmatmul.mubr.msk.f32.gmra.mrb[6].mxu0 %vm819_vm0, %v3055_v51  ;;  %v14771_v51 = vld [vmem:[#allocation44_spill] sm:$0xff] }
 0x15b   : > { %10434 = vmatprep.mubr.msk.f32.mxu0 %vm819_vm0, %v14762_v26  ;;  %v14772_v26 = vld [vmem:[#allocation40_spill] sm:$0xff] }
 0x15c   : > { %vm14773_vm11 = vnez %v14772_v26  ;;  %v14782_v26 = vld [vmem:[#allocation53_spill] sm:$0xff] }
 0x15d   : > { %v3061_v63 = vsel %vm14773_vm11, %v14771_v51, 0.0 }
 0x15e   : > { %10435 = vmatmul.mubr.msk.f32.gmra.mrb[8].mxu0 %vm819_vm0, %v3057_v59  ;;  %v14775_v59 = vld [vmem:[#allocation47_spill] sm:$0xff] }
 0x15f   : > { %10437 = vmatprep.mubr.msk.f32.mxu0 %vm819_vm0, %v14766_v60  ;;  %v14776_v60 = vld [vmem:[#allocation43_spill] sm:$0xff] }
 0x160   : > { %vm14777_vm12 = vnez %v14776_v60  ;;  %v14786_v60 = vld [vmem:[#allocation58_spill] sm:$0xff] }
 0x161   : > { %v3063_v53 = vsel %vm14777_vm12, %v14775_v59, 0.0 }
 0x162   : > { %10438 = vmatmul.mubr.msk.f32.gmra.mrb[10].mxu0 %vm819_vm0, %v3059_v4  ;;  %v14779_v4 = vld [vmem:[#allocation50_spill] sm:$0xff] }
 0x163   : > { %10440 = vmatprep.mubr.msk.f32.mxu0 %vm819_vm0, %v14770_v39  ;;  %v14780_v39 = vld [vmem:[#allocation46_spill] sm:$0xff] }
 0x164   : > { %vm14781_vm13 = vnez %v14780_v39  ;;  %v14790_v39 = vld [vmem:[#allocation63_spill] sm:$0xff] }
 0x165   : > { %v3065_v32 = vsel %vm14781_vm13, %v14779_v4, 0.0 }
 0x166   : > { %10441 = vmatmul.mubr.msk.f32.gmra.mrb[12].mxu0 %vm819_vm0, %v3061_v63  ;;  %v14783_v63 = vld [vmem:[#allocation55_spill] sm:$0xff] }
 0x167   : > { %10443 = vmatprep.mubr.msk.f32.mxu0 %vm819_vm0, %v14774_v49  ;;  %v14784_v49 = vld [vmem:[#allocation49_spill] sm:$0xff] }
 0x168   : > { %vm14785_vm11 = vnez %v14784_v49  ;;  %v14794_v49 = vld [vmem:[#allocation68_spill] sm:$0xff] }
 0x169   : > { %v3067_v51 = vsel %vm14785_vm11, %v14783_v63, 0.0 }
 0x16a   : > { %10444 = vmatmul.mubr.msk.f32.gmra.mrb[14].mxu0 %vm819_vm0, %v3063_v53  ;;  %v14787_v53 = vld [vmem:[#allocation60_spill] sm:$0xff] }
 0x16b   : > { %10446 = vmatprep.mubr.msk.f32.mxu0 %vm819_vm0, %v14778_v42  ;;  %v14788_v42 = vld [vmem:[#allocation54_spill] sm:$0xff] }
 0x16c   : > { %vm14789_vm12 = vnez %v14788_v42  ;;  %v14799_v42 = vld [vmem:[#allocation69_spill] sm:$0xff] }
 0x16d   : > { %v3069_v59 = vsel %vm14789_vm12, %v14787_v53, 0.0  ;;  %vm14800_vm12 = vnez %v14799_v42 }
 0x16e   : > { %10447 = vmatmul.mubr.msk.f32.gmra.mrb[16].mxu0 %vm819_vm0, %v3065_v32  ;;  %v14791_v32 = vld [vmem:[#allocation65_spill] sm:$0xff] }
 0x16f   : > { %10449 = vmatprep.mubr.msk.f32.mxu0 %vm819_vm0, %v14782_v26  ;;  %v14792_v26 = vld [vmem:[#allocation59_spill] sm:$0xff] }
 0x170   : > { %vm14793_vm13 = vnez %v14792_v26  ;;  %v3077_v26 = vsel %vm12470_vm15, %v12496_v57, 0.0 }
 0x171   : > { %v3071_v4 = vsel %vm14793_vm13, %v14791_v32, 0.0 }
 0x172   : > { %10450 = vmatmul.mubr.msk.f32.gmra.mrb[18].mxu0 %vm819_vm0, %v3067_v51  ;;  %v14795_v51 = vld [vmem:[#allocation70_spill] sm:$0xff] }
 0x173   : > { %10452 = vmatprep.mubr.msk.f32.mxu0 %vm819_vm0, %v14786_v60  ;;  %v14796_v60 = vld [vmem:[#allocation64_spill] sm:$0xff] }
 0x174   : > { %vm14797_vm11 = vnez %v14796_v60  ;;  %v12774_v60 = vld [vmem:[#allocation2 + $0x109] sm:$0xff] }
 0x175   : > { %v3073_v63 = vsel %vm14797_vm11, %v14795_v51, 0.0  ;;  %v12776_v51 = vld [vmem:[#allocation2 + $0x111] sm:$0xff] }
 0x176   : > { %10453 = vmatmul.mubr.msk.f32.gmra.mrb[20].mxu0 %vm819_vm0, %v3069_v59  ;;  %v14798_v59 = vld [vmem:[#allocation74_spill] sm:$0xff] }
 0x177   : > { %10455 = vmatprep.mubr.msk.f32.mxu0 %vm819_vm0, %v14790_v39  ;;  %v3075_v39 = vsel %vm14800_vm12, %v14798_v59, 0.0 }
 0x17a   : > { %10456 = vmatmul.mubr.msk.f32.gmra.mrb[22].mxu0 %vm819_vm0, %v3071_v4  ;;  %v3436_v4 = vld [vmem:[#allocation2 + $0x2f] sm:$0xff] }
 0x17b   : > { %10458 = vmatprep.mubr.msk.f32.mxu0 %vm819_vm0, %v14794_v49 }
 0x17e   : > { %10459 = vmatmul.mubr.msk.f32.gmra.mrb[24].mxu0 %vm819_vm0, %v3073_v63  ;;  %v3435_v63 = vld [vmem:[#allocation2 + $0x27] sm:$0xff] }
 0x17f   : > { %10461 = vmatprep.mubr.msk.f32.mxu0 %vm819_vm0, %v12468_v17  ;;  %v3467_v42 = vsel %vm11967_vm1, %v3435_v63, 0.0  ;;  %v3471_v63 = vsel %vm11995_vm3, %v12035_v56, 0.0  ;;  %v3479_v56 = vsel %vm12061_vm7, %v12095_v34, 0.0 }
 0x182   : > { %10462 = vmatmul.mubr.msk.f32.gmra.mrb[26].mxu0 %vm819_vm0, %v3075_v39  ;;  %v3079_v39 = vsel %vm12492_vm14, %v12776_v51, 0.0 }
 0x183   : > { %10464 = vmatprep.mubr.msk.f32.mxu0 %vm819_vm0, %v12490_v15  ;;  %v3437_v15 = vld [vmem:[#allocation2 + $0x37] sm:$0xff] }
 0x184   : > { %v3469_v57 = vsel %vm11981_vm2, %v3437_v15, 0.0  ;;  %v3473_v15 = vsel %vm12016_vm4, %v12050_v3, 0.0  ;;  %v3481_v3 = vsel %vm12076_vm8, %v12110_v47, 0.0  ;;  %vm14802_vm8 = vnez %v14615_v62  ;;  %v3465_v47 = vld [vmem:[#allocation2 + $0x117] sm:$0xff] }
 0x186   : > { %10465 = vmatmul.mubr.msk.f32.gmra.mrb[28].mxu0 %vm819_vm0, %v3077_v26  ;;  %v9111_v26 = vld [vmem:[%s14303_s1 + $0x40] sm:$0xff] }
 0x187   : > { %10467 = vmatprep.mubr.msk.f32.mxu0 %vm819_vm0, %v12774_v60 }
 0x18a   : > { %10468 = vmatmul.mubr.msk.f32.gmra.mrb[30].mxu0 %vm819_vm0, %v3079_v39  ;;  %v14808_v39 = vld [vmem:[#allocation66_spill] sm:$0xff] }
 0x18b   : > { %10472 = vmatprep.mubr.msk.f32.mxu0 %vm819_vm0, %v3467_v42  ;;  %v3868_v42 = vld [vmem:[#allocation2 + $0x98] sm:$0xff] }
 0x18e   : > { %10473 = vmatmul.mubr.msk.f32.vlgmr.msra.gmra.mrb[0].mxu0 %vm819_vm0, %v3436_v4  ;;  %v3869_v4 = vld [vmem:[#allocation2 + $0xa0] sm:$0xff] }
 0x18f   : > { %10521 = vmatpush3.msra.mxu0 %v9078_v58  ;;  %10475 = vmatprep.mubr.msk.f32.mxu0 %vm819_vm0, %v3469_v57  ;;  %v3475_v58 = vsel %vm12031_vm5, %v12065_v10, 0.0  ;;  %v3485_v10 = vsel %vm12106_vm10, %v12140_v20, 0.0  ;;  %vm14804_vm10 = vnez %v14620_v36  ;;  %v3857_v20 = vld [vmem:[#allocation2 + $0x40] sm:$0xff] }
 0x190   : > { %10570 = vmatprep.subr.mxu0 %v9111_v26  ;;  %v3865_v57 = vld [vmem:[#allocation2 + $0x80] sm:$0xff] }
 0x192   : > { %10476 = vmatmul.mubr.msk.f32.gmra.mrb[2].mxu0 %vm819_vm0, %v3438_v24  ;;  %v3477_v24 = vsel %vm12046_vm6, %v12080_v25, 0.0 }
 0x193   : > { %10478 = vmatprep.mubr.msk.f32.mxu0 %vm819_vm0, %v3471_v63  ;;  %v14815_v63 = vld [vmem:[#allocation4_spill] sm:$0xff] }
 0x196   : > { %10479 = vmatmul.mubr.msk.f32.gmra.mrb[4].mxu0 %vm819_vm0, %v12056_v6  ;;  %v3483_v6 = vsel %vm12091_vm9, %v12125_v0, 0.0  ;;  %vm14803_vm9 = vnez %v14617_v13  ;;  %v9145_v0 = vld [vmem:[%s14305_s3 + $0x8] sm:$0xff] }
 0x197   : > { %10481 = vmatprep.mubr.msk.f32.mxu0 %vm819_vm0, %v3473_v15  ;;  %v3489_v25 = vsel %vm14803_vm9, %v12170_v11, 0.0  ;;  %vm14806_vm9 = vnez %v14626_v50  ;;  %10620 = vmatprep.subr.mxu1 %v9145_v0  ;;  %v3861_v11 = vld [vmem:[#allocation2 + $0x60] sm:$0xff] }
 0x198   : > { %10621 = vmatpush3.msra.mxu1 %v9145_v0  ;;  %v3885_v15 = vld [vmem:[#allocation2 + $0x120] sm:$0xff] }
 0x19a   : > { %10482 = vmatmul.mubr.msk.f32.gmra.mrb[6].mxu0 %vm819_vm0, %v12071_v14  ;;  %v3487_v14 = vsel %vm14802_vm8, %v12155_v40, 0.0  ;;  %vm14805_vm8 = vnez %v14623_v5  ;;  %v3859_v40 = vld [vmem:[#allocation2 + $0x50] sm:$0xff] }
 0x19b   : > { %10484 = vmatprep.mubr.msk.f32.mxu0 %vm819_vm0, %v3475_v58  ;;  %v3493_v34 = vsel %vm14805_vm8, %v12201_v27, 0.0  ;;  %v3863_v27 = vld [vmem:[#allocation2 + $0x70] sm:$0xff] }
 0x19c   : > { %v14816_v58 = vld [vmem:[#allocation27_spill] sm:$0xff] }
 0x19e   : > { %10485 = vmatmul.mubr.msk.f32.gmra.mrb[8].mxu0 %vm819_vm0, %v12086_v29  ;;  %v3491_v29 = vsel %vm14804_vm10, %v12185_v23, 0.0  ;;  %vm14807_vm10 = vnez %v14629_v16  ;;  %v3466_v23 = vld [vmem:[#allocation2 + $0x11f] sm:$0xff] }
 0x19f   : > { %10487 = vmatprep.mubr.msk.f32.mxu0 %vm819_vm0, %v3477_v24  ;;  %v14817_v24 = vld [vmem:[#allocation29_spill] sm:$0xff] }
 0x1a2   : > { %10488 = vmatmul.mubr.msk.f32.gmra.mrb[10].mxu0 %vm819_vm0, %v12101_v37  ;;  %v3495_v37 = vsel %vm14806_vm9, %v12596_v43, 0.0  ;;  %v3866_v43 = vld [vmem:[#allocation2 + $0x88] sm:$0xff] }
 0x1a3   : > { %10490 = vmatprep.mubr.msk.f32.mxu0 %vm819_vm0, %v3479_v56  ;;  %v14818_v56 = vld [vmem:[#allocation23_spill] sm:$0xff] }
 0x1a6   : > { %10491 = vmatmul.mubr.msk.f32.gmra.mrb[12].mxu0 %vm819_vm0, %v12116_v54  ;;  %v3854_v54 = vld [vmem:[#allocation2 + $0x28] sm:$0xff] }
 0x1a7   : > { %10493 = vmatprep.mubr.msk.f32.mxu0 %vm819_vm0, %v3481_v3 }
 0x1aa   : > { %10494 = vmatmul.mubr.msk.f32.gmra.mrb[14].mxu0 %vm819_vm0, %v12131_v7  ;;  %v3856_v7 = vld [vmem:[#allocation2 + $0x38] sm:$0xff] }
 0x1ab   : > { %10496 = vmatprep.mubr.msk.f32.mxu0 %vm819_vm0, %v3483_v6  ;;  %v14820_v6 = vld [vmem:[#allocation30_spill] sm:$0xff] }
 0x1ae   : > { %10497 = vmatmul.mubr.msk.f32.gmra.mrb[16].mxu0 %vm819_vm0, %v12146_v30  ;;  %v3858_v30 = vld [vmem:[#allocation2 + $0x48] sm:$0xff] }
 0x1af   : > { %10499 = vmatprep.mubr.msk.f32.mxu0 %vm819_vm0, %v3485_v10  ;;  %v14821_v10 = vld [vmem:[#allocation32_spill] sm:$0xff] }
 0x1b2   : > { %10500 = vmatmul.mubr.msk.f32.gmra.mrb[18].mxu0 %vm819_vm0, %v12161_v61  ;;  %v3860_v61 = vld [vmem:[#allocation2 + $0x58] sm:$0xff] }
 0x1b3   : > { %10502 = vmatprep.mubr.msk.f32.mxu0 %vm819_vm0, %v3487_v14  ;;  %v14822_v14 = vld [vmem:[#allocation25_spill] sm:$0xff] }
 0x1b4   : > { %vm14823_vm9 = vnez %v14822_v14 }
 0x1b6   : > { %10503 = vmatmul.mubr.msk.f32.gmra.mrb[20].mxu0 %vm819_vm0, %v12176_v35  ;;  %v3862_v35 = vld [vmem:[#allocation2 + $0x68] sm:$0xff] }
 0x1b7   : > { %10505 = vmatprep.mubr.msk.f32.mxu0 %vm819_vm0, %v3489_v25  ;;  %v4276_v25 = vsel %vm14823_vm9, %v14821_v10, 0.0  ;;  %v4298_v10 = vsel %vm14797_vm11, %v14798_v59, 0.0  ;;  %v4272_v59 = vld [vmem:[#allocation2 + $0x121] sm:$0xff] }
 0x1ba   : > { %10506 = vmatmul.mubr.msk.f32.gmra.mrb[22].mxu0 %vm819_vm0, %v12190_v22  ;;  %v3497_v22 = vsel %vm14807_vm10, %v3465_v47, 0.0  ;;  %vm14819_vm10 = vnez %v14818_v56 }
 0x1bb   : > { %10508 = vmatprep.mubr.msk.f32.mxu0 %vm819_vm0, %v3491_v29  ;;  %v4274_v3 = vsel %vm14819_vm10, %v14817_v24, 0.0  ;;  %v14824_v29 = vld [vmem:[#allocation33_spill] sm:$0xff]  ;;  %v14858_v24 = vld [vmem:[#allocation70_spill] sm:$0xff] }
 0x1be   : > { %10509 = vmatmul.mubr.msk.f32.gmra.mrb[24].mxu0 %vm819_vm0, %v12207_v28  ;;  %v3864_v28 = vld [vmem:[#allocation2 + $0x78] sm:$0xff] }
 0x1bf   : > { %10511 = vmatprep.mubr.msk.f32.mxu0 %vm819_vm0, %v3493_v34  ;;  %v14825_v34 = vld [vmem:[#allocation35_spill] sm:$0xff] }
 0x1c2   : > { %10512 = vmatmul.mubr.msk.f32.gmra.mrb[26].mxu0 %vm819_vm0, %v12216_v9  ;;  %v3855_v9 = vld [vmem:[#allocation2 + $0x30] sm:$0xff] }
 0x1c3   : > { %10514 = vmatprep.mubr.msk.f32.mxu0 %vm819_vm0, %v3495_v37  ;;  %v14826_v37 = vld [vmem:[#allocation28_spill] sm:$0xff] }
 0x1c4   : > { %vm14827_vm8 = vnez %v14826_v37 }
 0x1c5   : > { %v4278_v47 = vsel %vm14827_vm8, %v14825_v34, 0.0  ;;  %v4302_v34 = vsel %vm12470_vm15, %v12776_v51, 0.0  ;;  %v13026_v51 = vpop.f32.mrb[0].mxu1 }
 0x1c6   : > { %10515 = vmatmul.mubr.msk.f32.gmra.mrb[28].mxu0 %vm819_vm0, %v12607_v12  ;;  %v3867_v12 = vld [vmem:[#allocation2 + $0x90] sm:$0xff] }
 0x1c7   : > { %10517 = vmatprep.mubr.msk.f32.mxu0 %vm819_vm0, %v3497_v22  ;;  %v14828_v22 = vld [vmem:[#allocation36_spill] sm:$0xff] }
 0x1ca   : > { %10518 = vmatmul.mubr.msk.f32.gmra.mrb[30].mxu0 %vm819_vm0, %v3466_v23  ;;  %v14829_v23 = vld [vmem:[#allocation38_spill] sm:$0xff] }
 0x1cb   : > { %10522 = vmatprep.mubr.msk.f32.mxu0 %vm819_vm0, %v3854_v54  ;;  %v14830_v54 = vld [vmem:[#allocation31_spill] sm:$0xff] }
 0x1cc   : > { %vm14831_vm10 = vnez %v14830_v54 }
 0x1cd   : > { %v4280_v0 = vsel %vm14831_vm10, %v14829_v23, 0.0  ;;  %v4828_v23 = vld [vmem:[#allocation2 + $0x8] sm:$0xff] }
 0x1ce   : > { %10523 = vmatmul.mubr.msk.f32.vlgmr.msra.gmra.mrb[0].mxu0 %vm819_vm0, %v3855_v9  ;;  %v14832_v9 = vld [vmem:[#allocation39_spill] sm:$0xff]  ;;  %10622 = vmatprep.mubr.msk.f32.mxu1 %vm819_vm0, %v4828_v23 }
 0x1cf   : > { %10571 = vmatpush3.msra.mxu0 %v9111_v26  ;;  %10525 = vmatprep.mubr.msk.f32.mxu0 %vm819_vm0, %v3856_v7  ;;  %v14809_v26 = vld [vmem:[#allocation67_spill] sm:$0xff]  ;;  %v14833_v7 = vld [vmem:[#allocation41_spill] sm:$0xff] }
 0x1d2   : > { %10526 = vmatmul.mubr.msk.f32.gmra.mrb[2].mxu0 %vm819_vm0, %v3857_v20  ;;  %v14834_v20 = vld [vmem:[#allocation34_spill] sm:$0xff] }
 0x1d3   : > { %10528 = vmatprep.mubr.msk.f32.mxu0 %vm819_vm0, %v3858_v30  ;;  %vm14835_vm9 = vnez %v14834_v20 }
 0x1d4   : > { %v4282_v30 = vsel %vm14835_vm9, %v14833_v7, 0.0 }
 0x1d6   : > { %10529 = vmatmul.mubr.msk.f32.gmra.mrb[4].mxu0 %vm819_vm0, %v3859_v40  ;;  %v14836_v40 = vld [vmem:[#allocation42_spill] sm:$0xff] }
 0x1d7   : > { %10531 = vmatprep.mubr.msk.f32.mxu0 %vm819_vm0, %v3860_v61  ;;  %v14837_v61 = vld [vmem:[#allocation44_spill] sm:$0xff] }
 0x1da   : > { %10532 = vmatmul.mubr.msk.f32.gmra.mrb[6].mxu0 %vm819_vm0, %v3861_v11  ;;  %v14838_v11 = vld [vmem:[#allocation37_spill] sm:$0xff] }
 0x1db   : > { %10534 = vmatprep.mubr.msk.f32.mxu0 %vm819_vm0, %v3862_v35  ;;  %vm14839_vm8 = vnez %v14838_v11 }
 0x1dc   : > { %v4284_v35 = vsel %vm14839_vm8, %v14837_v61, 0.0 }
 0x1de   : > { %10535 = vmatmul.mubr.msk.f32.gmra.mrb[8].mxu0 %vm819_vm0, %v3863_v27  ;;  %v14840_v27 = vld [vmem:[#allocation45_spill] sm:$0xff] }
 0x1df   : > { %10537 = vmatprep.mubr.msk.f32.mxu0 %vm819_vm0, %v3864_v28  ;;  %v14841_v28 = vld [vmem:[#allocation47_spill] sm:$0xff] }
 0x1e2   : > { %10538 = vmatmul.mubr.msk.f32.gmra.mrb[10].mxu0 %vm819_vm0, %v3865_v57  ;;  %v14842_v57 = vld [vmem:[#allocation40_spill] sm:$0xff] }
 0x1e3   : > { %10540 = vmatprep.mubr.msk.f32.mxu0 %vm819_vm0, %v3866_v43  ;;  %vm14843_vm10 = vnez %v14842_v57 }
 0x1e4   : > { %v4286_v43 = vsel %vm14843_vm10, %v14841_v28, 0.0 }
 0x1e6   : > { %10541 = vmatmul.mubr.msk.f32.gmra.mrb[12].mxu0 %vm819_vm0, %v3867_v12  ;;  %v14844_v12 = vld [vmem:[#allocation48_spill] sm:$0xff] }
 0x1e7   : > { %10543 = vmatprep.mubr.msk.f32.mxu0 %vm819_vm0, %v3868_v42  ;;  %v14845_v42 = vld [vmem:[#allocation50_spill] sm:$0xff] }
 0x1ea   : > { %10544 = vmatmul.mubr.msk.f32.gmra.mrb[14].mxu0 %vm819_vm0, %v3869_v4  ;;  %v14846_v4 = vld [vmem:[#allocation43_spill] sm:$0xff] }
 0x1eb   : > { %10546 = vmatprep.mubr.msk.f32.mxu0 %vm819_vm0, %v14737_v44  ;;  %v14810_v44 = vld [vmem:[#allocation71_spill] sm:$0xff]  ;;  %vm14847_vm9 = vnez %v14846_v4 }
 0x1ee   : > { %10547 = vmatmul.mubr.msk.f32.gmra.mrb[16].mxu0 %vm819_vm0, %v14738_v1  ;;  %v14811_v1 = vld [vmem:[#allocation72_spill] sm:$0xff] }
 0x1ef   : > { %10549 = vmatprep.mubr.msk.f32.mxu0 %vm819_vm0, %v14739_v45  ;;  %v14812_v45 = vld [vmem:[#allocation75_spill] sm:$0xff] }
 0x1f2   : > { %10550 = vmatmul.mubr.msk.f32.gmra.mrb[18].mxu0 %vm819_vm0, %v14740_v46  ;;  %v14813_v46 = vld [vmem:[#allocation76_spill] sm:$0xff] }
 0x1f3   : > { %10552 = vmatprep.mubr.msk.f32.mxu0 %vm819_vm0, %v14741_v18  ;;  %v14814_v18 = vld [vmem:[#allocation3_spill] sm:$0xff] }
 0x1f6   : > { %10553 = vmatmul.mubr.msk.f32.gmra.mrb[20].mxu0 %vm819_vm0, %v14742_v52  ;;  %v3884_v52 = vld [vmem:[#allocation2 + $0x118] sm:$0xff] }
 0x1f7   : > { %10555 = vmatprep.mubr.msk.f32.mxu0 %vm819_vm0, %v14808_v39  ;;  %v4288_v39 = vsel %vm14847_vm9, %v14845_v42, 0.0 }
 0x1fa   : > { %10556 = vmatmul.mubr.msk.f32.gmra.mrb[22].mxu0 %vm819_vm0, %v14809_v26  ;;  %v14848_v26 = vld [vmem:[#allocation53_spill] sm:$0xff] }
 0x1fb   : > { %10558 = vmatprep.mubr.msk.f32.mxu0 %vm819_vm0, %v14810_v44  ;;  %v14849_v44 = vld [vmem:[#allocation55_spill] sm:$0xff] }
 0x1fe   : > { %10559 = vmatmul.mubr.msk.f32.gmra.mrb[24].mxu0 %vm819_vm0, %v14811_v1  ;;  %v14850_v1 = vld [vmem:[#allocation46_spill] sm:$0xff] }
 0x1ff   : > { %10561 = vmatprep.mubr.msk.f32.mxu0 %vm819_vm0, %v14812_v45  ;;  %vm14851_vm8 = vnez %v14850_v1 }
 0x200   : > { %v4290_v45 = vsel %vm14851_vm8, %v14849_v44, 0.0 }
 0x202   : > { %10562 = vmatmul.mubr.msk.f32.gmra.mrb[26].mxu0 %vm819_vm0, %v14813_v46  ;;  %v14852_v46 = vld [vmem:[#allocation58_spill] sm:$0xff] }
 0x203   : > { %10564 = vmatprep.mubr.msk.f32.mxu0 %vm819_vm0, %v14814_v18  ;;  %v14853_v18 = vld [vmem:[#allocation49_spill] sm:$0xff] }
 0x204   : > { %vm14854_vm10 = vnez %v14853_v18 }
 0x206   : > { %10565 = vmatmul.mubr.msk.f32.gmra.mrb[28].mxu0 %vm819_vm0, %v14815_v63  ;;  %v14855_v63 = vld [vmem:[#allocation63_spill] sm:$0xff] }
 0x207   : > { %10567 = vmatprep.mubr.msk.f32.mxu0 %vm819_vm0, %v3884_v52  ;;  %v4292_v52 = vsel %vm14854_vm10, %v14787_v53, 0.0 }
 0x20a   : > { %10568 = vmatmul.mubr.msk.f32.gmra.mrb[30].mxu0 %vm819_vm0, %v3885_v15  ;;  %v14856_v15 = vld [vmem:[#allocation54_spill] sm:$0xff] }
 0x20b   : > { %10572 = vmatprep.mubr.msk.f32.mxu0 %vm819_vm0, %v14816_v58  ;;  %vm14857_vm9 = vnez %v14856_v15 }
 0x20c   : > { %v4294_v58 = vsel %vm14857_vm9, %v14791_v32, 0.0  ;;  %v14861_v32 = vld [vmem:[#allocation77_spill] sm:$0xff] }
 0x20e   : > { %10573 = vmatmul.mubr.msk.f32.vlgmr.msra.gmra.mrb[0].mxu0 %vm819_vm0, %v4274_v3 }
 0x20f   : > { %10575 = vmatprep.mubr.msk.f32.mxu0 %vm819_vm0, %v14820_v6  ;;  %v4296_v6 = vsel %vm14793_vm13, %v14858_v24, 0.0 }
 0x212   : > { %10576 = vmatmul.mubr.msk.f32.gmra.mrb[2].mxu0 %vm819_vm0, %v4276_v25  ;;  %v14862_v25 = vld [vmem:[#allocation79_spill] sm:$0xff] }
 0x213   : > { %10578 = vmatprep.mubr.msk.f32.mxu0 %vm819_vm0, %v14824_v29  ;;  %v4300_v29 = vsel %vm14800_vm12, %v14862_v25, 0.0 }
 0x216   : > { %10579 = vmatmul.mubr.msk.f32.gmra.mrb[4].mxu0 %vm819_vm0, %v4278_v47  ;;  %v4271_v47 = vld [vmem:[#allocation2 + $0x119] sm:$0xff] }
 0x217   : > { %10581 = vmatprep.mubr.msk.f32.mxu0 %vm819_vm0, %v14828_v22  ;;  %v4304_v22 = vsel %vm12492_vm14, %v4272_v59, 0.0 }
 0x21a   : > { %10582 = vmatmul.mubr.msk.f32.gmra.mrb[6].mxu0 %vm819_vm0, %v4280_v0  ;;  %v4829_v0 = vld [vmem:[#allocation2 + $0x10] sm:$0xff] }
 0x21b   : > { %10584 = vmatprep.mubr.msk.f32.mxu0 %vm819_vm0, %v14832_v9  ;;  %10623 = vmatmul.mubr.msk.f32.vlgmr.msra.gmra.mrb[12].mxu1 %vm819_vm0, %v4829_v0  ;;  %v13028_v9 = vpop.f32.mrb[1].mxu1 }
 0x21c   : > { %v13030_v7 = vpop.f32.mrb[2].mxu1 }
 0x21e   : > { %10585 = vmatmul.mubr.msk.f32.gmra.mrb[8].mxu0 %vm819_vm0, %v4282_v30  ;;  %v13032_v30 = vpop.f32.mrb[3].mxu1 }
 0x21f   : > { %10587 = vmatprep.mubr.msk.f32.mxu0 %vm819_vm0, %v14836_v40  ;;  %v13034_v40 = vpop.f32.mrb[4].mxu1 }
 0x220   : > { %v13036_v61 = vpop.f32.mrb[5].mxu1 }
 0x222   : > { %10588 = vmatmul.mubr.msk.f32.gmra.mrb[10].mxu0 %vm819_vm0, %v4284_v35  ;;  %v13038_v35 = vpop.f32.mrb[6].mxu1 }
 0x223   : > { %10590 = vmatprep.mubr.msk.f32.mxu0 %vm819_vm0, %v14840_v27  ;;  %v13040_v27 = vpop.f32.mrb[7].mxu1 }
 0x224   : > { %v13042_v28 = vpop.f32.mrb[8].mxu1 }
 0x226   : > { %10591 = vmatmul.mubr.msk.f32.gmra.mrb[12].mxu0 %vm819_vm0, %v4286_v43  ;;  %v13044_v43 = vpop.f32.mrb[9].mxu1 }
 0x227   : > { %10593 = vmatprep.mubr.msk.f32.mxu0 %vm819_vm0, %v14844_v12  ;;  %v13046_v12 = vpop.f32.mrb[10].mxu1 }
 0x228   : > { %v13048_v42 = vpop.f32.mrb[11].mxu1 }
 0x22a   : > { %10594 = vmatmul.mubr.msk.f32.gmra.mrb[14].mxu0 %vm819_vm0, %v4288_v39  ;;  %v13053_v39 = vld [vmem:[%s14305_s3 + $0x10] sm:$0xff] }
 0x22b   : > { %10596 = vmatprep.mubr.msk.f32.mxu0 %vm819_vm0, %v14848_v26  ;;  %v13059_v26 = vld [vmem:[%s14304_s2] ss:$0 sm:$0xff] }
 0x22e   : > { %10597 = vmatmul.mubr.msk.f32.gmra.mrb[16].mxu0 %vm819_vm0, %v4290_v45 }
 0x22f   : > { %10599 = vmatprep.mubr.msk.f32.mxu0 %vm819_vm0, %v14852_v46 }
 0x232   : > { %10600 = vmatmul.mubr.msk.f32.gmra.mrb[18].mxu0 %vm819_vm0, %v4292_v52 }
 0x233   : > { %10602 = vmatprep.mubr.msk.f32.mxu0 %vm819_vm0, %v14855_v63 }
 0x236   : > { %10603 = vmatmul.mubr.msk.f32.gmra.mrb[20].mxu0 %vm819_vm0, %v4294_v58 }
 0x237   : > { %10605 = vmatprep.mubr.msk.f32.mxu0 %vm819_vm0, %v14794_v49 }
 0x23a   : > { %10606 = vmatmul.mubr.msk.f32.gmra.mrb[22].mxu0 %vm819_vm0, %v4296_v6 }
 0x23b   : > { %10608 = vmatprep.mubr.msk.f32.mxu0 %vm819_vm0, %v12468_v17 }
 0x23e   : > { %10609 = vmatmul.mubr.msk.f32.gmra.mrb[24].mxu0 %vm819_vm0, %v4298_v10 }
 0x23f   : > { %10611 = vmatprep.mubr.msk.f32.mxu0 %vm819_vm0, %v14861_v32 }
 0x242   : > { %10612 = vmatmul.mubr.msk.f32.gmra.mrb[26].mxu0 %vm819_vm0, %v4300_v29 }
 0x243   : > { %10614 = vmatprep.mubr.msk.f32.mxu0 %vm819_vm0, %v12774_v60  ;;  %v4827_v60 = vld [vmem:[%s14305_s3] sm:$0xff] }
 0x244   : > { %10670 = vmatprep.subr.mxu1 %v4827_v60 }
 0x245   : > { %10671 = vmatpush3.msra.mxu1 %v4827_v60 }
 0x246   : > { %10615 = vmatmul.mubr.msk.f32.gmra.mrb[28].mxu0 %vm819_vm0, %v4302_v34  ;;  %10720 = vmatprep.subr.mxu1 %v13053_v39 }
 0x247   : > { %10617 = vmatprep.mubr.msk.f32.mxu0 %vm819_vm0, %v4271_v47 }
 0x24a   : > { %10618 = vmatmul.mubr.msk.f32.gmra.mrb[30].mxu0 %vm819_vm0, %v4304_v22 }
 0x2e1   : > { %v10574_v44 = vpop.f32.mrb[0].mxu0 }
 0x2e2   : > { %v4668_v45 = vadd.f32 %v10574_v44, %v13059_v26  ;;  %v4469_v46 = vpop.f32.mrb[1].mxu0 }
 0x2e3   : > { %v4667_v52 = vadd.f32 %v13059_v26, %v4469_v46 }
 0x2e4   : > { %v4700_v63 = vmax.f32 %v4668_v45, 0.0 }
 0x2e5   : > { %v4699_v58 = vmax.f32 %v4667_v52, 0.0  ;;  %v10577_v24 = vpop.f32.mrb[2].mxu0 }
 0x2e6   : > { %4732 = vst.msk [vmem:[#allocation2 + $0x20] sm:$0xff] %vm819_vm0, %v4700_v63  ;;  %v4670_v6 = vadd.f32 %v10577_v24, %v13059_v26  ;;  %v4479_v10 = vpop.f32.mrb[3].mxu0 }
 0x2e7   : > { %4731 = vst.msk [vmem:[#allocation2 + $0x18] sm:$0xff] %vm819_vm0, %v4699_v58  ;;  %v4669_v32 = vadd.f32 %v13059_v26, %v4479_v10 }
 0x2e8   : > { %v4702_v25 = vmax.f32 %v4670_v6, 0.0 }
 0x2e9   : > { %v4701_v29 = vmax.f32 %v4669_v32, 0.0  ;;  %v10580_v34 = vpop.f32.mrb[4].mxu0 }
 0x2ea   : > { %4734 = vst.msk [vmem:[#allocation2 + $0x30] sm:$0xff] %vm819_vm0, %v4702_v25  ;;  %v4672_v47 = vadd.f32 %v10580_v34, %v13059_v26  ;;  %v4489_v59 = vpop.f32.mrb[5].mxu0 }
 0x2eb   : > { %4733 = vst.msk [vmem:[#allocation2 + $0x28] sm:$0xff] %vm819_vm0, %v4701_v29  ;;  %v4671_v22 = vadd.f32 %v13059_v26, %v4489_v59 }
 0x2ec   : > { %v4704_v23 = vmax.f32 %v4672_v47, 0.0 }
 0x2ed   : > { %v4703_v0 = vmax.f32 %v4671_v22, 0.0  ;;  %v10583_v60 = vpop.f32.mrb[6].mxu0  ;;  %v13079_v63 = vld [vmem:[#allocation2 + $0x20] sm:$0xff] }
 0x2ee   : > { %4736 = vst.msk [vmem:[#allocation2 + $0x40] sm:$0xff] %vm819_vm0, %v4704_v23  ;;  %v4674_v44 = vadd.f32 %v10583_v60, %v13059_v26  ;;  %v4499_v45 = vpop.f32.mrb[7].mxu0  ;;  %v13073_v46 = vld [vmem:[#allocation2 + $0x18] sm:$0xff]  ;;  %14866 = vst [vmem:[#allocation6_spill] sm:$0xff] %v13079_v63 }
 0x2ef   : > { %14865 = vst [vmem:[#allocation5_spill] sm:$0xff] %v13073_v46  ;;  %4735 = vst.msk [vmem:[#allocation2 + $0x38] sm:$0xff] %vm819_vm0, %v4703_v0  ;;  %v4673_v52 = vadd.f32 %v13059_v26, %v4499_v45  ;;  %10625 = vmatprep.mubr.msk.f32.mxu1 %vm819_vm0, %v13073_v46 }
 0x2f0   : > { %v4706_v58 = vmax.f32 %v4674_v44, 0.0  ;;  %10626 = vmatmul.mubr.msk.f32.gmra.mrb[14].mxu1 %vm819_vm0, %v13079_v63 }
 0x2f1   : > { %v4705_v24 = vmax.f32 %v4673_v52, 0.0  ;;  %v10586_v6 = vpop.f32.mrb[8].mxu0  ;;  %v13091_v34 = vld [vmem:[#allocation2 + $0x30] sm:$0xff] }
 0x2f2   : > { %4738 = vst.msk [vmem:[#allocation2 + $0x50] sm:$0xff] %vm819_vm0, %v4706_v58  ;;  %v4676_v10 = vadd.f32 %v10586_v6, %v13059_v26  ;;  %v4509_v32 = vpop.f32.mrb[9].mxu0  ;;  %v13085_v25 = vld [vmem:[#allocation2 + $0x28] sm:$0xff]  ;;  %14868 = vst [vmem:[#allocation8_spill] sm:$0xff] %v13091_v34 }
 0x2f3   : > { %14867 = vst [vmem:[#allocation7_spill] sm:$0xff] %v13085_v25  ;;  %4737 = vst.msk [vmem:[#allocation2 + $0x48] sm:$0xff] %vm819_vm0, %v4705_v24  ;;  %v4675_v29 = vadd.f32 %v13059_v26, %v4509_v32  ;;  %10628 = vmatprep.mubr.msk.f32.mxu1 %vm819_vm0, %v13085_v25 }
 0x2f4   : > { %v4708_v47 = vmax.f32 %v4676_v10, 0.0  ;;  %10629 = vmatmul.mubr.msk.f32.gmra.mrb[16].mxu1 %vm819_vm0, %v13091_v34 }
 0x2f5   : > { %v4707_v59 = vmax.f32 %v4675_v29, 0.0  ;;  %v10589_v22 = vpop.f32.mrb[10].mxu0  ;;  %v13103_v45 = vld [vmem:[#allocation2 + $0x40] sm:$0xff] }
 0x2f6   : > { %4740 = vst.msk [vmem:[#allocation2 + $0x60] sm:$0xff] %vm819_vm0, %v4708_v47  ;;  %v4678_v23 = vadd.f32 %v10589_v22, %v13059_v26  ;;  %v4519_v0 = vpop.f32.mrb[11].mxu0  ;;  %v13097_v60 = vld [vmem:[#allocation2 + $0x38] sm:$0xff]  ;;  %14870 = vst [vmem:[#allocation10_spill] sm:$0xff] %v13103_v45 }
 0x2f7   : > { %14869 = vst [vmem:[#allocation9_spill] sm:$0xff] %v13097_v60  ;;  %4739 = vst.msk [vmem:[#allocation2 + $0x58] sm:$0xff] %vm819_vm0, %v4707_v59  ;;  %v4677_v44 = vadd.f32 %v13059_v26, %v4519_v0  ;;  %10631 = vmatprep.mubr.msk.f32.mxu1 %vm819_vm0, %v13097_v60 }
 0x2f8   : > { %v4710_v52 = vmax.f32 %v4678_v23, 0.0  ;;  %10632 = vmatmul.mubr.msk.f32.gmra.mrb[18].mxu1 %vm819_vm0, %v13103_v45 }
 0x2f9   : > { %v4709_v58 = vmax.f32 %v4677_v44, 0.0  ;;  %v10592_v24 = vpop.f32.mrb[12].mxu0  ;;  %v13115_v47 = vld [vmem:[#allocation2 + $0x50] sm:$0xff] }
 0x2fa   : > { %4742 = vst.msk [vmem:[#allocation2 + $0x70] sm:$0xff] %vm819_vm0, %v4710_v52  ;;  %v4680_v6 = vadd.f32 %v10592_v24, %v13059_v26  ;;  %v4529_v10 = vpop.f32.mrb[13].mxu0  ;;  %v13109_v32 = vld [vmem:[#allocation2 + $0x48] sm:$0xff]  ;;  %14872 = vst [vmem:[#allocation12_spill] sm:$0xff] %v13115_v47 }
 0x2fb   : > { %14871 = vst [vmem:[#allocation11_spill] sm:$0xff] %v13109_v32  ;;  %4741 = vst.msk [vmem:[#allocation2 + $0x68] sm:$0xff] %vm819_vm0, %v4709_v58  ;;  %v4679_v29 = vadd.f32 %v13059_v26, %v4529_v10  ;;  %10634 = vmatprep.mubr.msk.f32.mxu1 %vm819_vm0, %v13109_v32 }
 0x2fc   : > { %v4712_v59 = vmax.f32 %v4680_v6, 0.0  ;;  %10635 = vmatmul.mubr.msk.f32.gmra.mrb[20].mxu1 %vm819_vm0, %v13115_v47 }
 0x2fd   : > { %v4711_v22 = vmax.f32 %v4679_v29, 0.0  ;;  %v10595_v23 = vpop.f32.mrb[14].mxu0  ;;  %v13127_v24 = vld [vmem:[#allocation2 + $0x60] sm:$0xff] }
 0x2fe   : > { %4744 = vst.msk [vmem:[#allocation2 + $0x80] sm:$0xff] %vm819_vm0, %v4712_v59  ;;  %v4682_v0 = vadd.f32 %v10595_v23, %v13059_v26  ;;  %v4539_v44 = vpop.f32.mrb[15].mxu0  ;;  %v13121_v52 = vld [vmem:[#allocation2 + $0x58] sm:$0xff]  ;;  %14874 = vst [vmem:[#allocation14_spill] sm:$0xff] %v13127_v24 }
 0x2ff   : > { %14873 = vst [vmem:[#allocation13_spill] sm:$0xff] %v13121_v52  ;;  %4743 = vst.msk [vmem:[#allocation2 + $0x78] sm:$0xff] %vm819_vm0, %v4711_v22  ;;  %v4681_v58 = vadd.f32 %v13059_v26, %v4539_v44  ;;  %10637 = vmatprep.mubr.msk.f32.mxu1 %vm819_vm0, %v13121_v52 }
 0x300   : > { %v4714_v6 = vmax.f32 %v4682_v0, 0.0  ;;  %10638 = vmatmul.mubr.msk.f32.gmra.mrb[22].mxu1 %vm819_vm0, %v13127_v24 }
 0x301   : > { %v4713_v10 = vmax.f32 %v4681_v58, 0.0  ;;  %v10598_v29 = vpop.f32.mrb[16].mxu0  ;;  %v13139_v0 = vld [vmem:[#allocation2 + $0x70] sm:$0xff] }
 0x302   : > { %4746 = vst.msk [vmem:[#allocation2 + $0x90] sm:$0xff] %vm819_vm0, %v4714_v6  ;;  %v4684_v59 = vadd.f32 %v10598_v29, %v13059_v26  ;;  %v4549_v23 = vpop.f32.mrb[17].mxu0  ;;  %v13133_v47 = vld [vmem:[#allocation2 + $0x68] sm:$0xff]  ;;  %14876 = vst [vmem:[#allocation17_spill] sm:$0xff] %v13139_v0 }
 0x303   : > { %14875 = vst [vmem:[#allocation15_spill] sm:$0xff] %v13133_v47  ;;  %4745 = vst.msk [vmem:[#allocation2 + $0x88] sm:$0xff] %vm819_vm0, %v4713_v10  ;;  %v4683_v22 = vadd.f32 %v13059_v26, %v4549_v23  ;;  %10640 = vmatprep.mubr.msk.f32.mxu1 %vm819_vm0, %v13133_v47 }
 0x304   : > { %v4716_v44 = vmax.f32 %v4684_v59, 0.0  ;;  %10641 = vmatmul.mubr.msk.f32.gmra.mrb[24].mxu1 %vm819_vm0, %v13139_v0 }
 0x305   : > { %v4715_v58 = vmax.f32 %v4683_v22, 0.0  ;;  %v10601_v6 = vpop.f32.mrb[18].mxu0  ;;  %v13151_v59 = vld [vmem:[#allocation2 + $0x80] sm:$0xff] }
 0x306   : > { %4748 = vst.msk [vmem:[#allocation2 + $0xa0] sm:$0xff] %vm819_vm0, %v4716_v44  ;;  %v4686_v29 = vadd.f32 %v10601_v6, %v13059_v26  ;;  %v4559_v24 = vpop.f32.mrb[19].mxu0  ;;  %v13145_v52 = vld [vmem:[#allocation2 + $0x78] sm:$0xff]  ;;  %14878 = vst [vmem:[#allocation52_spill] sm:$0xff] %v13151_v59 }
 0x307   : > { %14877 = vst [vmem:[#allocation51_spill] sm:$0xff] %v13145_v52  ;;  %4747 = vst.msk [vmem:[#allocation2 + $0x98] sm:$0xff] %vm819_vm0, %v4715_v58  ;;  %v4685_v10 = vadd.f32 %v13059_v26, %v4559_v24  ;;  %10643 = vmatprep.mubr.msk.f32.mxu1 %vm819_vm0, %v13145_v52 }
 0x308   : > { %v4718_v23 = vmax.f32 %v4686_v29, 0.0  ;;  %10644 = vmatmul.mubr.msk.f32.gmra.mrb[26].mxu1 %vm819_vm0, %v13151_v59 }
 0x309   : > { %v4717_v22 = vmax.f32 %v4685_v10, 0.0  ;;  %v10604_v44 = vpop.f32.mrb[20].mxu0  ;;  %v13163_v58 = vld [vmem:[#allocation2 + $0x90] sm:$0xff] }
 0x30a   : > { %4750 = vst.msk [vmem:[#allocation2 + $0xb0] sm:$0xff] %vm819_vm0, %v4718_v23  ;;  %v11150_v6 = vadd.f32 %v10604_v44, %v13026_v51  ;;  %v4569_v0 = vpop.f32.mrb[21].mxu0  ;;  %v13157_v47 = vld [vmem:[#allocation2 + $0x88] sm:$0xff]  ;;  %14880 = vst [vmem:[#allocation57_spill] sm:$0xff] %v13163_v58 }
 0x30b   : > { %14879 = vst [vmem:[#allocation56_spill] sm:$0xff] %v13157_v47  ;;  %4749 = vst.msk [vmem:[#allocation2 + $0xa8] sm:$0xff] %vm819_vm0, %v4717_v22  ;;  %v11151_v24 = vadd.f32 %v4569_v0, %v13028_v9  ;;  %10646 = vmatprep.mubr.msk.f32.mxu1 %vm819_vm0, %v13157_v47 }
 0x30c   : > { %v4688_v29 = vadd.f32 %v11150_v6, %v13059_v26  ;;  %10647 = vmatmul.mubr.msk.f32.gmra.mrb[28].mxu1 %vm819_vm0, %v13163_v58 }
 0x30d   : > { %v4687_v10 = vadd.f32 %v11151_v24, %v13059_v26  ;;  %v10607_v51 = vpop.f32.mrb[22].mxu0  ;;  %v13175_v47 = vld [vmem:[#allocation2 + $0xa0] sm:$0xff] }
 0x30e   : > { %v4720_v23 = vmax.f32 %v4688_v29, 0.0  ;;  %v11152_v44 = vadd.f32 %v10607_v51, %v13030_v7  ;;  %v4579_v59 = vpop.f32.mrb[23].mxu0  ;;  %v13170_v22 = vld [vmem:[#allocation2 + $0x98] sm:$0xff]  ;;  %14882 = vst [vmem:[#allocation62_spill] sm:$0xff] %v13175_v47 }
 0x30f   : > { %14881 = vst [vmem:[#allocation61_spill] sm:$0xff] %v13170_v22  ;;  %v4719_v9 = vmax.f32 %v4687_v10, 0.0  ;;  %v11153_v0 = vadd.f32 %v4579_v59, %v13032_v30  ;;  %10649 = vmatprep.mubr.msk.f32.mxu1 %vm819_vm0, %v13170_v22 }
 0x310   : > { %4752 = vst.msk [vmem:[#allocation2 + $0xc0] sm:$0xff] %vm819_vm0, %v4720_v23  ;;  %v4690_v6 = vadd.f32 %v11152_v44, %v13059_v26  ;;  %10650 = vmatmul.mubr.msk.f32.gmra.mrb[30].mxu1 %vm819_vm0, %v13175_v47 }
 0x311   : > { %4751 = vst.msk [vmem:[#allocation2 + $0xb8] sm:$0xff] %vm819_vm0, %v4719_v9  ;;  %v4689_v7 = vadd.f32 %v11153_v0, %v13059_v26  ;;  %v10610_v24 = vpop.f32.mrb[24].mxu0  ;;  %v13189_v23 = vld [vmem:[#allocation2 + $0xb0] sm:$0xff] }
 0x312   : > { %v4722_v29 = vmax.f32 %v4690_v6, 0.0  ;;  %v11154_v30 = vadd.f32 %v10610_v24, %v13034_v40  ;;  %v4589_v59 = vpop.f32.mrb[25].mxu0  ;;  %v13184_v10 = vld [vmem:[#allocation2 + $0xa8] sm:$0xff]  ;;  %14884 = vst [vmem:[#allocation26_spill] sm:$0xff] %v13189_v23 }
 0x313   : > { %14883 = vst [vmem:[#allocation24_spill] sm:$0xff] %v13184_v10  ;;  %v4721_v51 = vmax.f32 %v4689_v7, 0.0  ;;  %v11155_v22 = vadd.f32 %v4589_v59, %v13036_v61  ;;  %10652 = vmatprep.mubr.msk.f32.mxu1 %vm819_vm0, %v13184_v10  ;;  %v13356_v10 = vld [vmem:[#allocation2 + $0x9f] sm:$0xff]  ;;  %v13366_v58 = vld [vmem:[#allocation2 + $0xaf] sm:$0xff] }
 0x314   : > { %4754 = vst.msk [vmem:[#allocation2 + $0xd0] sm:$0xff] %vm819_vm0, %v4722_v29  ;;  %v4692_v44 = vadd.f32 %v11154_v30, %v13059_v26  ;;  %10653 = vmatmul.mubr.msk.f32.gmra.mrb[32].mxu1 %vm819_vm0, %v13189_v23  ;;  %v13354_v23 = vld [vmem:[#allocation2 + $0xa7] sm:$0xff] }
 0x315   : > { %4753 = vst.msk [vmem:[#allocation2 + $0xc8] sm:$0xff] %vm819_vm0, %v4721_v51  ;;  %v4691_v40 = vadd.f32 %v11155_v22, %v13059_v26  ;;  %v10613_v9 = vpop.f32.mrb[26].mxu0 }
 0x316   : > { %v4724_v0 = vmax.f32 %v4692_v44, 0.0  ;;  %v11156_v61 = vadd.f32 %v10613_v9, %v13038_v35  ;;  %v4599_v6 = vpop.f32.mrb[27].mxu0 }
 0x317   : > { %v4723_v7 = vmax.f32 %v4691_v40, 0.0  ;;  %v11157_v24 = vadd.f32 %v4599_v6, %v13040_v27  ;;  %v13207_v22 = vld [vmem:[#allocation2 + $0xc0] sm:$0xff] }
 0x318   : > { %4756 = vst.msk [vmem:[#allocation2 + $0xe0] sm:$0xff] %vm819_vm0, %v4724_v0  ;;  %v4694_v29 = vadd.f32 %v11156_v61, %v13059_v26  ;;  %v13201_v30 = vld [vmem:[#allocation2 + $0xb8] sm:$0xff]  ;;  %14886 = vst [vmem:[#allocation65_spill] sm:$0xff] %v13207_v22 }
 0x319   : > { %14885 = vst [vmem:[#allocation60_spill] sm:$0xff] %v13201_v30  ;;  %4755 = vst.msk [vmem:[#allocation2 + $0xd8] sm:$0xff] %vm819_vm0, %v4723_v7  ;;  %v4693_v59 = vadd.f32 %v11157_v24, %v13059_v26  ;;  %v10616_v51 = vpop.f32.mrb[28].mxu0  ;;  %10655 = vmatprep.mubr.msk.f32.mxu1 %vm819_vm0, %v13201_v30  ;;  %v13346_v30 = vld [vmem:[#allocation2 + $0x8f] sm:$0xff]  ;;  %v13364_v47 = vld [vmem:[#allocation2 + $0xb7] sm:$0xff] }
 0x31a   : > { %v4726_v35 = vmax.f32 %v4694_v29, 0.0  ;;  %v11158_v44 = vadd.f32 %v10616_v51, %v13042_v28  ;;  %v4609_v27 = vpop.f32.mrb[29].mxu0  ;;  %10656 = vmatmul.mubr.msk.f32.gmra.mrb[34].mxu1 %vm819_vm0, %v13207_v22  ;;  %v13344_v22 = vld [vmem:[#allocation2 + $0x97] sm:$0xff]  ;;  %v13376_v32 = vld [vmem:[#allocation2 + $0xbf] sm:$0xff] }
 0x31b   : > { %v4725_v40 = vmax.f32 %v4693_v59, 0.0  ;;  %v11159_v9 = vadd.f32 %v4609_v27, %v13044_v43  ;;  %v13221_v28 = vld [vmem:[#allocation2 + $0xd0] sm:$0xff]  ;;  %v13529_v1 = vld [vmem:[#allocation2 + $0xb9] sm:$0xff] }
 0x31c   : > { %4758 = vst.msk [vmem:[#allocation2 + $0xf0] sm:$0xff] %vm819_vm0, %v4726_v35  ;;  %v4696_v0 = vadd.f32 %v11158_v44, %v13059_v26  ;;  %v13215_v61 = vld [vmem:[#allocation2 + $0xc8] sm:$0xff]  ;;  %14888 = vst [vmem:[#allocation74_spill] sm:$0xff] %v13221_v28 }
 0x31d   : > { %14887 = vst [vmem:[#allocation68_spill] sm:$0xff] %v13215_v61  ;;  %4757 = vst.msk [vmem:[#allocation2 + $0xe8] sm:$0xff] %vm819_vm0, %v4725_v40  ;;  %v4695_v6 = vadd.f32 %v11159_v9, %v13059_v26  ;;  %v10619_v7 = vpop.f32.mrb[30].mxu0  ;;  %10658 = vmatprep.mubr.msk.f32.mxu1 %vm819_vm0, %v13215_v61  ;;  %v13336_v61 = vld [vmem:[#allocation2 + $0x7f] sm:$0xff]  ;;  %v13374_v52 = vld [vmem:[#allocation2 + $0xc7] sm:$0xff] }
 0x31e   : > { %v4728_v24 = vmax.f32 %v4696_v0, 0.0  ;;  %v11160_v29 = vadd.f32 %v10619_v7, %v13046_v12  ;;  %v4619_v43 = vpop.f32.mrb[31].mxu0  ;;  %10659 = vmatmul.mubr.msk.f32.gmra.mrb[36].mxu1 %vm819_vm0, %v13221_v28  ;;  %v4763_v0 = vld [vmem:[#allocation2 + $0x7] sm:$0xff]  ;;  %v13386_v60 = vld [vmem:[#allocation2 + $0xcf] sm:$0xff]  ;;  %14927 = vst [vmem:[#allocation45_spill] sm:$0xff] %v13529_v1 }
 0x31f   : > { %v4727_v59 = vmax.f32 %v4695_v6, 0.0  ;;  %v11161_v51 = vadd.f32 %v4619_v43, %v13048_v42  ;;  %v13235_v12 = vld [vmem:[#allocation2 + $0xe0] sm:$0xff]  ;;  %v4764_v43 = vld [vmem:[#allocation2 + $0xf] sm:$0xff] }
 0x320   : > { %4760 = vst.msk [vmem:[#allocation2 + $0x100] sm:$0xff] %vm819_vm0, %v4728_v24  ;;  %v4698_v35 = vadd.f32 %v11160_v29, %v13059_v26  ;;  %v13229_v44 = vld [vmem:[#allocation2 + $0xd8] sm:$0xff]  ;;  %14890 = vst [vmem:[#allocation67_spill] sm:$0xff] %v13235_v12  ;;  %v4795_v24 = vsel %vm11967_vm1, %v4763_v0, 0.0  ;;  %v13334_v28 = vld [vmem:[#allocation2 + $0x87] sm:$0xff] }
 0x321   : > { %14889 = vst [vmem:[#allocation66_spill] sm:$0xff] %v13229_v44  ;;  %4759 = vst.msk [vmem:[#allocation2 + $0xf8] sm:$0xff] %vm819_vm0, %v4727_v59  ;;  %v4697_v27 = vadd.f32 %v11161_v51, %v13059_v26  ;;  %10661 = vmatprep.mubr.msk.f32.mxu1 %vm819_vm0, %v13229_v44  ;;  %v13260_v59 = vld [vmem:[#allocation2 + $0x17] sm:$0xff]  ;;  %v13326_v44 = vld [vmem:[#allocation2 + $0x6f] sm:$0xff] }
 0x322   : > { %v4730_v40 = vmax.f32 %v4698_v35, 0.0  ;;  %10662 = vmatmul.mubr.msk.f32.gmra.mrb[38].mxu1 %vm819_vm0, %v13235_v12  ;;  %v13265_v51 = vld [vmem:[%s14305_s3 + $0x18] sm:$0xff]  ;;  %v4797_v35 = vsel %vm11981_vm2, %v13260_v59, 0.0  ;;  %v13539_v18 = vld [vmem:[#allocation2 + $0xc9] sm:$0xff]  ;;  %v5955_v17 = vsel %vm11967_vm1, %v13260_v59, 0.0 }
 0x323   : > { %v4729_v42 = vmax.f32 %v4697_v27, 0.0  ;;  %v13245_v26 = vld [vmem:[#allocation2 + $0xf0] sm:$0xff]  ;;  %v13273_v27 = vld [vmem:[#allocation2 + $0x27] sm:$0xff]  ;;  %v13396_v25 = vld [vmem:[#allocation2 + $0xdf] sm:$0xff]  ;;  %14928 = vst [vmem:[#allocation47_spill] sm:$0xff] %v13539_v18 }
 0x324   : > { %4762 = vst.msk [vmem:[#allocation2 + $0x110] sm:$0xff] %vm819_vm0, %v4730_v40  ;;  %v13240_v9 = vld [vmem:[#allocation2 + $0xe8] sm:$0xff]  ;;  %14892 = vst [vmem:[#allocation72_spill] sm:$0xff] %v13245_v26  ;;  %v13276_v40 = vld [vmem:[#allocation2 + $0x1f] sm:$0xff]  ;;  %v5957_v19 = vsel %vm11981_vm2, %v13273_v27, 0.0 }
 0x325   : > { %14891 = vst [vmem:[#allocation71_spill] sm:$0xff] %v13240_v9  ;;  %4761 = vst.msk [vmem:[#allocation2 + $0x108] sm:$0xff] %vm819_vm0, %v4729_v42  ;;  %10664 = vmatprep.mubr.msk.f32.mxu1 %vm819_vm0, %v13240_v9  ;;  %v4799_v42 = vsel %vm11995_vm3, %v13273_v27, 0.0  ;;  %v13284_v0 = vld [vmem:[#allocation2 + $0x37] sm:$0xff]  ;;  %v13316_v9 = vld [vmem:[#allocation2 + $0x5f] sm:$0xff] }
 0x326   : > { %10665 = vmatmul.mubr.msk.f32.gmra.mrb[40].mxu1 %vm819_vm0, %v13245_v26  ;;  %v13314_v26 = vld [vmem:[#allocation2 + $0x67] sm:$0xff]  ;;  %v13324_v12 = vld [vmem:[#allocation2 + $0x77] sm:$0xff]  ;;  %14903 = vst [vmem:[#allocation3_spill] sm:$0xff] %v13396_v25  ;;  %v13406_v46 = vld [vmem:[#allocation2 + $0xef] sm:$0xff] }
 0x327   : > { %v13255_v29 = vld [vmem:[#allocation2 + $0x100] sm:$0xff]  ;;  %v13384_v45 = vld [vmem:[#allocation2 + $0xd7] sm:$0xff]  ;;  %14906 = vst [vmem:[#allocation27_spill] sm:$0xff] %v13406_v46  ;;  %v13559_v3 = vld [vmem:[#allocation2 + $0xe9] sm:$0xff] }
 0x328   : > { %v13249_v6 = vld [vmem:[#allocation2 + $0xf8] sm:$0xff]  ;;  %14895 = vst [vmem:[#allocation76_spill] sm:$0xff] %v13255_v29  ;;  %v13394_v34 = vld [vmem:[#allocation2 + $0xe7] sm:$0xff]  ;;  %14930 = vst [vmem:[#allocation50_spill] sm:$0xff] %v13559_v3 }
 0x329   : > { %14893 = vst [vmem:[#allocation75_spill] sm:$0xff] %v13249_v6  ;;  %10667 = vmatprep.mubr.msk.f32.mxu1 %vm819_vm0, %v13249_v6  ;;  %v13306_v6 = vld [vmem:[#allocation2 + $0x4f] sm:$0xff]  ;;  %v13404_v63 = vld [vmem:[#allocation2 + $0xf7] sm:$0xff] }
 0x32a   : > { %10668 = vmatmul.mubr.msk.f32.gmra.mrb[42].mxu1 %vm819_vm0, %v13255_v29  ;;  %v13304_v29 = vld [vmem:[#allocation2 + $0x57] sm:$0xff]  ;;  %14905 = vst [vmem:[#allocation4_spill] sm:$0xff] %v13404_v63  ;;  %v11672_v7 = vld [vmem:[%s11828_s15 + $0x88] sm:$0xff] }
 0x32b   : > { %10672 = vmatprep.mubr.msk.f32.mxu1 %vm819_vm0, %v4795_v24  ;;  %v13286_v24 = vld [vmem:[#allocation2 + $0x2f] sm:$0xff]  ;;  %v13549_v15 = vld [vmem:[#allocation2 + $0xd9] sm:$0xff] }
 0x32c   : > { %14929 = vst [vmem:[#allocation48_spill] sm:$0xff] %v13549_v15  ;;  %v13569_v53 = vld [vmem:[#allocation2 + $0xf9] sm:$0xff] }
 0x32e   : > { %10673 = vmatmul.mubr.msk.f32.vlgmr.msra.gmra.mrb[12].mxu1 %vm819_vm0, %v4764_v43  ;;  %v13294_v43 = vld [vmem:[#allocation2 + $0x47] sm:$0xff] }
 0x32f   : > { %10675 = vmatprep.mubr.msk.f32.mxu1 %vm819_vm0, %v4797_v35  ;;  %10721 = vmatpush3.msra.mxu1 %v13053_v39  ;;  %v4801_v39 = vsel %vm12016_vm4, %v13284_v0, 0.0  ;;  %v13296_v35 = vld [vmem:[#allocation2 + $0x3f] sm:$0xff]  ;;  %v5961_v59 = vsel %vm12016_vm4, %v13294_v43, 0.0  ;;  %vm14932_vm4 = vnez %v14607_v8 }
 0x330   : > { %10770 = vmatprep.subr.mxu1 %v13265_v51 }
 0x332   : > { %10676 = vmatmul.mubr.msk.f32.gmra.mrb[14].mxu1 %vm819_vm0, %v13276_v40 }
 0x333   : > { %10678 = vmatprep.mubr.msk.f32.mxu1 %vm819_vm0, %v4799_v42  ;;  %v4803_v42 = vsel %vm12031_vm5, %v13294_v43, 0.0 }
 0x336   : > { %10679 = vmatmul.mubr.msk.f32.gmra.mrb[16].mxu1 %vm819_vm0, %v13286_v24 }
 0x337   : > { %10681 = vmatprep.mubr.msk.f32.mxu1 %vm819_vm0, %v4801_v39  ;;  %v4805_v39 = vsel %vm12046_vm6, %v13304_v29, 0.0  ;;  %vm14896_vm6 = vnez %v14609_v21 }
 0x33a   : > { %10682 = vmatmul.mubr.msk.f32.gmra.mrb[18].mxu1 %vm819_vm0, %v13296_v35 }
 0x33b   : > { %10684 = vmatprep.mubr.msk.f32.mxu1 %vm819_vm0, %v4803_v42  ;;  %v4807_v42 = vsel %vm12061_vm7, %v13314_v26, 0.0  ;;  %vm14897_vm7 = vnez %v14611_v33 }
 0x33e   : > { %10685 = vmatmul.mubr.msk.f32.gmra.mrb[20].mxu1 %vm819_vm0, %v13306_v6 }
 0x33f   : > { %10687 = vmatprep.mubr.msk.f32.mxu1 %vm819_vm0, %v4805_v39  ;;  %v4809_v39 = vsel %vm14896_vm6, %v13324_v12, 0.0  ;;  %vm14898_vm6 = vnez %v14613_v41 }
 0x342   : > { %10688 = vmatmul.mubr.msk.f32.gmra.mrb[22].mxu1 %vm819_vm0, %v13316_v9 }
 0x343   : > { %10690 = vmatprep.mubr.msk.f32.mxu1 %vm819_vm0, %v4807_v42  ;;  %v4811_v42 = vsel %vm14897_vm7, %v13334_v28, 0.0  ;;  %vm14899_vm7 = vnez %v14615_v62 }
 0x346   : > { %10691 = vmatmul.mubr.msk.f32.gmra.mrb[24].mxu1 %vm819_vm0, %v13326_v44 }
 0x347   : > { %10693 = vmatprep.mubr.msk.f32.mxu1 %vm819_vm0, %v4809_v39  ;;  %v4813_v39 = vsel %vm14898_vm6, %v13344_v22, 0.0  ;;  %vm14900_vm6 = vnez %v14617_v13 }
 0x34a   : > { %10694 = vmatmul.mubr.msk.f32.gmra.mrb[26].mxu1 %vm819_vm0, %v13336_v61 }
 0x34b   : > { %10696 = vmatprep.mubr.msk.f32.mxu1 %vm819_vm0, %v4811_v42  ;;  %v4815_v42 = vsel %vm14899_vm7, %v13354_v23, 0.0  ;;  %vm14901_vm7 = vnez %v14620_v36 }
 0x34e   : > { %10697 = vmatmul.mubr.msk.f32.gmra.mrb[28].mxu1 %vm819_vm0, %v13346_v30 }
 0x34f   : > { %10699 = vmatprep.mubr.msk.f32.mxu1 %vm819_vm0, %v4813_v39  ;;  %v4817_v39 = vsel %vm14900_vm6, %v13364_v47, 0.0  ;;  %vm14902_vm6 = vnez %v14623_v5  ;;  %v5504_v5 = vld [vmem:[#allocation2 + $0x9] sm:$0xff] }
 0x352   : > { %10700 = vmatmul.mubr.msk.f32.gmra.mrb[30].mxu1 %vm819_vm0, %v13356_v10 }
 0x353   : > { %10702 = vmatprep.mubr.msk.f32.mxu1 %vm819_vm0, %v4815_v42  ;;  %v4819_v42 = vsel %vm14901_vm7, %v13374_v52, 0.0  ;;  %vm14904_vm7 = vnez %v14626_v50 }
 0x356   : > { %10703 = vmatmul.mubr.msk.f32.gmra.mrb[32].mxu1 %vm819_vm0, %v13366_v58 }
 0x357   : > { %10705 = vmatprep.mubr.msk.f32.mxu1 %vm819_vm0, %v4817_v39  ;;  %v4821_v39 = vsel %vm14902_vm6, %v13384_v45, 0.0  ;;  %vm14907_vm6 = vnez %v14629_v16  ;;  %v13429_v16 = vld [vmem:[#allocation2 + $0x21] sm:$0xff] }
 0x35a   : > { %10706 = vmatmul.mubr.msk.f32.gmra.mrb[34].mxu1 %vm819_vm0, %v13376_v32 }
 0x35b   : > { %10708 = vmatprep.mubr.msk.f32.mxu1 %vm819_vm0, %v4819_v42  ;;  %v4823_v42 = vsel %vm14904_vm7, %v13394_v34, 0.0  ;;  %vm14909_vm7 = vnez %v14818_v56 }
 0x35e   : > { %10709 = vmatmul.mubr.msk.f32.gmra.mrb[36].mxu1 %vm819_vm0, %v13386_v60 }
 0x35f   : > { %10711 = vmatprep.mubr.msk.f32.mxu1 %vm819_vm0, %v4821_v39  ;;  %v4825_v39 = vsel %vm14907_vm6, %v13404_v63, 0.0  ;;  %vm14913_vm6 = vnez %v14826_v37  ;;  %v13469_v37 = vld [vmem:[#allocation2 + $0x59] sm:$0xff] }
 0x360   : > { %14918 = vst [vmem:[#allocation36_spill] sm:$0xff] %v13469_v37 }
 0x362   : > { %10712 = vmatmul.mubr.msk.f32.gmra.mrb[38].mxu1 %vm819_vm0, %v13396_v25  ;;  %v13414_v25 = vld [vmem:[#allocation2 + $0xff] sm:$0xff] }
 0x363   : > { %10714 = vmatprep.mubr.msk.f32.mxu1 %vm819_vm0, %v4823_v42  ;;  %14908 = vst [vmem:[#allocation29_spill] sm:$0xff] %v13414_v25  ;;  %v5505_v42 = vld [vmem:[#allocation2 + $0x11] sm:$0xff] }
 0x364   : > { %v5537_v50 = vsel %vm14909_vm7, %v5505_v42, 0.0  ;;  %vm14911_vm7 = vnez %v14822_v14  ;;  %v13439_v42 = vld [vmem:[#allocation2 + $0x29] sm:$0xff] }
 0x365   : > { %14912 = vst [vmem:[#allocation32_spill] sm:$0xff] %v13439_v42  ;;  %v13459_v14 = vld [vmem:[#allocation2 + $0x49] sm:$0xff] }
 0x366   : > { %10715 = vmatmul.mubr.msk.f32.gmra.mrb[40].mxu1 %vm819_vm0, %v13406_v46  ;;  %v13424_v46 = vld [vmem:[%s14305_s3 + $0x20] sm:$0xff]  ;;  %14916 = vst [vmem:[#allocation35_spill] sm:$0xff] %v13459_v14 }
 0x367   : > { %10717 = vmatprep.mubr.msk.f32.mxu1 %vm819_vm0, %v4825_v39  ;;  %v13427_v39 = vld [vmem:[#allocation2 + $0x19] sm:$0xff] }
 0x368   : > { %14910 = vst [vmem:[#allocation30_spill] sm:$0xff] %v13427_v39 }
 0x36a   : > { %10718 = vmatmul.mubr.msk.f32.gmra.mrb[42].mxu1 %vm819_vm0, %v13414_v25 }
 0x36b   : > { %10722 = vmatprep.mubr.msk.f32.mxu1 %vm819_vm0, %v5504_v5  ;;  %v5539_v5 = vsel %vm14911_vm7, %v13429_v16, 0.0  ;;  %vm14915_vm7 = vnez %v14830_v54  ;;  %v13479_v54 = vld [vmem:[#allocation2 + $0x69] sm:$0xff] }
 0x36c   : > { %14920 = vst [vmem:[#allocation38_spill] sm:$0xff] %v13479_v54 }
 0x36e   : > { %10723 = vmatmul.mubr.msk.f32.vlgmr.msra.gmra.mrb[12].mxu1 %vm819_vm0, %v5537_v50  ;;  %v13441_v50 = vld [vmem:[#allocation2 + $0x31] sm:$0xff] }
 0x36f   : > { %10725 = vmatprep.mubr.msk.f32.mxu1 %vm819_vm0, %v13427_v39  ;;  %10771 = vmatpush3.msra.mxu1 %v13265_v51  ;;  %v5541_v56 = vsel %vm14913_vm6, %v13441_v50, 0.0  ;;  %v13449_v51 = vld [vmem:[#allocation2 + $0x39] sm:$0xff]  ;;  %v13451_v39 = vld [vmem:[#allocation2 + $0x41] sm:$0xff]  ;;  %vm14917_vm6 = vnez %v14834_v20 }
 0x370   : > { %10820 = vmatprep.subr.mxu1 %v13424_v46  ;;  %14914 = vst [vmem:[#allocation33_spill] sm:$0xff] %v13449_v51  ;;  %v13489_v20 = vld [vmem:[#allocation2 + $0x79] sm:$0xff] }
 0x371   : > { %14922 = vst [vmem:[#allocation39_spill] sm:$0xff] %v13489_v20 }
 0x372   : > { %10726 = vmatmul.mubr.msk.f32.gmra.mrb[14].mxu1 %vm819_vm0, %v5539_v5  ;;  %v5543_v5 = vsel %vm14915_vm7, %v13451_v39, 0.0  ;;  %vm14919_vm7 = vnez %v14838_v11  ;;  %v13499_v11 = vld [vmem:[#allocation2 + $0x89] sm:$0xff] }
 0x373   : > { %10728 = vmatprep.mubr.msk.f32.mxu1 %vm819_vm0, %v13439_v42  ;;  %v13461_v42 = vld [vmem:[#allocation2 + $0x51] sm:$0xff]  ;;  %14924 = vst [vmem:[#allocation41_spill] sm:$0xff] %v13499_v11 }
 0x376   : > { %10729 = vmatmul.mubr.msk.f32.gmra.mrb[16].mxu1 %vm819_vm0, %v5541_v56  ;;  %v5545_v56 = vsel %vm14917_vm6, %v13461_v42, 0.0  ;;  %vm14921_vm6 = vnez %v14842_v57  ;;  %v13509_v57 = vld [vmem:[#allocation2 + $0x99] sm:$0xff] }
 0x377   : > { %10731 = vmatprep.mubr.msk.f32.mxu1 %vm819_vm0, %v13449_v51  ;;  %v13471_v51 = vld [vmem:[#allocation2 + $0x61] sm:$0xff]  ;;  %14925 = vst [vmem:[#allocation42_spill] sm:$0xff] %v13509_v57 }
 0x37a   : > { %10732 = vmatmul.mubr.msk.f32.gmra.mrb[18].mxu1 %vm819_vm0, %v5543_v5  ;;  %v5547_v5 = vsel %vm14919_vm7, %v13471_v51, 0.0  ;;  %vm14923_vm7 = vnez %v14846_v4  ;;  %v13519_v4 = vld [vmem:[#allocation2 + $0xa9] sm:$0xff] }
 0x37b   : > { %10734 = vmatprep.mubr.msk.f32.mxu1 %vm819_vm0, %v13459_v14  ;;  %v13481_v14 = vld [vmem:[#allocation2 + $0x71] sm:$0xff]  ;;  %14926 = vst [vmem:[#allocation44_spill] sm:$0xff] %v13519_v4 }
 0x37e   : > { %10735 = vmatmul.mubr.msk.f32.gmra.mrb[20].mxu1 %vm819_vm0, %v5545_v56  ;;  %v5549_v56 = vsel %vm14921_vm6, %v13481_v14, 0.0 }
 0x37f   : > { %10737 = vmatprep.mubr.msk.f32.mxu1 %vm819_vm0, %v13469_v37  ;;  %v13491_v37 = vld [vmem:[#allocation2 + $0x81] sm:$0xff] }
 0x382   : > { %10738 = vmatmul.mubr.msk.f32.gmra.mrb[22].mxu1 %vm819_vm0, %v5547_v5  ;;  %v5551_v5 = vsel %vm14923_vm7, %v13491_v37, 0.0 }
 0x383   : > { %10740 = vmatprep.mubr.msk.f32.mxu1 %vm819_vm0, %v13479_v54  ;;  %v13501_v54 = vld [vmem:[#allocation2 + $0x91] sm:$0xff] }
 0x386   : > { %10741 = vmatmul.mubr.msk.f32.gmra.mrb[24].mxu1 %vm819_vm0, %v5549_v56  ;;  %v5553_v56 = vsel %vm14851_vm8, %v13501_v54, 0.0 }
 0x387   : > { %10743 = vmatprep.mubr.msk.f32.mxu1 %vm819_vm0, %v13489_v20  ;;  %v13511_v20 = vld [vmem:[#allocation2 + $0xa1] sm:$0xff] }
 0x38a   : > { %10744 = vmatmul.mubr.msk.f32.gmra.mrb[26].mxu1 %vm819_vm0, %v5551_v5  ;;  %v5555_v5 = vsel %vm14854_vm10, %v13511_v20, 0.0 }
 0x38b   : > { %10746 = vmatprep.mubr.msk.f32.mxu1 %vm819_vm0, %v13499_v11  ;;  %v13521_v11 = vld [vmem:[#allocation2 + $0xb1] sm:$0xff] }
 0x38e   : > { %10747 = vmatmul.mubr.msk.f32.gmra.mrb[28].mxu1 %vm819_vm0, %v5553_v56  ;;  %v5557_v56 = vsel %vm14857_vm9, %v13521_v11, 0.0 }
 0x38f   : > { %10749 = vmatprep.mubr.msk.f32.mxu1 %vm819_vm0, %v13509_v57  ;;  %v13531_v57 = vld [vmem:[#allocation2 + $0xc1] sm:$0xff] }
 0x392   : > { %10750 = vmatmul.mubr.msk.f32.gmra.mrb[30].mxu1 %vm819_vm0, %v5555_v5  ;;  %v5559_v5 = vsel %vm14793_vm13, %v13531_v57, 0.0 }
 0x393   : > { %10752 = vmatprep.mubr.msk.f32.mxu1 %vm819_vm0, %v13519_v4  ;;  %v13541_v4 = vld [vmem:[#allocation2 + $0xd1] sm:$0xff] }
 0x396   : > { %10753 = vmatmul.mubr.msk.f32.gmra.mrb[32].mxu1 %vm819_vm0, %v5557_v56  ;;  %v5561_v56 = vsel %vm14797_vm11, %v13541_v4, 0.0 }
 0x397   : > { %10755 = vmatprep.mubr.msk.f32.mxu1 %vm819_vm0, %v13529_v1  ;;  %v13551_v1 = vld [vmem:[#allocation2 + $0xe1] sm:$0xff] }
 0x39a   : > { %10756 = vmatmul.mubr.msk.f32.gmra.mrb[34].mxu1 %vm819_vm0, %v5559_v5  ;;  %v5563_v5 = vsel %vm14800_vm12, %v13551_v1, 0.0 }
 0x39b   : > { %10758 = vmatprep.mubr.msk.f32.mxu1 %vm819_vm0, %v13539_v18  ;;  %v13561_v18 = vld [vmem:[#allocation2 + $0xf1] sm:$0xff] }
 0x39e   : > { %10759 = vmatmul.mubr.msk.f32.gmra.mrb[36].mxu1 %vm819_vm0, %v5561_v56  ;;  %v5565_v56 = vsel %vm12470_vm15, %v13561_v18, 0.0 }
 0x39f   : > { %10761 = vmatprep.mubr.msk.f32.mxu1 %vm819_vm0, %v13549_v15  ;;  %v13571_v15 = vld [vmem:[#allocation2 + $0x101] sm:$0xff] }
 0x3a2   : > { %10762 = vmatmul.mubr.msk.f32.gmra.mrb[38].mxu1 %vm819_vm0, %v5563_v5  ;;  %v5567_v5 = vsel %vm12492_vm14, %v13571_v15, 0.0 }
 0x3a3   : > { %10764 = vmatprep.mubr.msk.f32.mxu1 %vm819_vm0, %v13559_v3 }
 0x3a6   : > { %10765 = vmatmul.mubr.msk.f32.gmra.mrb[40].mxu1 %vm819_vm0, %v5565_v56  ;;  %v9309_v56 = vld [vmem:[%s14305_s3 + $0x28] sm:$0xff] }
 0x3a7   : > { %10767 = vmatprep.mubr.msk.f32.mxu1 %vm819_vm0, %v13569_v53 }
 0x3aa   : > { %10768 = vmatmul.mubr.msk.f32.gmra.mrb[42].mxu1 %vm819_vm0, %v5567_v5 }
 0x3ab   : > { %10772 = vmatprep.mubr.msk.f32.mxu1 %vm819_vm0, %v5955_v17  ;;  %v5959_v17 = vsel %vm11995_vm3, %v13284_v0, 0.0  ;;  %vm14931_vm3 = vnez %v14605_v2 }
 0x3ae   : > { %10773 = vmatmul.mubr.msk.f32.vlgmr.msra.gmra.mrb[12].mxu1 %vm819_vm0, %v13276_v40  ;;  %v5967_v40 = vsel %vm14932_vm4, %v13324_v12, 0.0  ;;  %vm14935_vm4 = vnez %v14613_v41 }
 0x3af   : > { %10775 = vmatprep.mubr.msk.f32.mxu1 %vm819_vm0, %v5957_v19  ;;  %10821 = vmatpush3.msra.mxu1 %v13424_v46  ;;  %v5963_v19 = vsel %vm12031_vm5, %v13304_v29, 0.0  ;;  %v5965_v46 = vsel %vm14931_vm3, %v13314_v26, 0.0  ;;  %vm14933_vm5 = vnez %v14609_v21  ;;  %vm14934_vm3 = vnez %v14611_v33 }
 0x3b0   : > { %10870 = vmatprep.subr.mxu1 %v9309_v56  ;;  %v5969_v5 = vsel %vm14933_vm5, %v13334_v28, 0.0  ;;  %vm14936_vm5 = vnez %v14615_v62 }
 0x3b2   : > { %10776 = vmatmul.mubr.msk.f32.gmra.mrb[14].mxu1 %vm819_vm0, %v13286_v24 }
 0x3b3   : > { %10778 = vmatprep.mubr.msk.f32.mxu1 %vm819_vm0, %v5959_v17  ;;  %v5971_v17 = vsel %vm14934_vm3, %v13344_v22, 0.0  ;;  %vm14937_vm3 = vnez %v14617_v13 }
 0x3b6   : > { %10779 = vmatmul.mubr.msk.f32.gmra.mrb[16].mxu1 %vm819_vm0, %v13296_v35 }
 0x3b7   : > { %10781 = vmatprep.mubr.msk.f32.mxu1 %vm819_vm0, %v5961_v59  ;;  %v5973_v59 = vsel %vm14935_vm4, %v13354_v23, 0.0  ;;  %vm14938_vm4 = vnez %v14620_v36  ;;  %v13671_v36 = vld [vmem:[#allocation2 + $0x107] sm:$0xff] }
 0x3b8   : > { %14945 = vst [vmem:[#allocation53_spill] sm:$0xff] %v13671_v36 }
 0x3ba   : > { %10782 = vmatmul.mubr.msk.f32.gmra.mrb[18].mxu1 %vm819_vm0, %v13306_v6 }
 0x3bb   : > { %10784 = vmatprep.mubr.msk.f32.mxu1 %vm819_vm0, %v5963_v19  ;;  %v5975_v19 = vsel %vm14936_vm5, %v13364_v47, 0.0 }
 0x3be   : > { %10785 = vmatmul.mubr.msk.f32.gmra.mrb[20].mxu1 %vm819_vm0, %v13316_v9 }
 0x3bf   : > { %10787 = vmatprep.mubr.msk.f32.mxu1 %vm819_vm0, %v5965_v46  ;;  %v5977_v46 = vsel %vm14937_vm3, %v13374_v52, 0.0 }
 0x3c2   : > { %10788 = vmatmul.mubr.msk.f32.gmra.mrb[22].mxu1 %vm819_vm0, %v13326_v44 }
 0x3c3   : > { %10790 = vmatprep.mubr.msk.f32.mxu1 %vm819_vm0, %v5967_v40  ;;  %v5979_v40 = vsel %vm14938_vm4, %v13384_v45, 0.0 }
 0x3c6   : > { %10791 = vmatmul.mubr.msk.f32.gmra.mrb[24].mxu1 %vm819_vm0, %v13336_v61 }
 0x3c7   : > { %10793 = vmatprep.mubr.msk.f32.mxu1 %vm819_vm0, %v5969_v5  ;;  %v14939_v5 = vld [vmem:[#allocation3_spill] sm:$0xff] }
 0x3ca   : > { %10794 = vmatmul.mubr.msk.f32.gmra.mrb[26].mxu1 %vm819_vm0, %v13346_v30 }
 0x3cb   : > { %10796 = vmatprep.mubr.msk.f32.mxu1 %vm819_vm0, %v5971_v17  ;;  %v14940_v17 = vld [vmem:[#allocation20_spill] sm:$0xff] }
 0x3cc   : > { %vm14941_vm5 = vnez %v14940_v17 }
 0x3ce   : > { %10797 = vmatmul.mubr.msk.f32.gmra.mrb[28].mxu1 %vm819_vm0, %v13356_v10 }
 0x3cf   : > { %10799 = vmatprep.mubr.msk.f32.mxu1 %vm819_vm0, %v5973_v59  ;;  %v5981_v59 = vsel %vm14941_vm5, %v13394_v34, 0.0 }
 0x3d2   : > { %10800 = vmatmul.mubr.msk.f32.gmra.mrb[30].mxu1 %vm819_vm0, %v13366_v58 }
 0x3d3   : > { %10802 = vmatprep.mubr.msk.f32.mxu1 %vm819_vm0, %v5975_v19  ;;  %v14942_v19 = vld [vmem:[#allocation27_spill] sm:$0xff] }
 0x3d6   : > { %10803 = vmatmul.mubr.msk.f32.gmra.mrb[32].mxu1 %vm819_vm0, %v13376_v32 }
 0x3d7   : > { %10805 = vmatprep.mubr.msk.f32.mxu1 %vm819_vm0, %v5977_v46  ;;  %v14943_v46 = vld [vmem:[#allocation21_spill] sm:$0xff] }
 0x3d8   : > { %vm14944_vm3 = vnez %v14943_v46  ;;  %v14949_v46 = vld [vmem:[#allocation5_spill] sm:$0xff] }
 0x3d9   : > { %v5983_v13 = vsel %vm14944_vm3, %v13404_v63, 0.0  ;;  %v14950_v63 = vld [vmem:[#allocation6_spill] sm:$0xff] }
 0x3da   : > { %10806 = vmatmul.mubr.msk.f32.gmra.mrb[34].mxu1 %vm819_vm0, %v13386_v60 }
 0x3db   : > { %10808 = vmatprep.mubr.msk.f32.mxu1 %vm819_vm0, %v5979_v40  ;;  %v14946_v40 = vld [vmem:[#allocation22_spill] sm:$0xff] }
 0x3dc   : > { %vm14947_vm4 = vnez %v14946_v40  ;;  %v14953_v40 = vld [vmem:[#allocation9_spill] sm:$0xff] }
 0x3dd   : > { %v5985_v17 = vsel %vm14947_vm4, %v13671_v36, 0.0  ;;  %v14956_v36 = vld [vmem:[#allocation12_spill] sm:$0xff] }
 0x3de   : > { %10809 = vmatmul.mubr.msk.f32.gmra.mrb[36].mxu1 %vm819_vm0, %v14939_v5 }
 0x3df   : > { %10811 = vmatprep.mubr.msk.f32.mxu1 %vm819_vm0, %v5981_v59  ;;  %v13679_v59 = vld [vmem:[#allocation2 + $0x10f] sm:$0xff] }
 0x3e0   : > { %14948 = vst [vmem:[#allocation55_spill] sm:$0xff] %v13679_v59 }
 0x3e2   : > { %10812 = vmatmul.mubr.msk.f32.gmra.mrb[38].mxu1 %vm819_vm0, %v14942_v19 }
 0x3e3   : > { %10814 = vmatprep.mubr.msk.f32.mxu1 %vm819_vm0, %v5983_v13  ;;  %v9342_v13 = vld [vmem:[%s14305_s3 + $0x30] sm:$0xff] }
 0x3e6   : > { %10815 = vmatmul.mubr.msk.f32.gmra.mrb[40].mxu1 %vm819_vm0, %v13414_v25  ;;  %v14951_v25 = vld [vmem:[#allocation7_spill] sm:$0xff] }
 0x3e7   : > { %10817 = vmatprep.mubr.msk.f32.mxu1 %vm819_vm0, %v5985_v17  ;;  %v14952_v17 = vld [vmem:[#allocation8_spill] sm:$0xff] }
 0x3ea   : > { %10818 = vmatmul.mubr.msk.f32.gmra.mrb[42].mxu1 %vm819_vm0, %v13679_v59  ;;  %v14954_v59 = vld [vmem:[#allocation10_spill] sm:$0xff] }
 0x3eb   : > { %10822 = vmatprep.mubr.msk.f32.mxu1 %vm819_vm0, %v14949_v46  ;;  %v14955_v46 = vld [vmem:[#allocation11_spill] sm:$0xff] }
 0x3ee   : > { %10823 = vmatmul.mubr.msk.f32.vlgmr.msra.gmra.mrb[12].mxu1 %vm819_vm0, %v14950_v63  ;;  %v14957_v63 = vld [vmem:[#allocation13_spill] sm:$0xff] }
 0x3ef   : > { %10825 = vmatprep.mubr.msk.f32.mxu1 %vm819_vm0, %v14951_v25  ;;  %10871 = vmatpush3.msra.mxu1 %v9309_v56  ;;  %v14958_v25 = vld [vmem:[#allocation14_spill] sm:$0xff]  ;;  %v14959_v56 = vld [vmem:[#allocation15_spill] sm:$0xff] }
 0x3f0   : > { %10920 = vmatprep.subr.mxu1 %v9342_v13 }
 0x3f2   : > { %10826 = vmatmul.mubr.msk.f32.gmra.mrb[14].mxu1 %vm819_vm0, %v14952_v17  ;;  %v14960_v17 = vld [vmem:[#allocation17_spill] sm:$0xff] }
 0x3f3   : > { %10828 = vmatprep.mubr.msk.f32.mxu1 %vm819_vm0, %v14953_v40  ;;  %v14961_v40 = vld [vmem:[#allocation51_spill] sm:$0xff] }
 0x3f6   : > { %10829 = vmatmul.mubr.msk.f32.gmra.mrb[16].mxu1 %vm819_vm0, %v14954_v59  ;;  %v14962_v59 = vld [vmem:[#allocation52_spill] sm:$0xff] }
 0x3f7   : > { %10831 = vmatprep.mubr.msk.f32.mxu1 %vm819_vm0, %v14955_v46  ;;  %v14963_v46 = vld [vmem:[#allocation56_spill] sm:$0xff] }
 0x3fa   : > { %10832 = vmatmul.mubr.msk.f32.gmra.mrb[18].mxu1 %vm819_vm0, %v14956_v36  ;;  %v14964_v36 = vld [vmem:[#allocation57_spill] sm:$0xff] }
 0x3fb   : > { %10834 = vmatprep.mubr.msk.f32.mxu1 %vm819_vm0, %v14957_v63  ;;  %v14965_v63 = vld [vmem:[#allocation61_spill] sm:$0xff] }
 0x3fe   : > { %10835 = vmatmul.mubr.msk.f32.gmra.mrb[20].mxu1 %vm819_vm0, %v14958_v25  ;;  %v14966_v25 = vld [vmem:[#allocation62_spill] sm:$0xff] }
 0x3ff   : > { %10837 = vmatprep.mubr.msk.f32.mxu1 %vm819_vm0, %v14959_v56  ;;  %v14967_v56 = vld [vmem:[#allocation24_spill] sm:$0xff] }
 0x402   : > { %10838 = vmatmul.mubr.msk.f32.gmra.mrb[22].mxu1 %vm819_vm0, %v14960_v17  ;;  %v14968_v17 = vld [vmem:[#allocation26_spill] sm:$0xff] }
 0x403   : > { %10840 = vmatprep.mubr.msk.f32.mxu1 %vm819_vm0, %v14961_v40  ;;  %v14969_v40 = vld [vmem:[#allocation60_spill] sm:$0xff] }
 0x406   : > { %10841 = vmatmul.mubr.msk.f32.gmra.mrb[24].mxu1 %vm819_vm0, %v14962_v59  ;;  %v14970_v59 = vld [vmem:[#allocation65_spill] sm:$0xff] }
 0x407   : > { %10843 = vmatprep.mubr.msk.f32.mxu1 %vm819_vm0, %v14963_v46  ;;  %v14971_v46 = vld [vmem:[#allocation68_spill] sm:$0xff] }
 0x40a   : > { %10844 = vmatmul.mubr.msk.f32.gmra.mrb[26].mxu1 %vm819_vm0, %v14964_v36  ;;  %v14972_v36 = vld [vmem:[#allocation74_spill] sm:$0xff] }
 0x40b   : > { %10846 = vmatprep.mubr.msk.f32.mxu1 %vm819_vm0, %v14965_v63  ;;  %v14973_v63 = vld [vmem:[#allocation66_spill] sm:$0xff] }
 0x40e   : > { %10847 = vmatmul.mubr.msk.f32.gmra.mrb[28].mxu1 %vm819_vm0, %v14966_v25  ;;  %v14974_v25 = vld [vmem:[#allocation67_spill] sm:$0xff] }
 0x40f   : > { %10849 = vmatprep.mubr.msk.f32.mxu1 %vm819_vm0, %v14967_v56  ;;  %v14975_v56 = vld [vmem:[#allocation71_spill] sm:$0xff] }
 0x412   : > { %10850 = vmatmul.mubr.msk.f32.gmra.mrb[30].mxu1 %vm819_vm0, %v14968_v17  ;;  %v14976_v17 = vld [vmem:[#allocation72_spill] sm:$0xff] }
 0x413   : > { %10852 = vmatprep.mubr.msk.f32.mxu1 %vm819_vm0, %v14969_v40  ;;  %v14977_v40 = vld [vmem:[#allocation75_spill] sm:$0xff] }
 0x416   : > { %10853 = vmatmul.mubr.msk.f32.gmra.mrb[32].mxu1 %vm819_vm0, %v14970_v59  ;;  %v14978_v59 = vld [vmem:[#allocation76_spill] sm:$0xff] }
 0x417   : > { %10855 = vmatprep.mubr.msk.f32.mxu1 %vm819_vm0, %v14971_v46  ;;  %v13746_v46 = vld [vmem:[#allocation2 + $0x108] sm:$0xff] }
 0x41a   : > { %10856 = vmatmul.mubr.msk.f32.gmra.mrb[34].mxu1 %vm819_vm0, %v14972_v36  ;;  %v13750_v36 = vld [vmem:[#allocation2 + $0x110] sm:$0xff] }
 0x41b   : > { %10858 = vmatprep.mubr.msk.f32.mxu1 %vm819_vm0, %v14973_v63  ;;  %14979 = vst [vmem:[#allocation58_spill] sm:$0xff] %v13750_v36  ;;  %v14980_v63 = vld [vmem:[#allocation30_spill] sm:$0xff] }
 0x41e   : > { %10859 = vmatmul.mubr.msk.f32.gmra.mrb[36].mxu1 %vm819_vm0, %v14974_v25  ;;  %v14981_v25 = vld [vmem:[#allocation23_spill] sm:$0xff] }
 0x41f   : > { %10861 = vmatprep.mubr.msk.f32.mxu1 %vm819_vm0, %v14975_v56  ;;  %vm14982_vm4 = vnez %v14981_v25 }
 0x420   : > { %v6762_v56 = vsel %vm14982_vm4, %v13429_v16, 0.0  ;;  %v14987_v16 = vld [vmem:[#allocation28_spill] sm:$0xff] }
 0x421   : > { %vm14988_vm4 = vnez %v14987_v16  ;;  %v14995_v16 = vld [vmem:[#allocation38_spill] sm:$0xff] }
 0x422   : > { %10862 = vmatmul.mubr.msk.f32.gmra.mrb[38].mxu1 %vm819_vm0, %v14976_v17  ;;  %v9375_v17 = vld [vmem:[%s14305_s3 + $0x38] sm:$0xff]  ;;  %v6766_v25 = vsel %vm14988_vm4, %v13451_v39, 0.0 }
 0x423   : > { %10864 = vmatprep.mubr.msk.f32.mxu1 %vm819_vm0, %v14977_v40  ;;  %v14983_v40 = vld [vmem:[#allocation32_spill] sm:$0xff] }
 0x426   : > { %10865 = vmatmul.mubr.msk.f32.gmra.mrb[40].mxu1 %vm819_vm0, %v14978_v59  ;;  %v14984_v59 = vld [vmem:[#allocation25_spill] sm:$0xff] }
 0x427   : > { %10867 = vmatprep.mubr.msk.f32.mxu1 %vm819_vm0, %v13746_v46  ;;  %vm14985_vm3 = vnez %v14984_v59  ;;  %v14992_v59 = vld [vmem:[#allocation36_spill] sm:$0xff] }
 0x42a   : > { %10868 = vmatmul.mubr.msk.f32.gmra.mrb[42].mxu1 %vm819_vm0, %v13750_v36  ;;  %v6764_v36 = vsel %vm14985_vm3, %v13441_v50, 0.0 }
 0x42b   : > { %10872 = vmatprep.mubr.msk.f32.mxu1 %vm819_vm0, %v14980_v63  ;;  %v14986_v63 = vld [vmem:[#allocation33_spill] sm:$0xff] }
 0x42e   : > { %10873 = vmatmul.mubr.msk.f32.vlgmr.msra.gmra.mrb[12].mxu1 %vm819_vm0, %v6762_v56  ;;  %v14989_v56 = vld [vmem:[#allocation35_spill] sm:$0xff] }
 0x42f   : > { %10875 = vmatprep.mubr.msk.f32.mxu1 %vm819_vm0, %v14983_v40  ;;  %10921 = vmatpush3.msra.mxu1 %v9342_v13  ;;  %v14990_v13 = vld [vmem:[#allocation31_spill] sm:$0xff] }
 0x430   : > { %10970 = vmatprep.subr.mxu1 %v9375_v17  ;;  %vm14991_vm5 = vnez %v14990_v13  ;;  %v14998_v13 = vld [vmem:[#allocation39_spill] sm:$0xff] }
 0x431   : > { %v6768_v40 = vsel %vm14991_vm5, %v13461_v42, 0.0 }
 0x432   : > { %10876 = vmatmul.mubr.msk.f32.gmra.mrb[14].mxu1 %vm819_vm0, %v6764_v36  ;;  %v14993_v36 = vld [vmem:[#allocation34_spill] sm:$0xff] }
 0x433   : > { %10878 = vmatprep.mubr.msk.f32.mxu1 %vm819_vm0, %v14986_v63  ;;  %vm14994_vm3 = vnez %v14993_v36  ;;  %v15000_v36 = vld [vmem:[#allocation41_spill] sm:$0xff] }
 0x434   : > { %v6770_v63 = vsel %vm14994_vm3, %v13471_v51, 0.0 }
 0x436   : > { %10879 = vmatmul.mubr.msk.f32.gmra.mrb[16].mxu1 %vm819_vm0, %v6766_v25  ;;  %v14996_v25 = vld [vmem:[#allocation37_spill] sm:$0xff] }
 0x437   : > { %10881 = vmatprep.mubr.msk.f32.mxu1 %vm819_vm0, %v14989_v56  ;;  %vm14997_vm4 = vnez %v14996_v25  ;;  %v15002_v25 = vld [vmem:[#allocation42_spill] sm:$0xff] }
 0x438   : > { %v6772_v56 = vsel %vm14997_vm4, %v13481_v14, 0.0 }
 0x43a   : > { %10882 = vmatmul.mubr.msk.f32.gmra.mrb[18].mxu1 %vm819_vm0, %v6768_v40  ;;  %v15004_v40 = vld [vmem:[#allocation44_spill] sm:$0xff] }
 0x43b   : > { %10884 = vmatprep.mubr.msk.f32.mxu1 %vm819_vm0, %v14992_v59  ;;  %v6774_v59 = vsel %vm14921_vm6, %v13491_v37, 0.0 }
 0x43e   : > { %10885 = vmatmul.mubr.msk.f32.gmra.mrb[20].mxu1 %vm819_vm0, %v6770_v63  ;;  %v15006_v63 = vld [vmem:[#allocation45_spill] sm:$0xff] }
 0x43f   : > { %10887 = vmatprep.mubr.msk.f32.mxu1 %vm819_vm0, %v14995_v16  ;;  %v6776_v16 = vsel %vm14923_vm7, %v13501_v54, 0.0 }
 0x442   : > { %10888 = vmatmul.mubr.msk.f32.gmra.mrb[22].mxu1 %vm819_vm0, %v6772_v56  ;;  %v15008_v56 = vld [vmem:[#allocation47_spill] sm:$0xff] }
 0x443   : > { %10890 = vmatprep.mubr.msk.f32.mxu1 %vm819_vm0, %v14998_v13  ;;  %v6778_v13 = vsel %vm14851_vm8, %v13511_v20, 0.0 }
 0x446   : > { %10891 = vmatmul.mubr.msk.f32.gmra.mrb[24].mxu1 %vm819_vm0, %v6774_v59  ;;  %v15010_v59 = vld [vmem:[#allocation48_spill] sm:$0xff] }
 0x447   : > { %10893 = vmatprep.mubr.msk.f32.mxu1 %vm819_vm0, %v15000_v36  ;;  %v6780_v36 = vsel %vm14854_vm10, %v13521_v11, 0.0 }
 0x44a   : > { %10894 = vmatmul.mubr.msk.f32.gmra.mrb[26].mxu1 %vm819_vm0, %v6776_v16  ;;  %v7984_v16 = vld [vmem:[#allocation2 + $0x119] sm:$0xff] }
 0x44b   : > { %10896 = vmatprep.mubr.msk.f32.mxu1 %vm819_vm0, %v15002_v25  ;;  %v6782_v25 = vsel %vm14857_vm9, %v13531_v57, 0.0 }
 0x44e   : > { %10897 = vmatmul.mubr.msk.f32.gmra.mrb[28].mxu1 %vm819_vm0, %v6778_v13  ;;  %v7985_v13 = vld [vmem:[#allocation2 + $0x121] sm:$0xff] }
 0x44f   : > { %10899 = vmatprep.mubr.msk.f32.mxu1 %vm819_vm0, %v15004_v40  ;;  %v6784_v40 = vsel %vm14793_vm13, %v13541_v4, 0.0 }
 0x452   : > { %10900 = vmatmul.mubr.msk.f32.gmra.mrb[30].mxu1 %vm819_vm0, %v6780_v36  ;;  %v6790_v36 = vsel %vm12470_vm15, %v13571_v15, 0.0 }
 0x453   : > { %10902 = vmatprep.mubr.msk.f32.mxu1 %vm819_vm0, %v15006_v63  ;;  %v6786_v63 = vsel %vm14797_vm11, %v13551_v1, 0.0 }
 0x456   : > { %10903 = vmatmul.mubr.msk.f32.gmra.mrb[32].mxu1 %vm819_vm0, %v6782_v25  ;;  %v6788_v25 = vsel %vm14800_vm12, %v13561_v18, 0.0 }
 0x457   : > { %10905 = vmatprep.mubr.msk.f32.mxu1 %vm819_vm0, %v15008_v56 }
 0x45a   : > { %10906 = vmatmul.mubr.msk.f32.gmra.mrb[34].mxu1 %vm819_vm0, %v6784_v40  ;;  %v7180_v40 = vsel %vm11967_vm1, %v13273_v27, 0.0  ;;  %vm15016_vm1 = vnez %v14599_v38  ;;  %v11677_v38 = vld [vmem:[%s11828_s15 + $0x10] sm:$0xff] }
 0x45b   : > { %10908 = vmatprep.mubr.msk.f32.mxu1 %vm819_vm0, %v15010_v59  ;;  %v7184_v31 = vsel %vm15016_vm1, %v13294_v43, 0.0  ;;  %v11678_v43 = vld [vmem:[%s11828_s15 + $0x18] sm:$0xff]  ;;  %vm15018_vm1 = vnez %v14603_v55  ;;  %v11681_v55 = vld [vmem:[%s11828_s15 + $0x20] sm:$0xff] }
 0x45e   : > { %10909 = vmatmul.mubr.msk.f32.gmra.mrb[36].mxu1 %vm819_vm0, %v6786_v63  ;;  %v13847_v63 = vld [vmem:[#allocation2 + $0x109] sm:$0xff] }
 0x45f   : > { %10911 = vmatprep.mubr.msk.f32.mxu1 %vm819_vm0, %v13559_v3  ;;  %15013 = vst [vmem:[#allocation63_spill] sm:$0xff] %v13847_v63  ;;  %v13849_v3 = vld [vmem:[#allocation2 + $0x111] sm:$0xff] }
 0x460   : > { %15014 = vst [vmem:[#allocation70_spill] sm:$0xff] %v13849_v3  ;;  %v6792_v49 = vsel %vm12492_vm14, %v13849_v3, 0.0  ;;  %v11674_v3 = vld [vmem:[%s11828_s15 + $0x8] sm:$0xff] }
 0x462   : > { %10912 = vmatmul.mubr.msk.f32.gmra.mrb[38].mxu1 %vm819_vm0, %v6788_v25  ;;  %v7182_v25 = vsel %vm11981_vm2, %v13284_v0, 0.0  ;;  %vm15017_vm2 = vnez %v14601_v48  ;;  %v11675_v0 = vld [vmem:[%s11828_s15 + $0x90] sm:$0xff]  ;;  %v7188_v48 = vsel %vm15018_vm1, %v13314_v26, 0.0  ;;  %v11682_v26 = vld [vmem:[%s11828_s15 + $0x28] sm:$0xff]  ;;  %vm15020_vm1 = vnez %v14607_v8 }
 0x463   : > { %10914 = vmatprep.mubr.msk.f32.mxu1 %vm819_vm0, %v13569_v53  ;;  %v11685_v8 = vld [vmem:[%s11828_s15 + $0x30] sm:$0xff] }
 0x466   : > { %10915 = vmatmul.mubr.msk.f32.gmra.mrb[40].mxu1 %vm819_vm0, %v6790_v36  ;;  %v13864_v36 = vld [vmem:[%s14305_s3 + $0x40] sm:$0xff] }
 0x467   : > { %10917 = vmatprep.mubr.msk.f32.mxu1 %vm819_vm0, %v13847_v63 }
 0x46a   : > { %10918 = vmatmul.mubr.msk.f32.gmra.mrb[42].mxu1 %vm819_vm0, %v6792_v49  ;;  %v11671_v49 = vld [vmem:[%s11828_s15 + $0x80] sm:$0xff] }
 0x46b   : > { %10922 = vmatprep.mubr.msk.f32.mxu1 %vm819_vm0, %v7180_v40  ;;  %v11084_v27 = vpack.c.bf16 %v11672_v7, %v11671_v49  ;;  %v11673_v40 = vld [vmem:[%s11828_s15] sm:$0xff] }
 0x46c   : > { %v11086_v63 = vpack.c.bf16 %v11674_v3, %v11673_v40  ;;  %v7186_v3 = vsel %vm15017_vm2, %v13304_v29, 0.0  ;;  %vm15019_vm2 = vnez %v14605_v2  ;;  %v11679_v29 = vld [vmem:[%s11828_s15 + $0xa0] sm:$0xff]  ;;  %v7192_v2 = vsel %vm15020_vm1, %v13334_v28, 0.0  ;;  %v11686_v28 = vld [vmem:[%s11828_s15 + $0x38] sm:$0xff] }
 0x46d   : > { %11085 = vmatprep.subr.bf16.mxu0 %v11084_v27  ;;  %v11098_v7 = vpack.c.bf16 %v11686_v28, %v11685_v8  ;;  %vm15022_vm1 = vnez %v14611_v33  ;;  %v11689_v33 = vld [vmem:[%s11828_s15 + $0x40] sm:$0xff]  ;;  %v11701_v8 = vld [vmem:[%s11828_s15 + $0x70] sm:$0xff]  ;;  %v11702_v28 = vld [vmem:[%s11828_s15 + $0x78] sm:$0xff] }
 0x46e   : > { %10923 = vmatmul.mubr.msk.f32.vlgmr.msra.gmra.mrb[12].mxu1 %vm819_vm0, %v13286_v24  ;;  %11087 = vmatpush3.bf16.msra.mxu0 %v11086_v63  ;;  %v11676_v24 = vld [vmem:[%s11828_s15 + $0x98] sm:$0xff] }
 0x46f   : > { %10925 = vmatprep.mubr.msk.f32.mxu1 %vm819_vm0, %v7182_v25  ;;  %10971 = vmatpush3.msra.mxu1 %v9375_v17  ;;  %v11090_v17 = vpack.c.bf16 %v11678_v43, %v11677_v38  ;;  %v11094_v25 = vpack.c.bf16 %v11682_v26, %v11681_v55  ;;  %v11695_v43 = vld [vmem:[%s11828_s15 + $0xe0] sm:$0xff]  ;;  %v7178_v55 = vld [vmem:[#allocation2 + $0x117] sm:$0xff] }
 0x470   : > { %11020 = vmatprep.subr.mxu1 %v13864_v36  ;;  %v15036_v26 = vld [vmem:[#allocation55_spill] sm:$0xff] }
 0x472   : > { %10926 = vmatmul.mubr.msk.f32.gmra.mrb[14].mxu1 %vm819_vm0, %v13296_v35  ;;  %v11088_v35 = vpack.c.bf16 %v11676_v24, %v11675_v0  ;;  %v15029_v24 = vld [vmem:[#allocation4_spill] sm:$0xff] }
 0x473   : > { %10928 = vmatprep.mubr.msk.f32.mxu1 %vm819_vm0, %v7184_v31  ;;  %v11691_v31 = vld [vmem:[%s11828_s15 + $0xd0] sm:$0xff] }
 0x474   : > { %11089 = vmatprep.subr.bf16.mxu0 %v11088_v35  ;;  %v15030_v35 = vld [vmem:[#allocation20_spill] sm:$0xff] }
 0x475   : > { %11091 = vmatpush3.bf16.msra.mxu0 %v11090_v17 }
 0x476   : > { %10929 = vmatmul.mubr.msk.f32.gmra.mrb[16].mxu1 %vm819_vm0, %v13306_v6  ;;  %v7190_v6 = vsel %vm15019_vm2, %v13324_v12, 0.0  ;;  %vm15021_vm2 = vnez %v14609_v21  ;;  %v11683_v12 = vld [vmem:[%s11828_s15 + $0xb0] sm:$0xff]  ;;  %v7196_v21 = vsel %vm15022_vm1, %v13354_v23, 0.0  ;;  %v11690_v23 = vld [vmem:[%s11828_s15 + $0x48] sm:$0xff]  ;;  %vm15024_vm1 = vnez %v14615_v62 }
 0x477   : > { %10931 = vmatprep.mubr.msk.f32.mxu1 %vm819_vm0, %v7186_v3  ;;  %v11102_v40 = vpack.c.bf16 %v11690_v23, %v11689_v33  ;;  %v11693_v62 = vld [vmem:[%s11828_s15 + $0x50] sm:$0xff]  ;;  %v7569_v23 = vld [vmem:[#allocation2 + $0x38] sm:$0xff] }
 0x478   : > { %v14008_v33 = vld [vmem:[%s14309_s7 + $0x10] sm:$0xff] }
 0x47a   : > { %10932 = vmatmul.mubr.msk.f32.gmra.mrb[18].mxu1 %vm819_vm0, %v13316_v9  ;;  %v11680_v9 = vld [vmem:[%s11828_s15 + $0xa8] sm:$0xff] }
 0x47b   : > { %10934 = vmatprep.mubr.msk.f32.mxu1 %vm819_vm0, %v7188_v48  ;;  %v11092_v63 = vpack.c.bf16 %v11680_v9, %v11679_v29  ;;  %v11697_v48 = vld [vmem:[%s11828_s15 + $0x60] sm:$0xff] }
 0x47c   : > { %v15032_v29 = vld [vmem:[#allocation29_spill] sm:$0xff] }
 0x47d   : > { %11093 = vmatprep.subr.bf16.mxu0 %v11092_v63  ;;  %v15034_v9 = vld [vmem:[#allocation21_spill] sm:$0xff] }
 0x47e   : > { %10935 = vmatmul.mubr.msk.f32.gmra.mrb[20].mxu1 %vm819_vm0, %v13326_v44  ;;  %11095 = vmatpush3.bf16.msra.mxu0 %v11094_v25  ;;  %v7194_v44 = vsel %vm15021_vm2, %v13344_v22, 0.0  ;;  %vm15023_vm2 = vnez %v14613_v41  ;;  %v11687_v22 = vld [vmem:[%s11828_s15 + $0xc0] sm:$0xff]  ;;  %v7200_v41 = vsel %vm15024_vm1, %v13374_v52, 0.0  ;;  %v11694_v52 = vld [vmem:[%s11828_s15 + $0x58] sm:$0xff]  ;;  %v15037_v25 = vld [vmem:[#allocation22_spill] sm:$0xff] }
 0x47f   : > { %10937 = vmatprep.mubr.msk.f32.mxu1 %vm819_vm0, %v7190_v6  ;;  %v11106_v0 = vpack.c.bf16 %v11694_v52, %v11693_v62  ;;  %v14043_v62 = vld [vmem:[%s14309_s7 + $0x48] sm:$0xff]  ;;  %v7574_v52 = vld [vmem:[#allocation2 + $0x60] sm:$0xff] }
 0x482   : > { %10938 = vmatmul.mubr.msk.f32.gmra.mrb[22].mxu1 %vm819_vm0, %v13336_v61  ;;  %v11684_v61 = vld [vmem:[%s11828_s15 + $0xb8] sm:$0xff] }
 0x483   : > { %10940 = vmatprep.mubr.msk.f32.mxu1 %vm819_vm0, %v7192_v2  ;;  %v11096_v49 = vpack.c.bf16 %v11684_v61, %v11683_v12  ;;  %v11700_v12 = vld [vmem:[%s11828_s15 + $0xf8] sm:$0xff] }
 0x485   : > { %11097 = vmatprep.subr.bf16.mxu0 %v11096_v49  ;;  %v7179_v49 = vld [vmem:[#allocation2 + $0x11f] sm:$0xff] }
 0x486   : > { %10941 = vmatmul.mubr.msk.f32.gmra.mrb[24].mxu1 %vm819_vm0, %v13346_v30  ;;  %11099 = vmatpush3.bf16.msra.mxu0 %v11098_v7  ;;  %v7198_v30 = vsel %vm15023_vm2, %v13364_v47, 0.0  ;;  %v15025_v47 = vld [vmem:[#allocation18_spill] sm:$0xff]  ;;  %v11114_v7 = vpack.c.bf16 %v11702_v28, %v11701_v8  ;;  %v7592_v8 = vld [vmem:[#allocation2 + $0xf0] sm:$0xff]  ;;  %v7593_v28 = vld [vmem:[#allocation2 + $0xf8] sm:$0xff] }
 0x487   : > { %10943 = vmatprep.mubr.msk.f32.mxu1 %vm819_vm0, %v7194_v44  ;;  %vm15026_vm2 = vnez %v15025_v47  ;;  %v11699_v44 = vld [vmem:[%s11828_s15 + $0xf0] sm:$0xff]  ;;  %v14023_v47 = vld [vmem:[%s14309_s7 + $0x20] sm:$0xff] }
 0x488   : > { %v11112_v61 = vpack.c.bf16 %v11700_v12, %v11699_v44  ;;  %v7588_v44 = vld [vmem:[#allocation2 + $0xd0] sm:$0xff]  ;;  %v7589_v12 = vld [vmem:[#allocation2 + $0xd8] sm:$0xff] }
 0x48a   : > { %10944 = vmatmul.mubr.msk.f32.gmra.mrb[26].mxu1 %vm819_vm0, %v13356_v10  ;;  %v11688_v10 = vld [vmem:[%s11828_s15 + $0xc8] sm:$0xff] }
 0x48b   : > { %10946 = vmatprep.mubr.msk.f32.mxu1 %vm819_vm0, %v7196_v21  ;;  %v11100_v27 = vpack.c.bf16 %v11688_v10, %v11687_v22  ;;  %v7567_v21 = vld [vmem:[#allocation2 + $0x28] sm:$0xff]  ;;  %v13995_v22 = vld [vmem:[%s14309_s7] sm:$0xff]  ;;  %v14000_v10 = vld [vmem:[%s14309_s7 + $0x18] sm:$0xff] }
 0x48d   : > { %11101 = vmatprep.subr.bf16.mxu0 %v11100_v27  ;;  %v7568_v27 = vld [vmem:[#allocation2 + $0x30] sm:$0xff] }
 0x48e   : > { %10947 = vmatmul.mubr.msk.f32.gmra.mrb[28].mxu1 %vm819_vm0, %v13366_v58  ;;  %11103 = vmatpush3.bf16.msra.mxu0 %v11102_v40  ;;  %v7202_v58 = vsel %vm15026_vm2, %v13384_v45, 0.0  ;;  %vm15031_vm2 = vnez %v15030_v35  ;;  %v14014_v40 = vld [vmem:[%s14309_s7 + $0x28] sm:$0xff]  ;;  %v14065_v35 = vld [vmem:[%s14309_s7 + $0x50] sm:$0xff] }
 0x48f   : > { %10949 = vmatprep.mubr.msk.f32.mxu1 %vm819_vm0, %v7198_v30  ;;  %v7206_v38 = vsel %vm15031_vm2, %v15029_v24, 0.0  ;;  %vm15038_vm2 = vnez %v15037_v25  ;;  %v8413_v30 = vld [vmem:[%s14309_s7 + $0x8] sm:$0xff]  ;;  %v7576_v24 = vld [vmem:[#allocation2 + $0x70] sm:$0xff]  ;;  %v7586_v25 = vld [vmem:[#allocation2 + $0xc0] sm:$0xff] }
 0x490   : > { %v7210_v2 = vsel %vm15038_vm2, %v7178_v55, 0.0  ;;  %8492 = vmatprep.mubr.f32.mxu0 %v8413_v30  ;;  %v7584_v55 = vld [vmem:[#allocation2 + $0xb0] sm:$0xff] }
 0x492   : > { %10950 = vmatmul.mubr.msk.f32.gmra.mrb[30].mxu1 %vm819_vm0, %v13376_v32  ;;  %v11692_v32 = vld [vmem:[%s11828_s15 + $0xd8] sm:$0xff] }
 0x493   : > { %10952 = vmatprep.mubr.msk.f32.mxu1 %vm819_vm0, %v7200_v41  ;;  %v11104_v3 = vpack.c.bf16 %v11692_v32, %v11691_v31  ;;  %v7570_v41 = vld [vmem:[#allocation2 + $0x40] sm:$0xff]  ;;  %v14029_v31 = vld [vmem:[%s14309_s7 + $0x38] sm:$0xff]  ;;  %v14037_v32 = vld [vmem:[%s14309_s7 + $0x30] sm:$0xff] }
 0x495   : > { %11105 = vmatprep.subr.bf16.mxu0 %v11104_v3  ;;  %v7573_v3 = vld [vmem:[#allocation2 + $0x58] sm:$0xff] }
 0x496   : > { %10953 = vmatmul.mubr.msk.f32.gmra.mrb[32].mxu1 %vm819_vm0, %v13386_v60  ;;  %v15027_v60 = vld [vmem:[#allocation19_spill] sm:$0xff]  ;;  %11107 = vmatpush3.bf16.msra.mxu0 %v11106_v0  ;;  %v14051_v0 = vld [vmem:[%s14309_s7 + $0x40] sm:$0xff] }
 0x497   : > { %10955 = vmatprep.mubr.msk.f32.mxu1 %vm819_vm0, %v7202_v58  ;;  %vm15028_vm1 = vnez %v15027_v60  ;;  %v7571_v58 = vld [vmem:[#allocation2 + $0x48] sm:$0xff] }
 0x498   : > { %v7204_v45 = vsel %vm15028_vm1, %v13394_v34, 0.0  ;;  %v11698_v34 = vld [vmem:[%s11828_s15 + $0x68] sm:$0xff]  ;;  %vm15035_vm1 = vnez %v15034_v9  ;;  %v7582_v9 = vld [vmem:[#allocation2 + $0xa0] sm:$0xff] }
 0x499   : > { %v11110_v6 = vpack.c.bf16 %v11698_v34, %v11697_v48  ;;  %v7575_v60 = vld [vmem:[#allocation2 + $0x68] sm:$0xff]  ;;  %v14085_v34 = vld [vmem:[%s14309_s7 + $0x78] sm:$0xff] }
 0x49a   : > { %10956 = vmatmul.mubr.msk.f32.gmra.mrb[34].mxu1 %vm819_vm0, %v14939_v5  ;;  %v11696_v5 = vld [vmem:[%s11828_s15 + $0xe8] sm:$0xff] }
 0x49b   : > { %10958 = vmatprep.mubr.msk.f32.mxu1 %vm819_vm0, %v7204_v45  ;;  %v11108_v17 = vpack.c.bf16 %v11696_v5, %v11695_v43  ;;  %v14057_v45 = vld [vmem:[%s14309_s7 + $0x58] sm:$0xff]  ;;  %v14071_v43 = vld [vmem:[%s14309_s7 + $0x68] sm:$0xff]  ;;  %v7578_v5 = vld [vmem:[#allocation2 + $0x80] sm:$0xff] }
 0x49c   : > { %v7579_v48 = vld [vmem:[#allocation2 + $0x88] sm:$0xff] }
 0x49d   : > { %11109 = vmatprep.subr.bf16.mxu0 %v11108_v17  ;;  %v14079_v17 = vld [vmem:[%s14309_s7 + $0x60] sm:$0xff] }
 0x49e   : > { %10959 = vmatmul.mubr.msk.f32.gmra.mrb[36].mxu1 %vm819_vm0, %v14942_v19  ;;  %v15033_v19 = vld [vmem:[#allocation53_spill] sm:$0xff]  ;;  %11111 = vmatpush3.bf16.msra.mxu0 %v11110_v6  ;;  %v7580_v6 = vld [vmem:[#allocation2 + $0x90] sm:$0xff] }
 0x49f   : > { %10961 = vmatprep.mubr.msk.f32.mxu1 %vm819_vm0, %v7206_v38  ;;  %v7208_v63 = vsel %vm15035_vm1, %v15033_v19, 0.0  ;;  %11113 = vmatprep.subr.bf16.mxu0 %v11112_v61  ;;  %v7577_v38 = vld [vmem:[#allocation2 + $0x78] sm:$0xff]  ;;  %v7590_v61 = vld [vmem:[#allocation2 + $0xe0] sm:$0xff] }
 0x4a0   : > { %v7581_v19 = vld [vmem:[#allocation2 + $0x98] sm:$0xff] }
 0x4a2   : > { %10962 = vmatmul.mubr.msk.f32.gmra.mrb[38].mxu1 %vm819_vm0, %v15032_v29  ;;  %11115 = vmatpush3.bf16.msra.mxu0 %v11114_v7  ;;  %v14093_v29 = vld [vmem:[%s14309_s7 + $0x70] sm:$0xff]  ;;  %v7594_v7 = vld [vmem:[#allocation2 + $0x100] sm:$0xff] }
 0x4a3   : > { %10964 = vmatprep.mubr.msk.f32.mxu1 %vm819_vm0, %v7208_v63  ;;  %v7583_v63 = vld [vmem:[#allocation2 + $0xa8] sm:$0xff] }
 0x4a5   : > { %8493 = vmatmul.mubr.f32.vlgmr.msra.gmra.mrb[32].mxu0 %v13995_v22 }
 0x4a6   : > { %10965 = vmatmul.mubr.msk.f32.gmra.mrb[40].mxu1 %vm819_vm0, %v15036_v26  ;;  %8497 = vmatprep.mubr.f32.mxu0 %v14000_v10  ;;  %v7585_v26 = vld [vmem:[#allocation2 + $0xb8] sm:$0xff] }
 0x4a7   : > { %10967 = vmatprep.mubr.msk.f32.mxu1 %vm819_vm0, %v7210_v2  ;;  %v7587_v2 = vld [vmem:[#allocation2 + $0xc8] sm:$0xff] }
 0x4a9   : > { %8498 = vmatmul.mubr.f32.gmra.mrb[34].mxu0 %v14008_v33 }
 0x4aa   : > { %10968 = vmatmul.mubr.msk.f32.gmra.mrb[42].mxu1 %vm819_vm0, %v7179_v49  ;;  %8502 = vmatprep.mubr.f32.mxu0 %v14014_v40  ;;  %v7591_v49 = vld [vmem:[#allocation2 + $0xe8] sm:$0xff] }
 0x4ab   : > { %10972 = vmatprep.mubr.msk.f32.mxu1 %vm819_vm0, %v7567_v21  ;;  %v7597_v21 = vld [vmem:[#allocation2 + $0x118] sm:$0xff] }
 0x4ad   : > { %8503 = vmatmul.mubr.f32.gmra.mrb[36].mxu0 %v14023_v47 }
 0x4ae   : > { %10973 = vmatmul.mubr.msk.f32.vlgmr.msra.gmra.mrb[12].mxu1 %vm819_vm0, %v7568_v27  ;;  %8507 = vmatprep.mubr.f32.mxu0 %v14029_v31  ;;  %v7598_v27 = vld [vmem:[#allocation2 + $0x120] sm:$0xff] }
 0x4af   : > { %10975 = vmatprep.mubr.msk.f32.mxu1 %vm819_vm0, %v7569_v23  ;;  %11021 = vmatpush3.msra.mxu1 %v13864_v36  ;;  %v7572_v36 = vld [vmem:[#allocation2 + $0x50] sm:$0xff]  ;;  %v15040_v23 = vld [vmem:[#allocation32_spill] sm:$0xff] }
 0x4b1   : > { %8508 = vmatmul.mubr.f32.gmra.mrb[38].mxu0 %v14037_v32 }
 0x4b2   : > { %10976 = vmatmul.mubr.msk.f32.gmra.mrb[14].mxu1 %vm819_vm0, %v7570_v41  ;;  %8512 = vmatprep.mubr.f32.mxu0 %v14043_v62  ;;  %v15041_v41 = vld [vmem:[#allocation23_spill] sm:$0xff] }
 0x4b3   : > { %10978 = vmatprep.mubr.msk.f32.mxu1 %vm819_vm0, %v7571_v58  ;;  %vm15042_vm1 = vnez %v15041_v41 }
 0x4b4   : > { %v7987_v58 = vsel %vm15042_vm1, %v13441_v50, 0.0  ;;  %v15049_v50 = vld [vmem:[#allocation36_spill] sm:$0xff] }
 0x4b5   : > { %8513 = vmatmul.mubr.f32.gmra.mrb[40].mxu0 %v14051_v0 }
 0x4b6   : > { %10979 = vmatmul.mubr.msk.f32.gmra.mrb[16].mxu1 %vm819_vm0, %v7572_v36  ;;  %8517 = vmatprep.mubr.f32.mxu0 %v14057_v45  ;;  %v15043_v36 = vld [vmem:[#allocation33_spill] sm:$0xff] }
 0x4b7   : > { %10981 = vmatprep.mubr.msk.f32.mxu1 %vm819_vm0, %v7573_v3 }
 0x4b9   : > { %8518 = vmatmul.mubr.f32.gmra.mrb[42].mxu0 %v14065_v35 }
 0x4ba   : > { %10982 = vmatmul.mubr.msk.f32.gmra.mrb[18].mxu1 %vm819_vm0, %v7574_v52  ;;  %8522 = vmatprep.mubr.f32.mxu0 %v14071_v43  ;;  %v15046_v52 = vld [vmem:[#allocation35_spill] sm:$0xff] }
 0x4bb   : > { %10984 = vmatprep.mubr.msk.f32.mxu1 %vm819_vm0, %v7575_v60  ;;  %v15047_v60 = vld [vmem:[#allocation28_spill] sm:$0xff] }
 0x4bc   : > { %vm15048_vm14 = vnez %v15047_v60 }
 0x4bd   : > { %8523 = vmatmul.mubr.f32.gmra.mrb[44].mxu0 %v14079_v17 }
 0x4be   : > { %10985 = vmatmul.mubr.msk.f32.gmra.mrb[20].mxu1 %vm819_vm0, %v7576_v24  ;;  %8527 = vmatprep.mubr.f32.mxu0 %v14085_v34  ;;  %v7991_v24 = vsel %vm15048_vm14, %v13461_v42, 0.0  ;;  %v15053_v42 = vld [vmem:[#allocation39_spill] sm:$0xff] }
 0x4bf   : > { %10987 = vmatprep.mubr.msk.f32.mxu1 %vm819_vm0, %v7577_v38 }
 0x4c1   : > { %8528 = vmatmul.mubr.f32.gmra.mrb[46].mxu0 %v14093_v29 }
 0x4c2   : > { %10988 = vmatmul.mubr.msk.f32.gmra.mrb[22].mxu1 %vm819_vm0, %v7578_v5  ;;  %8734 = vmatprep.mubr.f32.mxu0 %v8413_v30  ;;  %v15039_v30 = vld [vmem:[#allocation58_spill] sm:$0xff]  ;;  %v7993_v5 = vsel %vm14991_vm5, %v13471_v51, 0.0  ;;  %v15055_v51 = vld [vmem:[#allocation41_spill] sm:$0xff] }
 0x4c3   : > { %10990 = vmatprep.mubr.msk.f32.mxu1 %vm819_vm0, %v7579_v48 }
 0x4c6   : > { %10991 = vmatmul.mubr.msk.f32.gmra.mrb[24].mxu1 %vm819_vm0, %v7580_v6  ;;  %v7995_v6 = vsel %vm14994_vm3, %v13481_v14, 0.0  ;;  %v15057_v14 = vld [vmem:[#allocation42_spill] sm:$0xff] }
 0x4c7   : > { %10993 = vmatprep.mubr.msk.f32.mxu1 %vm819_vm0, %v7581_v19 }
 0x4ca   : > { %10994 = vmatmul.mubr.msk.f32.gmra.mrb[26].mxu1 %vm819_vm0, %v7582_v9  ;;  %v7997_v9 = vsel %vm14997_vm4, %v13491_v37, 0.0  ;;  %v15059_v37 = vld [vmem:[#allocation44_spill] sm:$0xff] }
 0x4cb   : > { %10996 = vmatprep.mubr.msk.f32.mxu1 %vm819_vm0, %v7583_v63 }
 0x4ce   : > { %10997 = vmatmul.mubr.msk.f32.gmra.mrb[28].mxu1 %vm819_vm0, %v7584_v55  ;;  %v7999_v55 = vsel %vm14921_vm6, %v13501_v54, 0.0  ;;  %v15061_v54 = vld [vmem:[#allocation45_spill] sm:$0xff] }
 0x4cf   : > { %10999 = vmatprep.mubr.msk.f32.mxu1 %vm819_vm0, %v7585_v26 }
 0x4d2   : > { %11000 = vmatmul.mubr.msk.f32.gmra.mrb[30].mxu1 %vm819_vm0, %v7586_v25  ;;  %v8001_v25 = vsel %vm14923_vm7, %v13511_v20, 0.0  ;;  %v8007_v20 = vsel %vm14857_vm9, %v13541_v4, 0.0 }
 0x4d3   : > { %11002 = vmatprep.mubr.msk.f32.mxu1 %vm819_vm0, %v7587_v2 }
 0x4d6   : > { %11003 = vmatmul.mubr.msk.f32.gmra.mrb[32].mxu1 %vm819_vm0, %v7588_v44  ;;  %v8003_v44 = vsel %vm14851_vm8, %v13521_v11, 0.0  ;;  %v8009_v11 = vsel %vm14793_vm13, %v13551_v1, 0.0  ;;  %v15066_v1 = vld [vmem:[#allocation63_spill] sm:$0xff] }
 0x4d7   : > { %11005 = vmatprep.mubr.msk.f32.mxu1 %vm819_vm0, %v7589_v12 }
 0x4da   : > { %11006 = vmatmul.mubr.msk.f32.gmra.mrb[34].mxu1 %vm819_vm0, %v7590_v61  ;;  %v8005_v61 = vsel %vm14854_vm10, %v13531_v57, 0.0  ;;  %v15063_v57 = vld [vmem:[#allocation50_spill] sm:$0xff] }
 0x4db   : > { %11008 = vmatprep.mubr.msk.f32.mxu1 %vm819_vm0, %v7591_v49  ;;  %v8011_v49 = vsel %vm14797_vm11, %v13561_v18, 0.0 }
 0x4de   : > { %11009 = vmatmul.mubr.msk.f32.gmra.mrb[36].mxu1 %vm819_vm0, %v7592_v8  ;;  %v15067_v8 = vld [vmem:[#allocation70_spill] sm:$0xff] }
 0x4df   : > { %11011 = vmatprep.mubr.msk.f32.mxu1 %vm819_vm0, %v7593_v28  ;;  %v8015_v18 = vsel %vm12470_vm15, %v15067_v8, 0.0 }
 0x4e2   : > { %11012 = vmatmul.mubr.msk.f32.gmra.mrb[38].mxu1 %vm819_vm0, %v7594_v7 }
 0x4e3   : > { %11014 = vmatprep.mubr.msk.f32.mxu1 %vm819_vm0, %v13746_v46  ;;  %v15044_v46 = vld [vmem:[#allocation25_spill] sm:$0xff] }
 0x4e4   : > { %vm15045_vm2 = vnez %v15044_v46 }
 0x4e5   : > { %v7989_v3 = vsel %vm15045_vm2, %v13451_v39, 0.0  ;;  %v15051_v39 = vld [vmem:[#allocation38_spill] sm:$0xff] }
 0x4e6   : > { %11015 = vmatmul.mubr.msk.f32.gmra.mrb[40].mxu1 %vm819_vm0, %v15039_v30 }
 0x4e7   : > { %11017 = vmatprep.mubr.msk.f32.mxu1 %vm819_vm0, %v7597_v21 }
 0x4ea   : > { %11018 = vmatmul.mubr.msk.f32.gmra.mrb[42].mxu1 %vm819_vm0, %v7598_v27 }
 0x4eb   : > { %11022 = vmatprep.mubr.msk.f32.mxu1 %vm819_vm0, %v15040_v23 }
 0x4ee   : > { %11023 = vmatmul.mubr.msk.f32.vlgmr.msra.gmra.mrb[12].mxu1 %vm819_vm0, %v7987_v58 }
 0x4ef   : > { %11025 = vmatprep.mubr.msk.f32.mxu1 %vm819_vm0, %v15043_v36 }
 0x4f2   : > { %11026 = vmatmul.mubr.msk.f32.gmra.mrb[14].mxu1 %vm819_vm0, %v7989_v3 }
 0x4f3   : > { %11028 = vmatprep.mubr.msk.f32.mxu1 %vm819_vm0, %v15046_v52 }
 0x4f6   : > { %11029 = vmatmul.mubr.msk.f32.gmra.mrb[16].mxu1 %vm819_vm0, %v7991_v24 }
 0x4f7   : > { %11031 = vmatprep.mubr.msk.f32.mxu1 %vm819_vm0, %v15049_v50 }
 0x4fa   : > { %11032 = vmatmul.mubr.msk.f32.gmra.mrb[18].mxu1 %vm819_vm0, %v7993_v5 }
 0x4fb   : > { %11034 = vmatprep.mubr.msk.f32.mxu1 %vm819_vm0, %v15051_v39 }
 0x4fe   : > { %11035 = vmatmul.mubr.msk.f32.gmra.mrb[20].mxu1 %vm819_vm0, %v7995_v6 }
 0x4ff   : > { %11037 = vmatprep.mubr.msk.f32.mxu1 %vm819_vm0, %v15053_v42 }
 0x502   : > { %11038 = vmatmul.mubr.msk.f32.gmra.mrb[22].mxu1 %vm819_vm0, %v7997_v9 }
 0x503   : > { %11040 = vmatprep.mubr.msk.f32.mxu1 %vm819_vm0, %v15055_v51 }
 0x506   : > { %11041 = vmatmul.mubr.msk.f32.gmra.mrb[24].mxu1 %vm819_vm0, %v7999_v55 }
 0x507   : > { %11043 = vmatprep.mubr.msk.f32.mxu1 %vm819_vm0, %v15057_v14  ;;  %v14225_v14 = vld [vmem:[%s14306_s4] ss:$0 sm:$0xff] }
 0x50a   : > { %11044 = vmatmul.mubr.msk.f32.gmra.mrb[26].mxu1 %vm819_vm0, %v8001_v25 }
 0x50b   : > { %11046 = vmatprep.mubr.msk.f32.mxu1 %vm819_vm0, %v15059_v37 }
 0x50e   : > { %11047 = vmatmul.mubr.msk.f32.gmra.mrb[28].mxu1 %vm819_vm0, %v8003_v44 }
 0x50f   : > { %11049 = vmatprep.mubr.msk.f32.mxu1 %vm819_vm0, %v15061_v54 }
 0x512   : > { %11050 = vmatmul.mubr.msk.f32.gmra.mrb[30].mxu1 %vm819_vm0, %v8005_v61 }
 0x513   : > { %11052 = vmatprep.mubr.msk.f32.mxu1 %vm819_vm0, %v15008_v56 }
 0x516   : > { %11053 = vmatmul.mubr.msk.f32.gmra.mrb[32].mxu1 %vm819_vm0, %v8007_v20 }
 0x517   : > { %11055 = vmatprep.mubr.msk.f32.mxu1 %vm819_vm0, %v15010_v59  ;;  %v8013_v59 = vsel %vm14800_vm12, %v13571_v15, 0.0  ;;  %v8533_v15 = vld [vmem:[%s14307_s5] sm:$0xff] }
 0x518   : > { %11070 = vmatprep.subr.mxu1 %v8533_v15 }
 0x519   : > { %11071 = vmatpush3.msra.mxu1 %v8533_v15 }
 0x51a   : > { %11056 = vmatmul.mubr.msk.f32.gmra.mrb[34].mxu1 %vm819_vm0, %v8009_v11 }
 0x51b   : > { %11058 = vmatprep.mubr.msk.f32.mxu1 %vm819_vm0, %v15063_v57 }
 0x51e   : > { %11059 = vmatmul.mubr.msk.f32.gmra.mrb[36].mxu1 %vm819_vm0, %v8011_v49 }
 0x51f   : > { %11061 = vmatprep.mubr.msk.f32.mxu1 %vm819_vm0, %v13569_v53  ;;  %v15069_v53 = vld [vmem:[#allocation78_spill] sm:$0xff] }
 0x520   : > { %vm15070_vm3 = vnez %v15069_v53 }
 0x521   : > { %v8017_v7 = vsel %vm15070_vm3, %v7985_v13, 0.0 }
 0x522   : > { %11062 = vmatmul.mubr.msk.f32.gmra.mrb[38].mxu1 %vm819_vm0, %v8013_v59 }
 0x523   : > { %11064 = vmatprep.mubr.msk.f32.mxu1 %vm819_vm0, %v15066_v1 }
 0x526   : > { %11065 = vmatmul.mubr.msk.f32.gmra.mrb[40].mxu1 %vm819_vm0, %v8015_v18 }
 0x527   : > { %11067 = vmatprep.mubr.msk.f32.mxu1 %vm819_vm0, %v7984_v16 }
 0x52a   : > { %11068 = vmatmul.mubr.msk.f32.gmra.mrb[42].mxu1 %vm819_vm0, %v8017_v7 }
 0x578   : > { %v10081_v21 = vpop.f32.mrb[32].mxu0 }
 0x579   : > { %v10082_v30 = vpop.f32.mrb[33].mxu0 }
 0x57a   : > { %v10083_v27 = vadd.f32 %v10082_v30, %v10081_v21 }
 0x57c   : > { %v10084_v23 = vpop.f32.mrb[34].mxu0  ;;  %11072 = vmatprep.mubr.msk.f32.mxu1 %vm819_vm0, %v10083_v27 }
 0x57d   : > { %v10085_v41 = vpop.f32.mrb[35].mxu0 }
 0x57e   : > { %v10086_v58 = vadd.f32 %v10085_v41, %v10084_v23 }
 0x580   : > { %11073 = vmatmul.mubr.msk.f32.vlgmr.msra.gmra.mrb[44].mxu1 %vm819_vm0, %v10086_v58  ;;  %v10087_v36 = vpop.f32.mrb[36].mxu0 }
 0x581   : > { %v10088_v46 = vpop.f32.mrb[37].mxu0 }
 0x582   : > { %v10089_v3 = vadd.f32 %v10088_v46, %v10087_v36 }
 0x584   : > { %v10090_v52 = vpop.f32.mrb[38].mxu0  ;;  %11075 = vmatprep.mubr.msk.f32.mxu1 %vm819_vm0, %v10089_v3 }
 0x585   : > { %v10091_v60 = vpop.f32.mrb[39].mxu0 }
 0x586   : > { %v10092_v24 = vadd.f32 %v10091_v60, %v10090_v52 }
 0x588   : > { %11076 = vmatmul.mubr.msk.f32.gmra.mrb[46].mxu1 %vm819_vm0, %v10092_v24  ;;  %v10093_v50 = vpop.f32.mrb[40].mxu0 }
 0x589   : > { %v10094_v38 = vpop.f32.mrb[41].mxu0 }
 0x58a   : > { %v10095_v5 = vadd.f32 %v10094_v38, %v10093_v50 }
 0x58c   : > { %v10096_v39 = vpop.f32.mrb[42].mxu0  ;;  %11078 = vmatprep.mubr.msk.f32.mxu1 %vm819_vm0, %v10095_v5 }
 0x58d   : > { %v10097_v48 = vpop.f32.mrb[43].mxu0 }
 0x58e   : > { %v10098_v6 = vadd.f32 %v10097_v48, %v10096_v39 }
 0x590   : > { %11079 = vmatmul.mubr.msk.f32.gmra.mrb[48].mxu1 %vm819_vm0, %v10098_v6  ;;  %v10099_v42 = vpop.f32.mrb[44].mxu0 }
 0x591   : > { %v10100_v19 = vpop.f32.mrb[45].mxu0 }
 0x592   : > { %v10101_v9 = vadd.f32 %v10100_v19, %v10099_v42 }
 0x594   : > { %v10102_v51 = vpop.f32.mrb[46].mxu0  ;;  %11081 = vmatprep.mubr.msk.f32.mxu1 %vm819_vm0, %v10101_v9 }
 0x595   : > { %v10103_v63 = vpop.f32.mrb[47].mxu0 }
 0x596   : > { %v10104_v55 = vadd.f32 %v10103_v63, %v10102_v51 }
 0x598   : > { %11082 = vmatmul.mubr.msk.f32.gmra.mrb[50].mxu1 %vm819_vm0, %v10104_v55  ;;  %vm8775_vm0 = vcmask 130048  }
 0x5c1   : > { %v11024_v26 = vpop.f32.mrb[12].mxu1 }
 0x5c2   : > { %v8381_v25 = vadd.f32 %v11024_v26, %v14225_v14  ;;  %v8182_v37 = vpop.f32.mrb[13].mxu1 }
 0x5c3   : > { %v8380_v2 = vadd.f32 %v14225_v14, %v8182_v37 }
 0x5c5   : > { %v11118_v44 = vpack.c.bf16 %v8381_v25, %v8380_v2  ;;  %v11027_v54 = vpop.f32.mrb[14].mxu1 }
 0x5c6   : > { %v8383_v12 = vadd.f32 %v11027_v54, %v14225_v14  ;;  %v8192_v61 = vpop.f32.mrb[15].mxu1 }
 0x5c7   : > { %v8382_v20 = vadd.f32 %v14225_v14, %v8192_v61 }
 0x5c9   : > { %v11122_v11 = vpack.c.bf16 %v8383_v12, %v8382_v20  ;;  %v11030_v57 = vpop.f32.mrb[16].mxu1 }
 0x5ca   : > { %v8385_v56 = vadd.f32 %v11030_v57, %v14225_v14  ;;  %v8202_v49 = vpop.f32.mrb[17].mxu1 }
 0x5cb   : > { %v8384_v4 = vadd.f32 %v14225_v14, %v8202_v49 }
 0x5cd   : > { %v11126_v59 = vpack.c.bf16 %v8385_v56, %v8384_v4  ;;  %v11033_v1 = vpop.f32.mrb[18].mxu1 }
 0x5ce   : > { %v8387_v16 = vadd.f32 %v11033_v1, %v14225_v14  ;;  %v8212_v13 = vpop.f32.mrb[19].mxu1 }
 0x5cf   : > { %v8386_v8 = vadd.f32 %v14225_v14, %v8212_v13 }
 0x5d1   : > { %v11130_v28 = vpack.c.bf16 %v8387_v16, %v8386_v8  ;;  %v11036_v18 = vpop.f32.mrb[20].mxu1 }
 0x5d2   : > { %v8389_v53 = vadd.f32 %v11036_v18, %v14225_v14  ;;  %v8222_v7 = vpop.f32.mrb[21].mxu1 }
 0x5d3   : > { %v8388_v15 = vadd.f32 %v14225_v14, %v8222_v7 }
 0x5d5   : > { %v11134_v21 = vpack.c.bf16 %v8389_v53, %v8388_v15  ;;  %v11039_v30 = vpop.f32.mrb[22].mxu1 }
 0x5d6   : > { %v8391_v27 = vadd.f32 %v11039_v30, %v14225_v14  ;;  %v8232_v23 = vpop.f32.mrb[23].mxu1 }
 0x5d7   : > { %v8390_v41 = vadd.f32 %v14225_v14, %v8232_v23 }
 0x5d9   : > { %v11138_v58 = vpack.c.bf16 %v8391_v27, %v8390_v41  ;;  %v11042_v36 = vpop.f32.mrb[24].mxu1 }
 0x5da   : > { %v8393_v46 = vadd.f32 %v11042_v36, %v14225_v14  ;;  %v8242_v3 = vpop.f32.mrb[25].mxu1 }
 0x5db   : > { %v8392_v52 = vadd.f32 %v14225_v14, %v8242_v3 }
 0x5dd   : > { %v11142_v60 = vpack.c.bf16 %v8393_v46, %v8392_v52  ;;  %v11045_v24 = vpop.f32.mrb[26].mxu1 }
 0x5de   : > { %v8395_v50 = vadd.f32 %v11045_v24, %v14225_v14  ;;  %v8252_v38 = vpop.f32.mrb[27].mxu1 }
 0x5df   : > { %v8394_v5 = vadd.f32 %v14225_v14, %v8252_v38 }
 0x5e1   : > { %v11146_v39 = vpack.c.bf16 %v8395_v50, %v8394_v5  ;;  %v11048_v48 = vpop.f32.mrb[28].mxu1 }
 0x5e2   : > { %v8397_v6 = vadd.f32 %v11048_v48, %v14225_v14  ;;  %v8262_v42 = vpop.f32.mrb[29].mxu1 }
 0x5e3   : > { %v8396_v19 = vadd.f32 %v14225_v14, %v8262_v42 }
 0x5e5   : > { %v11116_v9 = vpack.c.bf16 %v8397_v6, %v8396_v19  ;;  %v11051_v51 = vpop.f32.mrb[30].mxu1 }
 0x5e6   : > { %v8399_v63 = vadd.f32 %v11051_v51, %v14225_v14  ;;  %v8272_v55 = vpop.f32.mrb[31].mxu1 }
 0x5e7   : > { %v8398_v26 = vadd.f32 %v14225_v14, %v8272_v55  ;;  %11117 = vmatprep.subr.bf16.mxu0 %v11116_v9 }
 0x5e8   : > { %11119 = vmatpush3.bf16.msra.mxu0 %v11118_v44 }
 0x5e9   : > { %v11120_v25 = vpack.c.bf16 %v8399_v63, %v8398_v26  ;;  %v11054_v37 = vpop.f32.mrb[32].mxu1 }
 0x5ea   : > { %v8401_v2 = vadd.f32 %v11054_v37, %v14225_v14  ;;  %v8282_v54 = vpop.f32.mrb[33].mxu1 }
 0x5eb   : > { %v8400_v12 = vadd.f32 %v14225_v14, %v8282_v54  ;;  %11121 = vmatprep.subr.bf16.mxu0 %v11120_v25 }
 0x5ec   : > { %11123 = vmatpush3.bf16.msra.mxu0 %v11122_v11 }
 0x5ed   : > { %v11124_v61 = vpack.c.bf16 %v8401_v2, %v8400_v12  ;;  %v11057_v20 = vpop.f32.mrb[34].mxu1 }
 0x5ee   : > { %v8403_v57 = vadd.f32 %v11057_v20, %v14225_v14  ;;  %v8292_v56 = vpop.f32.mrb[35].mxu1 }
 0x5ef   : > { %v8402_v49 = vadd.f32 %v14225_v14, %v8292_v56  ;;  %11125 = vmatprep.subr.bf16.mxu0 %v11124_v61 }
 0x5f0   : > { %11127 = vmatpush3.bf16.msra.mxu0 %v11126_v59 }
 0x5f1   : > { %v11128_v4 = vpack.c.bf16 %v8403_v57, %v8402_v49  ;;  %v11060_v44 = vpop.f32.mrb[36].mxu1 }
 0x5f2   : > { %v8405_v1 = vadd.f32 %v11060_v44, %v14225_v14  ;;  %v8302_v16 = vpop.f32.mrb[37].mxu1 }
 0x5f3   : > { %v8404_v13 = vadd.f32 %v14225_v14, %v8302_v16  ;;  %11129 = vmatprep.subr.bf16.mxu0 %v11128_v4 }
 0x5f4   : > { %11131 = vmatpush3.bf16.msra.mxu0 %v11130_v28 }
 0x5f5   : > { %v11132_v8 = vpack.c.bf16 %v8405_v1, %v8404_v13  ;;  %v11063_v11 = vpop.f32.mrb[38].mxu1 }
 0x5f6   : > { %v8407_v18 = vadd.f32 %v11063_v11, %v14225_v14  ;;  %v8312_v53 = vpop.f32.mrb[39].mxu1 }
 0x5f7   : > { %v8406_v7 = vadd.f32 %v14225_v14, %v8312_v53  ;;  %11133 = vmatprep.subr.bf16.mxu0 %v11132_v8 }
 0x5f8   : > { %11135 = vmatpush3.bf16.msra.mxu0 %v11134_v21 }
 0x5f9   : > { %v11136_v15 = vpack.c.bf16 %v8407_v18, %v8406_v7  ;;  %v11066_v59 = vpop.f32.mrb[40].mxu1 }
 0x5fa   : > { %v8409_v30 = vadd.f32 %v11066_v59, %v14225_v14  ;;  %v8322_v27 = vpop.f32.mrb[41].mxu1 }
 0x5fb   : > { %v8408_v23 = vadd.f32 %v14225_v14, %v8322_v27  ;;  %11137 = vmatprep.subr.bf16.mxu0 %v11136_v15 }
 0x5fc   : > { %11139 = vmatpush3.bf16.msra.mxu0 %v11138_v58 }
 0x5fd   : > { %v11140_v41 = vpack.c.bf16 %v8409_v30, %v8408_v23  ;;  %v11069_v28 = vpop.f32.mrb[42].mxu1 }
 0x5fe   : > { %v8411_v36 = vadd.f32 %v11069_v28, %v14225_v14  ;;  %v8332_v46 = vpop.f32.mrb[43].mxu1 }
 0x5ff   : > { %v8410_v3 = vadd.f32 %v14225_v14, %v8332_v46  ;;  %11141 = vmatprep.subr.bf16.mxu0 %v11140_v41 }
 0x600   : > { %11143 = vmatpush3.bf16.msra.mxu0 %v11142_v60 }
 0x601   : > { %v11144_v52 = vpack.c.bf16 %v8411_v36, %v8410_v3 }
 0x603   : > { %11145 = vmatprep.subr.bf16.mxu0 %v11144_v52 }
 0x604   : > { %11147 = vmatpush3.bf16.msra.mxu0 %v11146_v39 }
 0x607   : > { %8735 = vmatmul.mubr.f32.vlgmr.msra.gmra.mrb[48].mxu0 %v13995_v22 }
 0x608   : > { %8739 = vmatprep.mubr.f32.mxu0 %v14000_v10 }
 0x60b   : > { %8740 = vmatmul.mubr.f32.gmra.mrb[50].mxu0 %v14008_v33 }
 0x60c   : > { %8744 = vmatprep.mubr.f32.mxu0 %v14014_v40 }
 0x60f   : > { %8745 = vmatmul.mubr.f32.gmra.mrb[52].mxu0 %v14023_v47 }
 0x610   : > { %8749 = vmatprep.mubr.f32.mxu0 %v14029_v31 }
 0x613   : > { %8750 = vmatmul.mubr.f32.gmra.mrb[54].mxu0 %v14037_v32 }
 0x614   : > { %8754 = vmatprep.mubr.f32.mxu0 %v14043_v62 }
 0x617   : > { %8755 = vmatmul.mubr.f32.gmra.mrb[56].mxu0 %v14051_v0  ;;  %v9442_v0 = vld [vmem:[%s14308_s6] ss:$0 sm:$0xff] }
 0x618   : > { %8759 = vmatprep.mubr.f32.mxu0 %v14057_v45 }
 0x61b   : > { %8760 = vmatmul.mubr.f32.gmra.mrb[58].mxu0 %v14065_v35 }
 0x61c   : > { %8764 = vmatprep.mubr.f32.mxu0 %v14071_v43 }
 0x61f   : > { %8765 = vmatmul.mubr.f32.gmra.mrb[60].mxu0 %v14079_v17 }
 0x620   : > { %8769 = vmatprep.mubr.f32.mxu0 %v14085_v34 }
 0x623   : > { %8770 = vmatmul.mubr.f32.gmra.mrb[62].mxu0 %v14093_v29 }
 0x653   : > { %v11074_v22 = vpop.f32.mrb[44].mxu1 }
 0x654   : > { %v8631_v10 = vpop.f32.mrb[45].mxu1  ;;  %v8637_v21 = vadd.f32 %v11074_v22, %v9442_v0 }
 0x655   : > { %v8632_v35 = vadd.f32 %v9442_v0, %v8631_v10 }
 0x65b   : > { %v11077_v33 = vpop.f32.mrb[46].mxu1 }
 0x65c   : > { %v8641_v40 = vpop.f32.mrb[47].mxu1  ;;  %v8647_v42 = vadd.f32 %v11077_v33, %v9442_v0 }
 0x65d   : > { %v8642_v50 = vadd.f32 %v9442_v0, %v8641_v40 }
 0x663   : > { %v11080_v47 = vpop.f32.mrb[48].mxu1 }
 0x664   : > { %v8651_v31 = vpop.f32.mrb[49].mxu1  ;;  %v8657_v54 = vadd.f32 %v11080_v47, %v9442_v0 }
 0x665   : > { %v8652_v63 = vadd.f32 %v9442_v0, %v8651_v31 }
 0x66b   : > { %v11083_v32 = vpop.f32.mrb[50].mxu1 }
 0x66c   : > { %v8661_v62 = vpop.f32.mrb[51].mxu1  ;;  %v8667_v16 = vadd.f32 %v11083_v32, %v9442_v0 }
 0x66d   : > { %v8662_v57 = vadd.f32 %v9442_v0, %v8661_v62 }
 0x6da   : > { %v10146_v45 = vpop.f32.mrb[48].mxu0 }
 0x6db   : > { %v10147_v43 = vpop.f32.mrb[49].mxu0 }
 0x6dc   : > { %v10148_v17 = vadd.f32 %v10147_v43, %v10146_v45 }
 0x6de   : > { %v8737_v34 = vadd.f32 %v10148_v17, %v8632_v35  ;;  %v10149_v29 = vpop.f32.mrb[50].mxu0 }
 0x6df   : > { %v10150_v14 = vpop.f32.mrb[51].mxu0 }
 0x6e0   : > { %8776 = vst.msk [vmem:[%s14281_s12] sm:$0xff] %vm8775_vm0, %v8737_v34  ;;  %v10151_v58 = vadd.f32 %v10150_v14, %v10149_v29 }
 0x6e2   : > { %v8742_v60 = vadd.f32 %v10151_v58, %v8637_v21  ;;  %v10152_v24 = vpop.f32.mrb[52].mxu0 }
 0x6e3   : > { %v10153_v38 = vpop.f32.mrb[53].mxu0 }
 0x6e4   : > { %8777 = vst.msk [vmem:[%s14281_s12 + $0x8] sm:$0xff] %vm8775_vm0, %v8742_v60  ;;  %v10154_v5 = vadd.f32 %v10153_v38, %v10152_v24 }
 0x6e6   : > { %v8747_v39 = vadd.f32 %v10154_v5, %v8642_v50  ;;  %v10155_v48 = vpop.f32.mrb[54].mxu0 }
 0x6e7   : > { %v10156_v6 = vpop.f32.mrb[55].mxu0 }
 0x6e8   : > { %8778 = vst.msk [vmem:[%s14281_s12 + $0x10] sm:$0xff] %vm8775_vm0, %v8747_v39  ;;  %v10157_v19 = vadd.f32 %v10156_v6, %v10155_v48 }
 0x6ea   : > { %v8752_v9 = vadd.f32 %v10157_v19, %v8647_v42  ;;  %v10158_v51 = vpop.f32.mrb[56].mxu0 }
 0x6eb   : > { %v10159_v55 = vpop.f32.mrb[57].mxu0 }
 0x6ec   : > { %8779 = vst.msk [vmem:[%s14281_s12 + $0x18] sm:$0xff] %vm8775_vm0, %v8752_v9  ;;  %v10160_v26 = vadd.f32 %v10159_v55, %v10158_v51 }
 0x6ee   : > { %v8757_v25 = vadd.f32 %v10160_v26, %v8652_v63  ;;  %v10161_v37 = vpop.f32.mrb[58].mxu0 }
 0x6ef   : > { %v10162_v2 = vpop.f32.mrb[59].mxu0 }
 0x6f0   : > { %8780 = vst.msk [vmem:[%s14281_s12 + $0x20] sm:$0xff] %vm8775_vm0, %v8757_v25  ;;  %v10163_v12 = vadd.f32 %v10162_v2, %v10161_v37 }
 0x6f2   : > { %v8762_v61 = vadd.f32 %v10163_v12, %v8657_v54  ;;  %v10164_v20 = vpop.f32.mrb[60].mxu0 }
 0x6f3   : > { %v10165_v56 = vpop.f32.mrb[61].mxu0 }
 0x6f4   : > { %8781 = vst.msk [vmem:[%s14281_s12 + $0x28] sm:$0xff] %vm8775_vm0, %v8762_v61  ;;  %v10166_v49 = vadd.f32 %v10165_v56, %v10164_v20 }
 0x6f6   : > { %v8767_v4 = vadd.f32 %v10166_v49, %v8662_v57  ;;  %v10167_v44 = vpop.f32.mrb[62].mxu0 }
 0x6f7   : > { %v10168_v1 = vpop.f32.mrb[63].mxu0 }
 0x6f8   : > { %8782 = vst.msk [vmem:[%s14281_s12 + $0x30] sm:$0xff] %vm8775_vm0, %v8767_v4  ;;  %v10169_v13 = vadd.f32 %v10168_v1, %v10167_v44 }
 0x6fa   : > { %v8772_v8 = vadd.f32 %v10169_v13, %v8667_v16 }
 0x6fc   : > { %8783 = vst.msk [vmem:[%s14281_s12 + $0x38] sm:$0xff] %vm8775_vm0, %v8772_v8 }
 0x6fd PF: > { %s18_s27 = sadd.s32 1, %s11709_s27  }
 0x6fe   : > { %p15_p4 = scmp.ge.s32.totalorder %s18_s27, 4  }
 0x700   :  { %17 = sbr.rel (!%p15_p4) target bundleno = 1 (0x1), region = 98 }

</bundles_post_ra>
